<compile_context>
chip_gen: v5e
topology: v5e:2x2
jax: 0.10.0
libtpu: 0.0.40
codegen_flags: <defaults>
</compile_context>

<pallas_src>
import jax
import jax.numpy as jnp
from jax.experimental import pallas as pl
from jax.experimental.pallas import tpu as pltpu

EPS = 1e-5  # torch.nn.InstanceNorm2d default eps


def _vmem_capacity_bytes() -> int:
    """Per-core VMEM capacity; conservative (v7x) fallback if query fails."""
    try:
        return int(pltpu.get_tpu_info().vmem_capacity_bytes)
    except Exception:
        return 64 << 20


def _shift_rows_reflect(t, dy, H):
    """r[h] = t[reflect(h + dy - 1)] along the leading (H) axis."""
    if dy == 0:
        return jnp.concatenate([t[1:2], t[: H - 1]], axis=0)
    if dy == 1:
        return t
    return jnp.concatenate([t[1:], t[H - 2 : H - 1]], axis=0)


def _shift_cols_reflect(t, dx, W):
    """r[:, w] = t[:, reflect(w + dx - 1)] along the W (sublane) axis."""
    if dx == 0:
        return jnp.concatenate([t[:, 1:2], t[:, : W - 1]], axis=1)
    if dx == 1:
        return t
    return jnp.concatenate([t[:, 1:], t[:, W - 2 : W - 1]], axis=1)


def _residual_block_kernel(x_ref,   # (1, H, W, C) f32
                           w_ref,   # (2, 3, 3*C, C) bf16  (conv index, dy, (dx,cin), cout)
                           p_ref,   # (4, C) f32: g1, be1, g2, be2
                           o_ref):  # (1, H, W, C)
    _, H, W, C = x_ref.shape
    HW = H * W

    x = x_ref[0]                       # (H, W, C) f32
    p = p_ref[...]                     # (4, C) f32

    def conv_in(t, widx, g, be):
        # 3x3 reflect-pad conv (bias-free; bias cancels under IN) as three
        # accumulating MXU matmuls with K = 3*C, followed by fused instance
        # norm with gamma folded into the rsqrt factor.  Stats stay in f32.
        acc = jnp.zeros((HW, C), jnp.float32)
        for dy in range(3):
            rows = _shift_rows_reflect(t, dy, H)                 # (H, W, C)
            slab = jnp.concatenate(
                [_shift_cols_reflect(rows, dx, W) for dx in range(3)],
                axis=-1)                                         # (H, W, 3C)
            lhs = slab.reshape(HW, 3 * C).astype(jnp.bfloat16)   # bf16 at matmul boundary
            acc = acc + jnp.dot(lhs, w_ref[widx, dy],
                                preferred_element_type=jnp.float32)
        s = jnp.sum(acc, axis=0, keepdims=True)
        ss = jnp.sum(acc * acc, axis=0, keepdims=True)
        mean = s * (1.0 / HW)
        var = ss * (1.0 / HW) - mean * mean                      # biased variance (f32)
        inv_g = jax.lax.rsqrt(var + EPS) * g
        return (acc - mean) * inv_g + be                         # (HW, C) f32

    # conv1 -> IN1 -> ReLU
    y1 = jnp.maximum(conv_in(x, 0, p[0:1], p[1:2]), 0.0).reshape(H, W, C)
    # conv2 -> IN2 -> residual add
    y2 = conv_in(y1, 1, p[2:3], p[3:4]).reshape(H, W, C)
    o_ref[0] = (y2 + x).astype(o_ref.dtype)


@jax.jit
def residual_block(x_nhwc, w1, g1, be1, w2, g2, be2):
    """x_nhwc: (N, H, W, C) f32. w*: (3, 3, Cin, Cout) HWIO. g*/be*: (1, C)."""
    N, H, W, C = x_nhwc.shape

    # Pack both conv weights: (2, 3, 3*C, C), rows within each dy block are
    # (dx, cin)-major/minor, matching the kernel's lane-concat order. bf16.
    w_pk = jnp.stack([w1.reshape(3, 3 * C, C),
                      w2.reshape(3, 3 * C, C)]).astype(jnp.bfloat16)
    # Pack the four IN affine vectors into one (4, C) f32 block.
    p_pk = jnp.stack([g1.reshape(C), be1.reshape(C),
                      g2.reshape(C), be2.reshape(C)]).astype(jnp.float32)

    img_spec = pl.BlockSpec((1, H, W, C), lambda n: (n, 0, 0, 0))
    w_spec = pl.BlockSpec((2, 3, 3 * C, C), lambda n: (0, 0, 0, 0))
    p_spec = pl.BlockSpec((4, C), lambda n: (0, 0))

    # Accurate VMEM budget (double-buffered pipeline blocks + live temporaries),
    # with 2x compiler slack, capped at ~80% of this generation's capacity.
    f32b, bf16b = 4, 2
    img_f32 = H * W * C * f32b
    block_bytes = (2 * (2 * img_f32)                      # in + out image blocks
                   + 2 * (2 * 9 * C * C * bf16b)          # packed weights
                   + 2 * (8 * max(C, 128) * f32b))        # packed IN params (padded tile)
    temp_bytes = (3 * img_f32 + 3 * H * W * C * bf16b     # per-dy slab (f32 + bf16 cast)
                  + 2 * img_f32                           # f32 accumulator + y1
                  + 4 * img_f32)                          # shifted views / epilogue temps
    cap = _vmem_capacity_bytes()
    vmem_limit = int(min(max(2 * (block_bytes + temp_bytes), 16 << 20),
                         int(0.8 * cap)))

    return pl.pallas_call(
        _residual_block_kernel,
        out_shape=jax.ShapeDtypeStruct((N, H, W, C), x_nhwc.dtype),
        grid_spec=pltpu.PrefetchScalarGridSpec(
            num_scalar_prefetch=0,
            grid=(N,),
            in_specs=[img_spec, w_spec, p_spec],
            out_specs=img_spec),
        compiler_params=pltpu.CompilerParams(
            dimension_semantics=("parallel",),
            vmem_limit_bytes=vmem_limit),
    )(x_nhwc, w_pk, p_pk)


def _reference(x_nhwc, w1, b1, g1, be1, w2, b2, g2, be2):
    """Pure-JAX f32 reference mirroring the PyTorch module (biases included)."""
    def conv(t, w, b):
        tp = jnp.pad(t, ((0, 0), (1, 1), (1, 1), (0, 0)), mode="reflect")
        y = jax.lax.conv_general_dilated(
            tp, w, window_strides=(1, 1), padding="VALID",
            dimension_numbers=("NHWC", "HWIO", "NHWC"))
        return y + b.reshape(1, 1, 1, -1)

    def inorm(t, g, be):
        m = jnp.mean(t, axis=(1, 2), keepdims=True)
        v = jnp.mean((t - m) ** 2, axis=(1, 2), keepdims=True)
        return (t - m) * jax.lax.rsqrt(v + EPS) * g.reshape(1, 1, 1, -1) \
            + be.reshape(1, 1, 1, -1)

    y = jnp.maximum(inorm(conv(x_nhwc, w1, b1), g1, be1), 0.0)
    y = inorm(conv(y, w2, b2), g2, be2)
    return y + x_nhwc


if __name__ == "__main__":
    N, C, H, W = 2, 4, 16, 16  # small shapes consistent with the NCHW module

    key = jax.random.PRNGKey(0)
    kx, kw1, kb1, kg1, kbe1, kw2, kb2, kg2, kbe2 = jax.random.split(key, 9)

    # Input in PyTorch's NCHW, transposed to the kernel's NHWC layout.
    x_nchw = jax.random.normal(kx, (N, C, H, W), jnp.float32)
    x_nhwc = jnp.transpose(x_nchw, (0, 2, 3, 1))

    # Deterministic synthetic parameters (Conv2d weight OIHW -> HWIO; IN affine).
    def make_conv(kw, kb):
        w_oihw = 0.1 * jax.random.normal(kw, (C, C, 3, 3), jnp.float32)
        w_hwio = jnp.transpose(w_oihw, (2, 3, 1, 0))            # (3, 3, Cin, Cout)
        b = 0.1 * jax.random.normal(kb, (C,), jnp.float32)
        return w_hwio, b.reshape(1, C)

    w1, b1 = make_conv(kw1, kb1)
    w2, b2 = make_conv(kw2, kb2)
    g1 = (1.0 + 0.1 * jax.random.normal(kg1, (C,), jnp.float32)).reshape(1, C)
    be1 = (0.1 * jax.random.normal(kbe1, (C,), jnp.float32)).reshape(1, C)
    g2 = (1.0 + 0.1 * jax.random.normal(kg2, (C,), jnp.float32)).reshape(1, C)
    be2 = (0.1 * jax.random.normal(kbe2, (C,), jnp.float32)).reshape(1, C)

    # Kernel takes no conv biases: they are cancelled exactly by InstanceNorm.
    out = residual_block(x_nhwc, w1, g1, be1, w2, g2, be2)
    out = jax.block_until_ready(out)

    ref = _reference(x_nhwc, w1, b1, g1, be1, w2, b2, g2, be2)
    assert out.shape == (N, H, W, C)
    # Tolerance reflects bf16 MXU operands (f32 accumulation) across two convs.
    assert jnp.allclose(out, ref, atol=3e-2, rtol=3e-2), \
        f"max abs err = {jnp.max(jnp.abs(out - ref))}"

    print("KERNEL_OK")
</pallas_src>

<mosaic_0001>
module attributes {stable_mosaic.version = 11 : i64} {
  func.func @_residual_block_kernel(%arg0: i32, %arg1: memref<1x16x16x4xf32, #tpu.memory_space<vmem>>, %arg2: memref<2x3x12x4xbf16, #tpu.memory_space<vmem>>, %arg3: memref<4x4xf32, #tpu.memory_space<vmem>>, %arg4: memref<1x16x16x4xf32, #tpu.memory_space<vmem>>) attributes {dimension_semantics = [#tpu.dimension_semantics<parallel>], iteration_bounds = array<i64: 2>, scalar_prefetch = 0 : i64, scratch_operands = 0 : i64, tpu.core_type = #tpu.core_type<tc>, window_params = [{transform_indices = @transform_0, window_bounds = array<i64: 1, 16, 16, 4>}, {pipeline_mode = #tpu.pipeline_mode<synchronous>, transform_indices = @transform_1, window_bounds = array<i64: 2, 3, 12, 4>}, {pipeline_mode = #tpu.pipeline_mode<synchronous>, transform_indices = @transform_2, window_bounds = array<i64: 4, 4>}, {transform_indices = @transform_3, window_bounds = array<i64: 1, 16, 16, 4>}]} {
    %c0 = arith.constant 0 : index
    %c0_0 = arith.constant 0 : index
    %c0_1 = arith.constant 0 : index
    %c0_2 = arith.constant 0 : index
    %0 = vector.load %arg1[%c0, %c0_0, %c0_1, %c0_2] : memref<1x16x16x4xf32, #tpu.memory_space<vmem>>, vector<1x16x16x4xf32>
    %1 = vector.shape_cast %0 : vector<1x16x16x4xf32> to vector<16x16x4xf32>
    %c0_3 = arith.constant 0 : index
    %c0_4 = arith.constant 0 : index
    %2 = vector.load %arg3[%c0_3, %c0_4] : memref<4x4xf32, #tpu.memory_space<vmem>>, vector<4x4xf32>
    %3 = vector.extract_strided_slice %2 {offsets = [0, 0], sizes = [1, 4], strides = [1, 1]} : vector<4x4xf32> to vector<1x4xf32>
    %4 = vector.extract_strided_slice %2 {offsets = [1, 0], sizes = [1, 4], strides = [1, 1]} : vector<4x4xf32> to vector<1x4xf32>
    %cst = arith.constant 0.000000e+00 : f32
    %5 = vector.broadcast %cst : f32 to vector<256x4xf32>
    %6 = vector.extract_strided_slice %1 {offsets = [1, 0, 0], sizes = [1, 16, 4], strides = [1, 1, 1]} : vector<16x16x4xf32> to vector<1x16x4xf32>
    %7 = vector.extract_strided_slice %1 {offsets = [0, 0, 0], sizes = [15, 16, 4], strides = [1, 1, 1]} : vector<16x16x4xf32> to vector<15x16x4xf32>
    %8 = tpu.concatenate %6, %7 in 0 : vector<1x16x4xf32>, vector<15x16x4xf32> -> vector<16x16x4xf32>
    %9 = vector.extract_strided_slice %8 {offsets = [0, 1, 0], sizes = [16, 1, 4], strides = [1, 1, 1]} : vector<16x16x4xf32> to vector<16x1x4xf32>
    %10 = vector.extract_strided_slice %8 {offsets = [0, 0, 0], sizes = [16, 15, 4], strides = [1, 1, 1]} : vector<16x16x4xf32> to vector<16x15x4xf32>
    %11 = tpu.concatenate %9, %10 in 1 : vector<16x1x4xf32>, vector<16x15x4xf32> -> vector<16x16x4xf32>
    %12 = vector.extract_strided_slice %8 {offsets = [0, 1, 0], sizes = [16, 15, 4], strides = [1, 1, 1]} : vector<16x16x4xf32> to vector<16x15x4xf32>
    %13 = vector.extract_strided_slice %8 {offsets = [0, 14, 0], sizes = [16, 1, 4], strides = [1, 1, 1]} : vector<16x16x4xf32> to vector<16x1x4xf32>
    %14 = tpu.concatenate %12, %13 in 1 : vector<16x15x4xf32>, vector<16x1x4xf32> -> vector<16x16x4xf32>
    %15 = tpu.concatenate %11, %8, %14 in 2 : vector<16x16x4xf32>, vector<16x16x4xf32>, vector<16x16x4xf32> -> vector<16x16x12xf32>
    %16 = vector.shape_cast %15 : vector<16x16x12xf32> to vector<256x12xf32>
    %17 = arith.truncf %16 : vector<256x12xf32> to vector<256x12xbf16>
    %c0_5 = arith.constant 0 : index
    %c0_6 = arith.constant 0 : index
    %c0_7 = arith.constant 0 : index
    %c0_8 = arith.constant 0 : index
    %18 = vector.load %arg2[%c0_5, %c0_6, %c0_7, %c0_8] : memref<2x3x12x4xbf16, #tpu.memory_space<vmem>>, vector<1x1x12x4xbf16>
    %19 = vector.shape_cast %18 : vector<1x1x12x4xbf16> to vector<12x4xbf16>
    %cst_9 = arith.constant dense<0.000000e+00> : vector<256x4xf32>
    %20 = tpu.matmul %17, %19, %cst_9 {dimension_numbers = #tpu.dot_dimension_numbers<[1], [0], [0], [1], [0, 0, 1, 1], [], []>} : vector<256x12xbf16>, vector<12x4xbf16>, vector<256x4xf32> -> vector<256x4xf32>
    %21 = arith.addf %5, %20 : vector<256x4xf32>
    %22 = vector.extract_strided_slice %1 {offsets = [0, 1, 0], sizes = [16, 1, 4], strides = [1, 1, 1]} : vector<16x16x4xf32> to vector<16x1x4xf32>
    %23 = vector.extract_strided_slice %1 {offsets = [0, 0, 0], sizes = [16, 15, 4], strides = [1, 1, 1]} : vector<16x16x4xf32> to vector<16x15x4xf32>
    %24 = tpu.concatenate %22, %23 in 1 : vector<16x1x4xf32>, vector<16x15x4xf32> -> vector<16x16x4xf32>
    %25 = vector.extract_strided_slice %1 {offsets = [0, 1, 0], sizes = [16, 15, 4], strides = [1, 1, 1]} : vector<16x16x4xf32> to vector<16x15x4xf32>
    %26 = vector.extract_strided_slice %1 {offsets = [0, 14, 0], sizes = [16, 1, 4], strides = [1, 1, 1]} : vector<16x16x4xf32> to vector<16x1x4xf32>
    %27 = tpu.concatenate %25, %26 in 1 : vector<16x15x4xf32>, vector<16x1x4xf32> -> vector<16x16x4xf32>
    %28 = tpu.concatenate %24, %1, %27 in 2 : vector<16x16x4xf32>, vector<16x16x4xf32>, vector<16x16x4xf32> -> vector<16x16x12xf32>
    %29 = vector.shape_cast %28 : vector<16x16x12xf32> to vector<256x12xf32>
    %30 = arith.truncf %29 : vector<256x12xf32> to vector<256x12xbf16>
    %c0_10 = arith.constant 0 : index
    %c1 = arith.constant 1 : index
    %c0_11 = arith.constant 0 : index
    %c0_12 = arith.constant 0 : index
    %31 = vector.load %arg2[%c0_10, %c1, %c0_11, %c0_12] : memref<2x3x12x4xbf16, #tpu.memory_space<vmem>>, vector<1x1x12x4xbf16>
    %32 = vector.shape_cast %31 : vector<1x1x12x4xbf16> to vector<12x4xbf16>
    %cst_13 = arith.constant dense<0.000000e+00> : vector<256x4xf32>
    %33 = tpu.matmul %30, %32, %cst_13 {dimension_numbers = #tpu.dot_dimension_numbers<[1], [0], [0], [1], [0, 0, 1, 1], [], []>} : vector<256x12xbf16>, vector<12x4xbf16>, vector<256x4xf32> -> vector<256x4xf32>
    %34 = arith.addf %21, %33 : vector<256x4xf32>
    %35 = vector.extract_strided_slice %1 {offsets = [1, 0, 0], sizes = [15, 16, 4], strides = [1, 1, 1]} : vector<16x16x4xf32> to vector<15x16x4xf32>
    %36 = vector.extract_strided_slice %1 {offsets = [14, 0, 0], sizes = [1, 16, 4], strides = [1, 1, 1]} : vector<16x16x4xf32> to vector<1x16x4xf32>
    %37 = tpu.concatenate %35, %36 in 0 : vector<15x16x4xf32>, vector<1x16x4xf32> -> vector<16x16x4xf32>
    %38 = vector.extract_strided_slice %37 {offsets = [0, 1, 0], sizes = [16, 1, 4], strides = [1, 1, 1]} : vector<16x16x4xf32> to vector<16x1x4xf32>
    %39 = vector.extract_strided_slice %37 {offsets = [0, 0, 0], sizes = [16, 15, 4], strides = [1, 1, 1]} : vector<16x16x4xf32> to vector<16x15x4xf32>
    %40 = tpu.concatenate %38, %39 in 1 : vector<16x1x4xf32>, vector<16x15x4xf32> -> vector<16x16x4xf32>
    %41 = vector.extract_strided_slice %37 {offsets = [0, 1, 0], sizes = [16, 15, 4], strides = [1, 1, 1]} : vector<16x16x4xf32> to vector<16x15x4xf32>
    %42 = vector.extract_strided_slice %37 {offsets = [0, 14, 0], sizes = [16, 1, 4], strides = [1, 1, 1]} : vector<16x16x4xf32> to vector<16x1x4xf32>
    %43 = tpu.concatenate %41, %42 in 1 : vector<16x15x4xf32>, vector<16x1x4xf32> -> vector<16x16x4xf32>
    %44 = tpu.concatenate %40, %37, %43 in 2 : vector<16x16x4xf32>, vector<16x16x4xf32>, vector<16x16x4xf32> -> vector<16x16x12xf32>
    %45 = vector.shape_cast %44 : vector<16x16x12xf32> to vector<256x12xf32>
    %46 = arith.truncf %45 : vector<256x12xf32> to vector<256x12xbf16>
    %c0_14 = arith.constant 0 : index
    %c2 = arith.constant 2 : index
    %c0_15 = arith.constant 0 : index
    %c0_16 = arith.constant 0 : index
    %47 = vector.load %arg2[%c0_14, %c2, %c0_15, %c0_16] : memref<2x3x12x4xbf16, #tpu.memory_space<vmem>>, vector<1x1x12x4xbf16>
    %48 = vector.shape_cast %47 : vector<1x1x12x4xbf16> to vector<12x4xbf16>
    %cst_17 = arith.constant dense<0.000000e+00> : vector<256x4xf32>
    %49 = tpu.matmul %46, %48, %cst_17 {dimension_numbers = #tpu.dot_dimension_numbers<[1], [0], [0], [1], [0, 0, 1, 1], [], []>} : vector<256x12xbf16>, vector<12x4xbf16>, vector<256x4xf32> -> vector<256x4xf32>
    %50 = arith.addf %34, %49 : vector<256x4xf32>
    %cst_18 = arith.constant dense<0.000000e+00> : vector<4xf32>
    %51 = vector.multi_reduction <add>, %50, %cst_18 [0] : vector<256x4xf32> to vector<4xf32>
    %52 = vector.shape_cast %51 : vector<4xf32> to vector<1x4xf32>
    %53 = arith.mulf %50, %50 : vector<256x4xf32>
    %cst_19 = arith.constant dense<0.000000e+00> : vector<4xf32>
    %54 = vector.multi_reduction <add>, %53, %cst_19 [0] : vector<256x4xf32> to vector<4xf32>
    %55 = vector.shape_cast %54 : vector<4xf32> to vector<1x4xf32>
    %cst_20 = arith.constant 3.906250e-03 : f32
    %56 = vector.broadcast %cst_20 : f32 to vector<1x4xf32>
    %57 = arith.mulf %52, %56 : vector<1x4xf32>
    %cst_21 = arith.constant 3.906250e-03 : f32
    %58 = vector.broadcast %cst_21 : f32 to vector<1x4xf32>
    %59 = arith.mulf %55, %58 : vector<1x4xf32>
    %60 = arith.mulf %57, %57 : vector<1x4xf32>
    %61 = arith.subf %59, %60 : vector<1x4xf32>
    %cst_22 = arith.constant 9.99999974E-6 : f32
    %62 = vector.broadcast %cst_22 : f32 to vector<1x4xf32>
    %63 = arith.addf %61, %62 : vector<1x4xf32>
    %64 = math.rsqrt %63 : vector<1x4xf32>
    %65 = arith.mulf %64, %3 : vector<1x4xf32>
    %66 = vector.broadcast %57 : vector<1x4xf32> to vector<256x4xf32>
    %67 = arith.subf %50, %66 : vector<256x4xf32>
    %68 = vector.broadcast %65 : vector<1x4xf32> to vector<256x4xf32>
    %69 = arith.mulf %67, %68 : vector<256x4xf32>
    %70 = vector.broadcast %4 : vector<1x4xf32> to vector<256x4xf32>
    %71 = arith.addf %69, %70 : vector<256x4xf32>
    %cst_23 = arith.constant 0.000000e+00 : f32
    %72 = vector.broadcast %cst_23 : f32 to vector<256x4xf32>
    %73 = arith.maximumf %71, %72 : vector<256x4xf32>
    %74 = vector.shape_cast %73 : vector<256x4xf32> to vector<16x16x4xf32>
    %75 = vector.extract_strided_slice %2 {offsets = [2, 0], sizes = [1, 4], strides = [1, 1]} : vector<4x4xf32> to vector<1x4xf32>
    %76 = vector.extract_strided_slice %2 {offsets = [3, 0], sizes = [1, 4], strides = [1, 1]} : vector<4x4xf32> to vector<1x4xf32>
    %cst_24 = arith.constant 0.000000e+00 : f32
    %77 = vector.broadcast %cst_24 : f32 to vector<256x4xf32>
    %78 = vector.extract_strided_slice %74 {offsets = [1, 0, 0], sizes = [1, 16, 4], strides = [1, 1, 1]} : vector<16x16x4xf32> to vector<1x16x4xf32>
    %79 = vector.extract_strided_slice %74 {offsets = [0, 0, 0], sizes = [15, 16, 4], strides = [1, 1, 1]} : vector<16x16x4xf32> to vector<15x16x4xf32>
    %80 = tpu.concatenate %78, %79 in 0 : vector<1x16x4xf32>, vector<15x16x4xf32> -> vector<16x16x4xf32>
    %81 = vector.extract_strided_slice %80 {offsets = [0, 1, 0], sizes = [16, 1, 4], strides = [1, 1, 1]} : vector<16x16x4xf32> to vector<16x1x4xf32>
    %82 = vector.extract_strided_slice %80 {offsets = [0, 0, 0], sizes = [16, 15, 4], strides = [1, 1, 1]} : vector<16x16x4xf32> to vector<16x15x4xf32>
    %83 = tpu.concatenate %81, %82 in 1 : vector<16x1x4xf32>, vector<16x15x4xf32> -> vector<16x16x4xf32>
    %84 = vector.extract_strided_slice %80 {offsets = [0, 1, 0], sizes = [16, 15, 4], strides = [1, 1, 1]} : vector<16x16x4xf32> to vector<16x15x4xf32>
    %85 = vector.extract_strided_slice %80 {offsets = [0, 14, 0], sizes = [16, 1, 4], strides = [1, 1, 1]} : vector<16x16x4xf32> to vector<16x1x4xf32>
    %86 = tpu.concatenate %84, %85 in 1 : vector<16x15x4xf32>, vector<16x1x4xf32> -> vector<16x16x4xf32>
    %87 = tpu.concatenate %83, %80, %86 in 2 : vector<16x16x4xf32>, vector<16x16x4xf32>, vector<16x16x4xf32> -> vector<16x16x12xf32>
    %88 = vector.shape_cast %87 : vector<16x16x12xf32> to vector<256x12xf32>
    %89 = arith.truncf %88 : vector<256x12xf32> to vector<256x12xbf16>
    %c1_25 = arith.constant 1 : index
    %c0_26 = arith.constant 0 : index
    %c0_27 = arith.constant 0 : index
    %c0_28 = arith.constant 0 : index
    %90 = vector.load %arg2[%c1_25, %c0_26, %c0_27, %c0_28] : memref<2x3x12x4xbf16, #tpu.memory_space<vmem>>, vector<1x1x12x4xbf16>
    %91 = vector.shape_cast %90 : vector<1x1x12x4xbf16> to vector<12x4xbf16>
    %cst_29 = arith.constant dense<0.000000e+00> : vector<256x4xf32>
    %92 = tpu.matmul %89, %91, %cst_29 {dimension_numbers = #tpu.dot_dimension_numbers<[1], [0], [0], [1], [0, 0, 1, 1], [], []>} : vector<256x12xbf16>, vector<12x4xbf16>, vector<256x4xf32> -> vector<256x4xf32>
    %93 = arith.addf %77, %92 : vector<256x4xf32>
    %94 = vector.extract_strided_slice %74 {offsets = [0, 1, 0], sizes = [16, 1, 4], strides = [1, 1, 1]} : vector<16x16x4xf32> to vector<16x1x4xf32>
    %95 = vector.extract_strided_slice %74 {offsets = [0, 0, 0], sizes = [16, 15, 4], strides = [1, 1, 1]} : vector<16x16x4xf32> to vector<16x15x4xf32>
    %96 = tpu.concatenate %94, %95 in 1 : vector<16x1x4xf32>, vector<16x15x4xf32> -> vector<16x16x4xf32>
    %97 = vector.extract_strided_slice %74 {offsets = [0, 1, 0], sizes = [16, 15, 4], strides = [1, 1, 1]} : vector<16x16x4xf32> to vector<16x15x4xf32>
    %98 = vector.extract_strided_slice %74 {offsets = [0, 14, 0], sizes = [16, 1, 4], strides = [1, 1, 1]} : vector<16x16x4xf32> to vector<16x1x4xf32>
    %99 = tpu.concatenate %97, %98 in 1 : vector<16x15x4xf32>, vector<16x1x4xf32> -> vector<16x16x4xf32>
    %100 = tpu.concatenate %96, %74, %99 in 2 : vector<16x16x4xf32>, vector<16x16x4xf32>, vector<16x16x4xf32> -> vector<16x16x12xf32>
    %101 = vector.shape_cast %100 : vector<16x16x12xf32> to vector<256x12xf32>
    %102 = arith.truncf %101 : vector<256x12xf32> to vector<256x12xbf16>
    %c1_30 = arith.constant 1 : index
    %c1_31 = arith.constant 1 : index
    %c0_32 = arith.constant 0 : index
    %c0_33 = arith.constant 0 : index
    %103 = vector.load %arg2[%c1_30, %c1_31, %c0_32, %c0_33] : memref<2x3x12x4xbf16, #tpu.memory_space<vmem>>, vector<1x1x12x4xbf16>
    %104 = vector.shape_cast %103 : vector<1x1x12x4xbf16> to vector<12x4xbf16>
    %cst_34 = arith.constant dense<0.000000e+00> : vector<256x4xf32>
    %105 = tpu.matmul %102, %104, %cst_34 {dimension_numbers = #tpu.dot_dimension_numbers<[1], [0], [0], [1], [0, 0, 1, 1], [], []>} : vector<256x12xbf16>, vector<12x4xbf16>, vector<256x4xf32> -> vector<256x4xf32>
    %106 = arith.addf %93, %105 : vector<256x4xf32>
    %107 = vector.extract_strided_slice %74 {offsets = [1, 0, 0], sizes = [15, 16, 4], strides = [1, 1, 1]} : vector<16x16x4xf32> to vector<15x16x4xf32>
    %108 = vector.extract_strided_slice %74 {offsets = [14, 0, 0], sizes = [1, 16, 4], strides = [1, 1, 1]} : vector<16x16x4xf32> to vector<1x16x4xf32>
    %109 = tpu.concatenate %107, %108 in 0 : vector<15x16x4xf32>, vector<1x16x4xf32> -> vector<16x16x4xf32>
    %110 = vector.extract_strided_slice %109 {offsets = [0, 1, 0], sizes = [16, 1, 4], strides = [1, 1, 1]} : vector<16x16x4xf32> to vector<16x1x4xf32>
    %111 = vector.extract_strided_slice %109 {offsets = [0, 0, 0], sizes = [16, 15, 4], strides = [1, 1, 1]} : vector<16x16x4xf32> to vector<16x15x4xf32>
    %112 = tpu.concatenate %110, %111 in 1 : vector<16x1x4xf32>, vector<16x15x4xf32> -> vector<16x16x4xf32>
    %113 = vector.extract_strided_slice %109 {offsets = [0, 1, 0], sizes = [16, 15, 4], strides = [1, 1, 1]} : vector<16x16x4xf32> to vector<16x15x4xf32>
    %114 = vector.extract_strided_slice %109 {offsets = [0, 14, 0], sizes = [16, 1, 4], strides = [1, 1, 1]} : vector<16x16x4xf32> to vector<16x1x4xf32>
    %115 = tpu.concatenate %113, %114 in 1 : vector<16x15x4xf32>, vector<16x1x4xf32> -> vector<16x16x4xf32>
    %116 = tpu.concatenate %112, %109, %115 in 2 : vector<16x16x4xf32>, vector<16x16x4xf32>, vector<16x16x4xf32> -> vector<16x16x12xf32>
    %117 = vector.shape_cast %116 : vector<16x16x12xf32> to vector<256x12xf32>
    %118 = arith.truncf %117 : vector<256x12xf32> to vector<256x12xbf16>
    %c1_35 = arith.constant 1 : index
    %c2_36 = arith.constant 2 : index
    %c0_37 = arith.constant 0 : index
    %c0_38 = arith.constant 0 : index
    %119 = vector.load %arg2[%c1_35, %c2_36, %c0_37, %c0_38] : memref<2x3x12x4xbf16, #tpu.memory_space<vmem>>, vector<1x1x12x4xbf16>
    %120 = vector.shape_cast %119 : vector<1x1x12x4xbf16> to vector<12x4xbf16>
    %cst_39 = arith.constant dense<0.000000e+00> : vector<256x4xf32>
    %121 = tpu.matmul %118, %120, %cst_39 {dimension_numbers = #tpu.dot_dimension_numbers<[1], [0], [0], [1], [0, 0, 1, 1], [], []>} : vector<256x12xbf16>, vector<12x4xbf16>, vector<256x4xf32> -> vector<256x4xf32>
    %122 = arith.addf %106, %121 : vector<256x4xf32>
    %cst_40 = arith.constant dense<0.000000e+00> : vector<4xf32>
    %123 = vector.multi_reduction <add>, %122, %cst_40 [0] : vector<256x4xf32> to vector<4xf32>
    %124 = vector.shape_cast %123 : vector<4xf32> to vector<1x4xf32>
    %125 = arith.mulf %122, %122 : vector<256x4xf32>
    %cst_41 = arith.constant dense<0.000000e+00> : vector<4xf32>
    %126 = vector.multi_reduction <add>, %125, %cst_41 [0] : vector<256x4xf32> to vector<4xf32>
    %127 = vector.shape_cast %126 : vector<4xf32> to vector<1x4xf32>
    %cst_42 = arith.constant 3.906250e-03 : f32
    %128 = vector.broadcast %cst_42 : f32 to vector<1x4xf32>
    %129 = arith.mulf %124, %128 : vector<1x4xf32>
    %cst_43 = arith.constant 3.906250e-03 : f32
    %130 = vector.broadcast %cst_43 : f32 to vector<1x4xf32>
    %131 = arith.mulf %127, %130 : vector<1x4xf32>
    %132 = arith.mulf %129, %129 : vector<1x4xf32>
    %133 = arith.subf %131, %132 : vector<1x4xf32>
    %cst_44 = arith.constant 9.99999974E-6 : f32
    %134 = vector.broadcast %cst_44 : f32 to vector<1x4xf32>
    %135 = arith.addf %133, %134 : vector<1x4xf32>
    %136 = math.rsqrt %135 : vector<1x4xf32>
    %137 = arith.mulf %136, %75 : vector<1x4xf32>
    %138 = vector.broadcast %129 : vector<1x4xf32> to vector<256x4xf32>
    %139 = arith.subf %122, %138 : vector<256x4xf32>
    %140 = vector.broadcast %137 : vector<1x4xf32> to vector<256x4xf32>
    %141 = arith.mulf %139, %140 : vector<256x4xf32>
    %142 = vector.broadcast %76 : vector<1x4xf32> to vector<256x4xf32>
    %143 = arith.addf %141, %142 : vector<256x4xf32>
    %144 = vector.shape_cast %143 : vector<256x4xf32> to vector<16x16x4xf32>
    %145 = arith.addf %144, %1 : vector<16x16x4xf32>
    %c0_45 = arith.constant 0 : index
    %c0_46 = arith.constant 0 : index
    %c0_47 = arith.constant 0 : index
    %c0_48 = arith.constant 0 : index
    %146 = vector.load %arg4[%c0_45, %c0_46, %c0_47, %c0_48] : memref<1x16x16x4xf32, #tpu.memory_space<vmem>>, vector<1x16x16x4xf32>
    %147 = vector.shape_cast %146 : vector<1x16x16x4xf32> to vector<16x16x4xf32>
    %148 = vector.shape_cast %145 : vector<16x16x4xf32> to vector<1x16x16x4xf32>
    tpu.vector_store %arg4[%c0_45, %c0_46, %c0_47, %c0_48], %148 {strides = array<i32>} : memref<1x16x16x4xf32, #tpu.memory_space<vmem>>, vector<1x16x16x4xf32>,
    return
  }
  func.func @transform_0(%arg0: i32) -> (i32, i32, i32, i32) {
    %c0_i32 = arith.constant 0 : i32
    %c0_i32_0 = arith.constant 0 : i32
    %c0_i32_1 = arith.constant 0 : i32
    %c0_i32_2 = arith.constant 0 : i32
    return %arg0, %c0_i32, %c0_i32_0, %c0_i32_1 : i32, i32, i32, i32
  }
  func.func @transform_1(%arg0: i32) -> (i32, i32, i32, i32) {
    %c0_i32 = arith.constant 0 : i32
    %c0_i32_0 = arith.constant 0 : i32
    %c0_i32_1 = arith.constant 0 : i32
    %c0_i32_2 = arith.constant 0 : i32
    %c0_i32_3 = arith.constant 0 : i32
    return %c0_i32, %c0_i32_0, %c0_i32_1, %c0_i32_2 : i32, i32, i32, i32
  }
  func.func @transform_2(%arg0: i32) -> (i32, i32) {
    %c0_i32 = arith.constant 0 : i32
    %c0_i32_0 = arith.constant 0 : i32
    %c0_i32_1 = arith.constant 0 : i32
    return %c0_i32, %c0_i32_0 : i32, i32
  }
  func.func @transform_3(%arg0: i32) -> (i32, i32, i32, i32) {
    %c0_i32 = arith.constant 0 : i32
    %c0_i32_0 = arith.constant 0 : i32
    %c0_i32_1 = arith.constant 0 : i32
    %c0_i32_2 = arith.constant 0 : i32
    return %arg0, %c0_i32, %c0_i32_0, %c0_i32_1 : i32, i32, i32, i32
  }
}

</mosaic_0001>

<bundles_post_ra>
// kernel: residual_block.1
= control target key start
LH: loop header
LB: loop body
LE: loop exit
PB: predicated region body
PF: predicated region fallthrough
CT: control target
= control target key end

     0   :  { %s3293_s12 = smov 0   ;;  %s5874_s0 = inlined_call_operand.vmem [shape: f32[2,16,16,4], index: 0, kind: input, shape index: {}]   ;;  %s5875_s1 = inlined_call_operand.vmem [shape: bf16[2,3,12,4], index: 1, kind: input, shape index: {}]   ;;  %s5876_s2 = inlined_call_operand.vmem [shape: f32[4,4], index: 2, kind: input, shape index: {}]   ;;  %s5877_s3 = inlined_call_operand.vmem [shape: f32[2,16,16,4], index: 3, kind: output, shape index: {}]  }
   0x1 LB: > { %s2745_s13 = sadd.s32 4294967295, %s3269_s12   ;;  %p2749_p0 = scmp.ge.s32.totalorder %s3269_s12, 1  ;;  %s3269_s12 = sphi %s3293_s12, %s13_s12  }
   0x2   : > { %p137_p1 = scmp.lt.s32.totalorder %s3269_s12, 3 }
   0x4   : > { %p138_p2 = pnand %p2749_p0, %p137_p1 }
   0x6   : > { %141 = sbr.rel (%p138_p2) target bundleno = 1313 (0x521), region = 32 }
   0xb   : > { %p161_p3 = scmp.lt.s32.totalorder %s2745_s13, 1  ;;  %vm356_vm0 = vcmask 1046528   ;;  %s3271_s18 = smov 4   ;;  %vm796_vm1 = vcmask 1045504   ;;  %vm265_vm2 = vcmask 1040384   ;;  %vm627_vm3 = vcmask 31744  }
   0xc   : > { %s3272_s19 = smov 8   ;;  %vm658_vm4 = vcmask 64512   ;;  %vm747_vm5 = vcmask 97280  }
   0xd   : > { %s6013_s13 = smov (!%p161_p3, %s2745_s13), 1 }
   0xe   : > { %s2886_s14 = sshll.u32 %s6013_s13, 8 }
   0xf   : > { %s3309_s17 = scalar_lea.vmem %s5874_s0, %s2886_s14  ;;  %s5683_s27 = scalar_lea.vmem %s5877_s3, %s2886_s14 }
  0x10   : > { %v3312_v0 = vld [vmem:[%s3309_s17 + $0x90] sm:$0xff]  ;;  %v3315_v1 = vld [vmem:[%s3309_s17 + $0x98] sm:$0xff]  ;;  %v3318_v2 = vld [vmem:[%s3309_s17 + $0x80] sm:$0xff] }
  0x11   : > { %v2916_v3 = vpack.i.bf16 %v3315_v1, %v3312_v0  ;;  %v3323_v4 = vld [vmem:[%s3309_s17 + $0x88] sm:$0xff]  ;;  %v229_v5 = vrot.slane %v3312_v0, 1  ;;  %v294_v7 = vrot.slane %v3315_v1, 7  ;;  %v375_v8 = vrot.slane %v3315_v1, 1  ;;  %v3335_v12 = vld [vmem:[%s3309_s17 + $0xa0] sm:$0xff]  ;;  %v3348_v16 = vld [vmem:[%s3309_s17 + $0xb0] sm:$0xff] }
  0x12   : > { %v2906_v6 = vpack.i.bf16 %v3323_v4, %v3318_v2  ;;  %v228_v9 = vrot.slane %v3318_v2, 1  ;;  %v291_v10 = vrot.slane %v3323_v4, 7  ;;  %v373_v11 = vrot.slane %v3323_v4, 1  ;;  %v3338_v13 = vld [vmem:[%s3309_s17 + $0xa8] sm:$0xff]  ;;  %v3351_v17 = vld [vmem:[%s3309_s17 + $0xb8] sm:$0xff]  ;;  %v3383_v34 = vld [vmem:[%s3309_s17 + $0xc0] sm:$0xff] }
  0x13   : > { %2917 = vrot.lane.b32.xlu1 %v2916_v3, %s3271_s18  ;;  %v376_v14 = vsel %vm356_vm0, %v229_v5, %v375_v8  ;;  %v426_v15 = vsel %vm356_vm0, %v375_v8, %v294_v7  ;;  %v2926_v20 = vpack.i.bf16 %v3338_v13, %v3335_v12  ;;  %v231_v22 = vrot.slane %v3348_v16, 1  ;;  %v3386_v35 = vld [vmem:[%s3309_s17 + $0xc8] sm:$0xff]  ;;  %v3396_v41 = vld [vmem:[%s3309_s17 + $0xd0] sm:$0xff]  ;;  %v3399_v42 = vld [vmem:[%s3309_s17 + $0xd8] sm:$0xff] }
  0x14   : > { %2907 = vrot.lane.b32.xlu0 %v2906_v6, %s3271_s18  ;;  %v374_v18 = vsel %vm356_vm0, %v228_v9, %v373_v11  ;;  %v425_v19 = vsel %vm356_vm0, %v373_v11, %v291_v10  ;;  %v2921_v21 = vpack.i.bf16 %v426_v15, %v376_v14  ;;  %v300_v23 = vrot.slane %v3351_v17, 7  ;;  %v3408_v45 = vld [vmem:[%s3309_s17 + $0xe0] sm:$0xff]  ;;  %v3411_v46 = vld [vmem:[%s3309_s17 + $0xe8] sm:$0xff]  ;;  %v3440_v61 = vld [vmem:[%s3309_s17 + $0xf0] sm:$0xff] }
  0x15   : > { %v2911_v24 = vpack.i.bf16 %v425_v19, %v374_v18  ;;  %v379_v25 = vrot.slane %v3351_v17, 1  ;;  %2927 = vrot.lane.b32.xlu2 %v2926_v20, %s3271_s18  ;;  %v230_v26 = vrot.slane %v3335_v12, 1  ;;  %v297_v27 = vrot.slane %v3338_v13, 7  ;;  %v3443_v62 = vld [vmem:[%s3309_s17 + $0xf8] sm:$0xff]  ;;  %v3453_v14 = vld [vmem:[%s3309_s17 + $0x10] sm:$0xff]  ;;  %v3465_v20 = vld [vmem:[%s3309_s17 + $0x20] sm:$0xff] }
  0x16   : > { %v377_v28 = vrot.slane %v3338_v13, 1  ;;  %v2936_v37 = vpack.i.bf16 %v3351_v17, %v3348_v16  ;;  %v5894_v38 = vrot.slane %v3383_v34, 1  ;;  %v381_v39 = vrot.slane %v3386_v35, 1  ;;  %v3456_v15 = vld [vmem:[%s3309_s17 + $0x18] sm:$0xff] }
  0x17   : > { %v380_v31 = vsel %vm356_vm0, %v231_v22, %v379_v25  ;;  %v428_v32 = vsel %vm356_vm0, %v379_v25, %v300_v23  ;;  %v5895_v40 = vrot.slane %v3386_v35, 7  ;;  %v2946_v44 = vpack.i.bf16 %v3386_v35, %v3383_v34 }
  0x18   : > { %v378_v29 = vsel %vm356_vm0, %v230_v26, %v377_v28  ;;  %v427_v30 = vsel %vm356_vm0, %v377_v28, %v297_v27  ;;  %v2941_v36 = vpack.i.bf16 %v428_v32, %v380_v31  ;;  %v382_v43 = vsel %vm356_vm0, %v5894_v38, %v381_v39 }
  0x19   : > { %v2931_v33 = vpack.i.bf16 %v427_v30, %v378_v29  ;;  %v429_v47 = vsel %vm356_vm0, %v381_v39, %v5895_v40  ;;  %v233_v48 = vrot.slane %v3396_v41, 1  ;;  %v306_v49 = vrot.slane %v3399_v42, 7 }
  0x1a   : > { %v383_v50 = vrot.slane %v3399_v42, 1  ;;  %v2956_v51 = vpack.i.bf16 %v3399_v42, %v3396_v41  ;;  %v5896_v52 = vrot.slane %v3408_v45, 1  ;;  %v5897_v53 = vrot.slane %v3411_v46, 7 }
  0x1b   : > { %2922 = vrot.lane.b32.xlu1 %v2921_v21, %s3272_s19  ;;  %v385_v54 = vrot.slane %v3411_v46, 1  ;;  %v2951_v55 = vpack.i.bf16 %v429_v47, %v382_v43  ;;  %v2966_v3 = vpack.i.bf16 %v3411_v46, %v3408_v45  ;;  %v5888_v6 = vrot.slane %v3440_v61, 1  ;;  %v3468_v21 = vld [vmem:[%s3309_s17 + $0x28] sm:$0xff] }
  0x1c   : > { %2912 = vrot.lane.b32.xlu0 %v2911_v24, %s3272_s19  ;;  %v384_v56 = vsel %vm356_vm0, %v233_v48, %v383_v50  ;;  %v430_v57 = vsel %vm356_vm0, %v383_v50, %v306_v49  ;;  %v716_v8 = vrot.slane %v3443_v62, 1  ;;  %v5891_v11 = vrot.slane %v3443_v62, 7  ;;  %v3497_v50 = vld [vmem:[%s3309_s17 + $0x30] sm:$0xff] }
  0x1d   : > { %2932 = vrot.lane.b32.xlu2 %v2931_v33, %s3272_s19  ;;  %v386_v58 = vsel %vm356_vm0, %v5896_v52, %v385_v54  ;;  %v431_v59 = vsel %vm356_vm0, %v385_v54, %v5897_v53  ;;  %v2961_v60 = vpack.i.bf16 %v430_v57, %v384_v56  ;;  %v2976_v19 = vpack.i.bf16 %v3443_v62, %v3440_v61 }
  0x1e   : > { %v2971_v63 = vpack.i.bf16 %v431_v59, %v386_v58  ;;  %v717_v18 = vsel %vm356_vm0, %v5888_v6, %v716_v8  ;;  %v720_v24 = vsel %vm356_vm0, %v716_v8, %v5891_v11  ;;  %v220_v25 = vrot.slane %v3453_v14, 1  ;;  %v3510_v59 = vld [vmem:[%s3309_s17 + $0x40] sm:$0xff]  ;;  %v3522_v8 = vld [vmem:[%s3309_s17 + $0x50] sm:$0xff] }
  0x1f   : > { %v267_v28 = vrot.slane %v3456_v15, 7  ;;  %v357_v29 = vrot.slane %v3456_v15, 1  ;;  %v2986_v30 = vpack.i.bf16 %v3456_v15, %v3453_v14  ;;  %v5886_v31 = vrot.slane %v3465_v20, 1  ;;  %v2778_v15 = vld [vmem:[%s5875_s1] sm:$0xf] }
  0x20   : > { %v5887_v32 = vrot.slane %v3468_v21, 7  ;;  %v361_v33 = vrot.slane %v3468_v21, 1  ;;  %v5883_v56 = vrot.slane %v3497_v50, 1 }
  0x21   : > { %v417_v39 = vsel %vm356_vm0, %v357_v29, %v267_v28 }
  0x22   : > { %v362_v43 = vsel %vm356_vm0, %v5886_v31, %v361_v33 }
  0x23   : > { %2942 = vrot.lane.b32.xlu1 %v2941_v36, %s3272_s19  ;;  %v2981_v36 = vpack.i.bf16 %v720_v24, %v717_v18  ;;  %v3525_v18 = vld [vmem:[%s3309_s17 + $0x58] sm:$0xff]  ;;  %v5880_v24 = vrot.slane %v3510_v59, 1 }
  0x24   : > { %2937 = vrot.lane.b32.xlu0 %v2936_v37, %s3271_s18  ;;  %v358_v37 = vsel %vm356_vm0, %v220_v25, %v357_v29 }
  0x25   : > { %2947 = vrot.lane.b32.xlu2 %v2946_v44, %s3271_s18  ;;  %v419_v44 = vsel %vm356_vm0, %v361_v33, %v5887_v32  ;;  %v2991_v47 = vpack.i.bf16 %v417_v39, %v358_v37  ;;  %v5879_v37 = vrot.slane %v3525_v18, 7  ;;  %v367_v39 = vrot.slane %v3525_v18, 1 }
  0x26   : > { %v3001_v54 = vpack.i.bf16 %v419_v44, %v362_v43 }
  0x2b   : > { %2957 = vrot.lane.b32.xlu1 %v2956_v51, %s3271_s18  ;;  %v3500_v51 = vld [vmem:[%s3309_s17 + $0x38] sm:$0xff] }
  0x2c   : > { %2952 = vrot.lane.b32.xlu0 %v2951_v55, %s3272_s19  ;;  %v2996_v55 = vpack.i.bf16 %v3468_v21, %v3465_v20  ;;  %v363_v57 = vrot.slane %v3500_v51, 1  ;;  %v5885_v58 = vrot.slane %v3500_v51, 7 }
  0x2d   : > { %2962 = vrot.lane.b32.xlu2 %v2961_v60, %s3272_s19  ;;  %v3513_v60 = vld [vmem:[%s3309_s17 + $0x48] sm:$0xff] }
  0x2e   : > { %v5882_v29 = vrot.slane %v3513_v60, 7  ;;  %v3016_v33 = vpack.i.bf16 %v3513_v60, %v3510_v59 }
  0x33   : > { %2972 = vrot.lane.b32.xlu1 %v2971_v63, %s3272_s19  ;;  %v364_v63 = vsel %vm356_vm0, %v5883_v56, %v363_v57 }
  0x34   : > { %2967 = vrot.lane.b32.xlu0 %v2966_v3, %s3271_s18  ;;  %v3006_v3 = vpack.i.bf16 %v3500_v51, %v3497_v50 }
  0x35   : > { %2977 = vrot.lane.b32.xlu2 %v2976_v19, %s3271_s18  ;;  %v420_v19 = vsel %vm356_vm0, %v363_v57, %v5885_v58 }
  0x36   : > { %v3011_v43 = vpack.i.bf16 %v420_v19, %v364_v63  ;;  %v3554_v63 = vld [vmem:[%s3309_s17 + $0x60] sm:$0xff] }
  0x3b   : > { %2987 = vrot.lane.b32.xlu1 %v2986_v30, %s3271_s18  ;;  %v365_v30 = vrot.slane %v3513_v60, 1 }
  0x3c   : > { %2982 = vrot.lane.b32.xlu0 %v2981_v36, %s3272_s19  ;;  %v5878_v36 = vrot.slane %v3522_v8, 1 }
  0x3d   : > { %2992 = vrot.lane.b32.xlu2 %v2991_v47, %s3272_s19  ;;  %v366_v44 = vsel %vm356_vm0, %v5880_v24, %v365_v30  ;;  %v421_v47 = vsel %vm356_vm0, %v365_v30, %v5882_v29  ;;  %v3026_v30 = vpack.i.bf16 %v3525_v18, %v3522_v8 }
  0x3e   : > { %v3021_v57 = vpack.i.bf16 %v421_v47, %v366_v44  ;;  %v3570_v44 = vld [vmem:[%s3309_s17 + $0x78] sm:$0xff] }
  0x3f   : > { %v5893_v24 = vrot.slane %v3570_v44, 7 }
  0x43   : > { %3002 = vrot.lane.b32.xlu1 %v3001_v54, %s3272_s19  ;;  %v368_v54 = vsel %vm356_vm0, %v5878_v36, %v367_v39 }
  0x44   : > { %2997 = vrot.lane.b32.xlu0 %v2996_v55, %s3271_s18  ;;  %v422_v55 = vsel %vm356_vm0, %v367_v39, %v5879_v37 }
  0x45   : > { %3007 = vrot.lane.b32.xlu2 %v3006_v3, %s3271_s18  ;;  %v3557_v3 = vld [vmem:[%s3309_s17 + $0x68] sm:$0xff]  ;;  %v3031_v19 = vpack.i.bf16 %v422_v55, %v368_v54 }
  0x46   : > { %v369_v36 = vrot.slane %v3557_v3, 1  ;;  %v5884_v39 = vrot.slane %v3557_v3, 7  ;;  %v3036_v54 = vpack.i.bf16 %v3557_v3, %v3554_v63 }
  0x48   : > { %v423_v55 = vsel %vm356_vm0, %v369_v36, %v5884_v39 }
  0x4b   : > { %3017 = vrot.lane.b32.xlu1 %v3016_v33, %s3271_s18  ;;  %v5881_v33 = vrot.slane %v3554_v63, 1 }
  0x4c   : > { %3012 = vrot.lane.b32.xlu0 %v3011_v43, %s3272_s19  ;;  %v3567_v43 = vld [vmem:[%s3309_s17 + $0x70] sm:$0xff] }
  0x4d   : > { %3022 = vrot.lane.b32.xlu2 %v3021_v57, %s3272_s19  ;;  %v370_v47 = vsel %vm356_vm0, %v5881_v33, %v369_v36  ;;  %v3582_v57 = vld [vmem:[%s3309_s17] sm:$0xff]  ;;  %v5892_v37 = vrot.slane %v3567_v43, 1  ;;  %v3046_v33 = vpack.i.bf16 %v3570_v44, %v3567_v43 }
  0x4e   : > { %v3041_v29 = vpack.i.bf16 %v423_v55, %v370_v47  ;;  %v5889_v56 = vrot.slane %v3582_v57, 1 }
  0x53   : > { %3032 = vrot.lane.b32.xlu1 %v3031_v19, %s3272_s19  ;;  %v3585_v19 = vld [vmem:[%s3309_s17 + $0x8] sm:$0xff] }
  0x54   : > { %3027 = vrot.lane.b32.xlu0 %v3026_v30, %s3271_s18  ;;  %v371_v30 = vrot.slane %v3570_v44, 1  ;;  %v5890_v36 = vrot.slane %v3585_v19, 7  ;;  %v359_v39 = vrot.slane %v3585_v19, 1  ;;  %v3056_v6 = vpack.i.bf16 %v3585_v19, %v3582_v57 }
  0x55   : > { %3037 = vrot.lane.b32.xlu2 %v3036_v54, %s3271_s18 }
  0x56   : > { %v372_v58 = vsel %vm356_vm0, %v5892_v37, %v371_v30  ;;  %v424_v31 = vsel %vm356_vm0, %v371_v30, %v5893_v24  ;;  %v360_v47 = vsel %vm356_vm0, %v5889_v56, %v359_v39  ;;  %v418_v54 = vsel %vm356_vm0, %v359_v39, %v5890_v36 }
  0x57   : > { %v3051_v55 = vpack.i.bf16 %v424_v31, %v372_v58  ;;  %v3061_v32 = vpack.i.bf16 %v418_v54, %v360_v47 }
  0x5b   : > { %3047 = vrot.lane.b32.xlu1 %v3046_v33, %s3271_s18  ;;  %v2889_v33 = vld [vmem:[%s5875_s1 + $0x8] sm:$0x30] }
  0x5c   : > { %3042 = vrot.lane.b32.xlu0 %v3041_v29, %s3272_s19  ;;  %v2758_v29 = vld [vmem:[%s5875_s1 + $0x8] sm:$0xf] }
  0x5d   : > { %3052 = vrot.lane.b32.xlu2 %v3051_v55, %s3272_s19  ;;  %v2759_v39 = vor.u32 %v2889_v33, %v2758_v29 }
  0x5f   : > { %v798_v31 = vsel %vm796_vm1, %v2759_v39, 0  ;;  %v290_v39 = vrot.slane %v3318_v2, 7  ;;  %v293_v2 = vrot.slane %v3312_v0, 7  ;;  %v296_v0 = vrot.slane %v3335_v12, 7 }
  0x60   : > { %2894 = vmatpush.bf16.msra.mxu2 %v798_v31  ;;  %807 = vmatpush.bf16.msra.mxu0 %v798_v31 }
  0x61   : > { %v292_v36 = vsel %vm265_vm2, %v290_v39, %v291_v10 }
  0x63   : > { %3062 = vrot.lane.b32.xlu1 %v3061_v32, %s3272_s19  ;;  %v2890_v32 = vld [vmem:[%s5875_s1 + $0x10] sm:$0x30] }
  0x64   : > { %3057 = vrot.lane.b32.xlu0 %v3056_v6, %s3271_s18  ;;  %v2800_v6 = vld [vmem:[%s5875_s1 + $0x10] sm:$0xf] }
  0x65   : > { %v2801_v30 = vor.u32 %v2890_v32, %v2800_v6  ;;  %v349_v6 = vsel %vm265_vm2, %v228_v9, %v290_v39 }
  0x67   : > { %v995_v47 = vsel %vm796_vm1, %v2801_v30, 0 }
  0x68   : > { %1004 = vmatpush.bf16.msrb.mxu2 %v995_v47 }
  0x6f   : > { %v3622_v58 = vpop.permute.xlu2 %2927 }
  0x77   : > { %v3631_v54 = vpop.permute.xlu2 %2932 }
  0x7f   : > { %v3633_v55 = vpop.permute.xlu2 %2947 }
  0x85   : > { %v2918_v29 = vpop.permute.xlu1 %2917 }
  0x86   : > { %v2908_v33 = vpop.permute.xlu0 %2907 }
  0x87   : > { %v2910_v31 = vunpack.i.h.bf16 %v2908_v33  ;;  %v2909_v56 = vunpack.i.l.bf16 %v2908_v33  ;;  %v3642_v47 = vpop.permute.xlu2 %2962 }
  0x89   : > { %v644_v24 = vsel %vm627_vm3, %v349_v6, %v2909_v56  ;;  %v645_v33 = vsel %vm627_vm3, %v292_v36, %v2910_v31  ;;  %v2919_v56 = vunpack.i.l.bf16 %v2918_v29 }
  0x8d   : > { %v2923_v32 = vpop.permute.xlu1 %2922 }
  0x8e   : > { %v2913_v30 = vpop.permute.xlu0 %2912 }
  0x8f   : > { %v2915_v11 = vunpack.i.h.bf16 %v2913_v30  ;;  %v2914_v37 = vunpack.i.l.bf16 %v2913_v30  ;;  %v2920_v30 = vunpack.i.h.bf16 %v2918_v29  ;;  %v3657_v6 = vpop.permute.xlu2 %2977 }
  0x91   : > { %v675_v38 = vsel %vm658_vm4, %v644_v24, %v2914_v37  ;;  %v676_v4 = vsel %vm658_vm4, %v645_v33, %v2915_v11  ;;  %v295_v11 = vsel %vm265_vm2, %v293_v2, %v294_v7  ;;  %v2925_v24 = vunpack.i.h.bf16 %v2923_v32 }
  0x92   : > { %v3648_v10 = vpack.c.bf16 %v676_v4, %v675_v38  ;;  %v350_v38 = vsel %vm265_vm2, %v229_v5, %v293_v2  ;;  %v2924_v37 = vunpack.i.l.bf16 %v2923_v32  ;;  %v647_v31 = vsel %vm627_vm3, %v295_v11, %v2920_v30 }
  0x93   : > { %v646_v36 = vsel %vm627_vm3, %v350_v38, %v2919_v56  ;;  %v678_v40 = vsel %vm658_vm4, %v647_v31, %v2925_v24  ;;  %v2929_v2 = vunpack.i.l.bf16 %v3622_v58  ;;  %v305_v30 = vrot.slane %v3396_v41, 7 }
  0x94   : > { %2768 = vmatmul.msk.bf16.vlgmr.msra.gmra.mxu2 %vm747_vm5, %v3648_v10  ;;  %v677_v29 = vsel %vm658_vm4, %v646_v36, %v2924_v37  ;;  %v266_v56 = vrot.slane %v3453_v14, 7  ;;  %v2930_v11 = vunpack.i.h.bf16 %v3622_v58  ;;  %v298_v38 = vsel %vm265_vm2, %v296_v0, %v297_v27  ;;  %v2888_v14 = vld [vmem:[%s5875_s1] sm:$0x30] }
  0x95   : > { %v3653_v9 = vpop.permute.xlu1 %2942  ;;  %v3671_v1 = vpack.c.bf16 %v678_v40, %v677_v29  ;;  %v351_v40 = vsel %vm265_vm2, %v230_v26, %v296_v0  ;;  %v2935_v37 = vunpack.i.h.bf16 %v3631_v54  ;;  %v2934_v36 = vunpack.i.l.bf16 %v3631_v54 }
  0x96   : > { %v3655_v39 = vpop.permute.xlu0 %2937  ;;  %v648_v24 = vsel %vm627_vm3, %v351_v40, %v2929_v2  ;;  %v649_v31 = vsel %vm627_vm3, %v298_v38, %v2930_v11  ;;  %v307_v58 = vsel %vm265_vm2, %v305_v30, %v306_v49  ;;  %v268_v12 = vsel %vm265_vm2, %v266_v56, %v267_v28 }
  0x97   : > { %v2993_v7 = vpop.permute.xlu2 %2992  ;;  %v341_v0 = vsel %vm265_vm2, %v220_v25, %v266_v56  ;;  %v354_v42 = vsel %vm265_vm2, %v233_v48, %v305_v30  ;;  %v2965_v25 = vunpack.i.h.bf16 %v3642_v47  ;;  %v679_v28 = vsel %vm658_vm4, %v648_v24, %v2934_v36 }
  0x98   : > { %v2995_v54 = vunpack.i.h.bf16 %v2993_v7  ;;  %v2994_v2 = vunpack.i.l.bf16 %v2993_v7  ;;  %v680_v41 = vsel %vm658_vm4, %v649_v31, %v2935_v37  ;;  %v2964_v7 = vunpack.i.l.bf16 %v3642_v47 }
  0x99   : > { %v3729_v37 = vpack.c.bf16 %v680_v41, %v679_v28  ;;  %v299_v47 = vrot.slane %v3348_v16, 7 }
  0x9d   : > { %v2958_v33 = vpop.permute.xlu1 %2957 }
  0x9e   : > { %v3667_v4 = vpop.permute.xlu0 %2952  ;;  %v2960_v29 = vunpack.i.h.bf16 %v2958_v33  ;;  %v2959_v26 = vunpack.i.l.bf16 %v2958_v33  ;;  %v2779_v33 = vor.u32 %v2888_v14, %v2778_v15 }
  0x9f   : > { %v3700_v13 = vpop.permute.xlu2 %3007 }
  0xa0   : > { %v655_v48 = vsel %vm627_vm3, %v307_v58, %v2960_v29  ;;  %v654_v38 = vsel %vm627_vm3, %v354_v42, %v2959_v26  ;;  %v895_v53 = vsel %vm796_vm1, %v2779_v33, 0  ;;  %v2944_v42 = vunpack.i.l.bf16 %v3653_v9 }
  0xa1   : > { %2895 = vmatpush.bf16.msra.mxu3 %v895_v53  ;;  %904 = vmatpush.bf16.msra.mxu1 %v895_v53  ;;  %v685_v36 = vsel %vm658_vm4, %v654_v38, %v2964_v7  ;;  %v686_v31 = vsel %vm658_vm4, %v655_v48, %v2965_v25  ;;  %v2939_v53 = vunpack.i.l.bf16 %v3655_v39  ;;  %v5929_v25 = vrot.slane %v3408_v45, 1 }
  0xa2   : > { %v3738_v29 = vpack.c.bf16 %v686_v31, %v685_v36  ;;  %v2949_v36 = vunpack.i.l.bf16 %v3633_v55 }
  0xa4   : > { %2769 = vmatmul.msk.bf16.gmra.mxu2 %vm747_vm5, %v3671_v1 }
  0xa5   : > { %v3676_v5 = vpop.permute.xlu1 %2972 }
  0xa6   : > { %v3678_v32 = vpop.permute.xlu0 %2967  ;;  %v2975_v33 = vunpack.i.h.bf16 %v3676_v5 }
  0xa7   : > { %v2970_v15 = vunpack.i.h.bf16 %v3678_v32  ;;  %v2969_v17 = vunpack.i.l.bf16 %v3678_v32  ;;  %v2974_v32 = vunpack.i.l.bf16 %v3676_v5 }
  0xad   : > { %v2988_v27 = vpop.permute.xlu1 %2987 }
  0xae   : > { %v2990_v49 = vunpack.i.h.bf16 %v2988_v27  ;;  %v2989_v11 = vunpack.i.l.bf16 %v2988_v27  ;;  %v3708_v40 = vpop.permute.xlu0 %2982 }
  0xb0   : > { %v628_v30 = vsel %vm627_vm3, %v341_v0, %v2989_v11  ;;  %v629_v56 = vsel %vm627_vm3, %v268_v12, %v2990_v49  ;;  %v3744_v12 = vpop.permute.xlu2 %3022  ;;  %v301_v0 = vsel %vm265_vm2, %v299_v47, %v300_v23  ;;  %v308_v11 = vrot.slane %v3408_v45, 7 }
  0xb1   : > { %v660_v27 = vsel %vm658_vm4, %v629_v56, %v2995_v54  ;;  %v659_v52 = vsel %vm658_vm4, %v628_v30, %v2994_v2  ;;  %v352_v54 = vsel %vm265_vm2, %v231_v22, %v299_v47  ;;  %v2945_v2 = vunpack.i.h.bf16 %v3653_v9 }
  0xb2   : > { %v3727_v24 = vpack.c.bf16 %v660_v27, %v659_v52  ;;  %v2940_v52 = vunpack.i.h.bf16 %v3655_v39  ;;  %v650_v39 = vsel %vm627_vm3, %v352_v54, %v2939_v53  ;;  %v5928_v23 = vrot.slane %v3411_v46, 7 }
  0xb3   : > { %v681_v16 = vsel %vm658_vm4, %v650_v39, %v2944_v42  ;;  %v355_v28 = vsel %vm265_vm2, %v5929_v25, %v308_v11  ;;  %v302_v56 = vrot.slane %v3383_v34, 7  ;;  %v2950_v47 = vunpack.i.h.bf16 %v3633_v55 }
  0xb4   : > { %2770 = vmatmul.msk.bf16.gmra.mxu2 %vm747_vm5, %v3729_v37  ;;  %2780 = vmatmul.msk.bf16.vlgmr.msra.gmra.mxu1 %vm747_vm5, %v3727_v24  ;;  %v651_v49 = vsel %vm627_vm3, %v301_v0, %v2940_v52  ;;  %v310_v9 = vsel %vm265_vm2, %v308_v11, %v5928_v23  ;;  %v656_v46 = vsel %vm627_vm3, %v355_v28, %v2969_v17  ;;  %v5930_v52 = vrot.slane %v3386_v35, 7 }
  0xb5   : > { %v3736_v58 = vpop.permute.xlu1 %3002  ;;  %v682_v22 = vsel %vm658_vm4, %v651_v49, %v2945_v2  ;;  %v657_v30 = vsel %vm627_vm3, %v310_v9, %v2970_v15  ;;  %v687_v45 = vsel %vm658_vm4, %v656_v46, %v2974_v32  ;;  %v5931_v0 = vrot.slane %v3383_v34, 1 }
  0xb6   : > { %v3746_v26 = vpop.permute.xlu0 %2997  ;;  %v3775_v48 = vpack.c.bf16 %v682_v22, %v681_v16  ;;  %v688_v38 = vsel %vm658_vm4, %v657_v30, %v2975_v33  ;;  %v304_v53 = vsel %vm265_vm2, %v302_v56, %v5930_v52  ;;  %v287_v2 = vrot.slane %v3567_v43, 7 }
  0xb7   : > { %v3788_v5 = vpack.c.bf16 %v688_v38, %v687_v45  ;;  %v353_v54 = vsel %vm265_vm2, %v5931_v0, %v302_v56  ;;  %v2955_v42 = vunpack.i.h.bf16 %v3667_v4  ;;  %v2954_v49 = vunpack.i.l.bf16 %v3667_v4 }
  0xb8   : > { %v3777_v7 = vpop.permute.xlu2 %3037  ;;  %v653_v39 = vsel %vm627_vm3, %v304_v53, %v2950_v47  ;;  %v652_v55 = vsel %vm627_vm3, %v353_v54, %v2949_v36  ;;  %v710_v11 = vrot.slane %v3440_v61, 7  ;;  %v2980_v35 = vunpack.i.h.bf16 %v3657_v6 }
  0xb9   : > { %v2979_v17 = vunpack.i.l.bf16 %v3657_v6  ;;  %v5932_v34 = vrot.slane %v3570_v44, 7  ;;  %v5933_v22 = vrot.slane %v3567_v43, 1  ;;  %v683_v28 = vsel %vm658_vm4, %v652_v55, %v2954_v49 }
  0xba   : > { %v684_v33 = vsel %vm658_vm4, %v653_v39, %v2955_v42  ;;  %v5934_v32 = vrot.slane %v3443_v62, 7  ;;  %v5935_v6 = vrot.slane %v3440_v61, 1  ;;  %v2985_v45 = vunpack.i.h.bf16 %v3708_v40 }
  0xbb   : > { %v289_v16 = vsel %vm265_vm2, %v287_v2, %v5932_v34  ;;  %v348_v23 = vsel %vm265_vm2, %v5933_v22, %v287_v2  ;;  %v2984_v38 = vunpack.i.l.bf16 %v3708_v40  ;;  %v3828_v52 = vpack.c.bf16 %v684_v33, %v683_v28 }
  0xbc   : > { %v712_v30 = vsel %vm265_vm2, %v710_v11, %v5934_v32  ;;  %v715_v44 = vsel %vm265_vm2, %v5935_v6, %v710_v11  ;;  %v269_v54 = vrot.slane %v3582_v57, 7  ;;  %v5936_v11 = vrot.slane %v3585_v19, 7 }
  0xbd   : > { %v3761_v14 = vpop.permute.xlu1 %3017  ;;  %v735_v62 = vsel %vm627_vm3, %v712_v30, %v2980_v35  ;;  %v734_v61 = vsel %vm627_vm3, %v715_v44, %v2979_v17  ;;  %v5937_v35 = vrot.slane %v3582_v57, 1  ;;  %v3000_v32 = vunpack.i.h.bf16 %v3746_v26 }
  0xbe   : > { %v3771_v41 = vpop.permute.xlu0 %3012  ;;  %v736_v40 = vsel %vm658_vm4, %v734_v61, %v2984_v38  ;;  %v737_v42 = vsel %vm658_vm4, %v735_v62, %v2985_v45  ;;  %v2999_v57 = vunpack.i.l.bf16 %v3746_v26  ;;  %v5938_v30 = vrot.slane %v3468_v21, 7 }
  0xbf   : > { %v3843_v39 = vpack.c.bf16 %v737_v42, %v736_v40  ;;  %v342_v17 = vsel %vm265_vm2, %v5937_v35, %v269_v54  ;;  %v5939_v44 = vrot.slane %v3465_v20, 1  ;;  %v3004_v45 = vunpack.i.l.bf16 %v3736_v58 }
  0xc0   : > { %v3053_v15 = vpop.permute.xlu2 %3052  ;;  %v3009_v62 = vunpack.i.l.bf16 %v3700_v13  ;;  %v5940_v61 = vrot.slane %v3500_v51, 7  ;;  %v3015_v40 = vunpack.i.h.bf16 %v3771_v41  ;;  %v3014_v42 = vunpack.i.l.bf16 %v3771_v41 }
  0xc1   : > { %v3055_v9 = vunpack.i.h.bf16 %v3053_v15  ;;  %v3054_v25 = vunpack.i.l.bf16 %v3053_v15  ;;  %v271_v15 = vsel %vm265_vm2, %v269_v54, %v5936_v11  ;;  %v278_v11 = vrot.slane %v3510_v59, 7 }
  0xc2   : > { %v3020_v41 = vunpack.i.h.bf16 %v3761_v14  ;;  %v5942_v35 = vrot.slane %v3513_v60, 7 }
  0xc4   : > { %2771 = vmatmul.msk.bf16.gmra.mxu2 %vm747_vm5, %v3775_v48 }
  0xc5   : > { %v3786_v27 = vpop.permute.xlu1 %3032 }
  0xc6   : > { %v3792_v31 = vpop.permute.xlu0 %3027 }
  0xcd   : > { %v3048_v4 = vpop.permute.xlu1 %3047 }
  0xce   : > { %v3050_v46 = vunpack.i.h.bf16 %v3048_v4  ;;  %v3049_v56 = vunpack.i.l.bf16 %v3048_v4  ;;  %v3822_v43 = vpop.permute.xlu0 %3042 }
  0xd0   : > { %v643_v47 = vsel %vm627_vm3, %v289_v16, %v3050_v46  ;;  %v642_v36 = vsel %vm627_vm3, %v348_v23, %v3049_v56  ;;  %v3005_v56 = vunpack.i.h.bf16 %v3736_v58  ;;  %v3010_v58 = vunpack.i.h.bf16 %v3700_v13 }
  0xd1   : > { %v673_v53 = vsel %vm658_vm4, %v642_v36, %v3054_v25  ;;  %v674_v0 = vsel %vm658_vm4, %v643_v47, %v3055_v9  ;;  %v272_v25 = vrot.slane %v3465_v20, 7  ;;  %v275_v36 = vrot.slane %v3497_v50, 7 }
  0xd2   : > { %v3835_v2 = vpack.c.bf16 %v674_v0, %v673_v53  ;;  %v5941_v0 = vrot.slane %v3497_v50, 1 }
  0xd3   : > { %v274_v6 = vsel %vm265_vm2, %v272_v25, %v5938_v30  ;;  %v343_v46 = vsel %vm265_vm2, %v5939_v44, %v272_v25  ;;  %v277_v53 = vsel %vm265_vm2, %v275_v36, %v5940_v61  ;;  %v281_v25 = vrot.slane %v3522_v8, 7 }
  0xd4   : > { %2772 = vmatmul.msk.bf16.gmra.mxu2 %vm747_vm5, %v3828_v52  ;;  %2788 = vmatmul.msk.bf16.vlgmr.msra.gmra.mxu3 %vm747_vm5, %v3835_v2  ;;  %v632_v38 = vsel %vm627_vm3, %v343_v46, %v2999_v57  ;;  %v633_v26 = vsel %vm627_vm3, %v274_v6, %v3000_v32  ;;  %v344_v54 = vsel %vm265_vm2, %v5941_v0, %v275_v36  ;;  %v5945_v32 = vrot.slane %v3522_v8, 1 }
  0xd5   : > { %v3063_v49 = vpop.permute.xlu1 %3062  ;;  %v663_v21 = vsel %vm658_vm4, %v632_v38, %v3004_v45  ;;  %v664_v20 = vsel %vm658_vm4, %v633_v26, %v3005_v56  ;;  %v3035_v30 = vunpack.i.h.bf16 %v3786_v27  ;;  %v3034_v6 = vunpack.i.l.bf16 %v3786_v27 }
  0xd6   : > { %v3058_v55 = vpop.permute.xlu0 %3057  ;;  %v3065_v34 = vunpack.i.h.bf16 %v3063_v49  ;;  %v3064_v16 = vunpack.i.l.bf16 %v3063_v49  ;;  %v3876_v47 = vpack.c.bf16 %v664_v20, %v663_v21  ;;  %v635_v49 = vsel %vm627_vm3, %v277_v53, %v3010_v58 }
  0xd7   : > { %v3060_v22 = vunpack.i.h.bf16 %v3058_v55  ;;  %v3059_v23 = vunpack.i.l.bf16 %v3058_v55  ;;  %v634_v55 = vsel %vm627_vm3, %v344_v54, %v3009_v62  ;;  %v666_v50 = vsel %vm658_vm4, %v635_v49, %v3015_v40 }
  0xd8   : > { %v665_v51 = vsel %vm658_vm4, %v634_v55, %v3014_v42  ;;  %v346_v57 = vsel %vm265_vm2, %v5945_v32, %v281_v25  ;;  %v284_v45 = vrot.slane %v3554_v63, 7  ;;  %v3040_v38 = vunpack.i.h.bf16 %v3777_v7 }
  0xd9   : > { %v630_v4 = vsel %vm627_vm3, %v342_v17, %v3059_v23  ;;  %v631_v9 = vsel %vm627_vm3, %v271_v15, %v3060_v22  ;;  %v692_v13 = vpack.c.bf16 %v666_v50, %v665_v51  ;;  %v3019_v15 = vunpack.i.l.bf16 %v3761_v14 }
  0xda   : > { %v661_v28 = vsel %vm658_vm4, %v630_v4, %v3064_v16  ;;  %v662_v19 = vsel %vm658_vm4, %v631_v9, %v3065_v34  ;;  %v280_v17 = vsel %vm265_vm2, %v278_v11, %v5942_v35  ;;  %v5943_v34 = vrot.slane %v3510_v59, 1 }
  0xdb   : > { %v690_v33 = vpack.c.bf16 %v662_v19, %v661_v28  ;;  %v3025_v22 = vunpack.i.h.bf16 %v3744_v12  ;;  %v3024_v23 = vunpack.i.l.bf16 %v3744_v12  ;;  %v637_v4 = vsel %vm627_vm3, %v280_v17, %v3020_v41 }
  0xdc   : > { %v345_v16 = vsel %vm265_vm2, %v5943_v34, %v278_v11  ;;  %v3030_v12 = vunpack.i.h.bf16 %v3792_v31  ;;  %v3029_v28 = vunpack.i.l.bf16 %v3792_v31  ;;  %v5944_v19 = vrot.slane %v3525_v18, 7 }
  0xdd   : > { %2760 = vmatmul.msk.bf16.vlgmr.msra.gmra.mxu0 %vm747_vm5, %v690_v33  ;;  %2781 = vmatmul.msk.bf16.gmra.mxu1 %vm747_vm5, %v690_v33  ;;  %v636_v9 = vsel %vm627_vm3, %v345_v16, %v3019_v15  ;;  %v668_v59 = vsel %vm658_vm4, %v637_v4, %v3025_v22  ;;  %v5946_v26 = vrot.slane %v3557_v3, 7  ;;  %v5947_v20 = vrot.slane %v3554_v63, 1 }
  0xde   : > { %v667_v60 = vsel %vm658_vm4, %v636_v9, %v3024_v23  ;;  %v283_v33 = vsel %vm265_vm2, %v281_v25, %v5944_v19  ;;  %v638_v46 = vsel %vm627_vm3, %v346_v57, %v3029_v28  ;;  %v3045_v58 = vunpack.i.h.bf16 %v3822_v43 }
  0xdf   : > { %v693_v14 = vpack.c.bf16 %v668_v59, %v667_v60  ;;  %v639_v44 = vsel %vm627_vm3, %v283_v33, %v3030_v12  ;;  %v669_v31 = vsel %vm658_vm4, %v638_v46, %v3034_v6  ;;  %v286_v21 = vsel %vm265_vm2, %v284_v45, %v5946_v26 }
  0xe0   : > { %v670_v8 = vsel %vm658_vm4, %v639_v44, %v3035_v30  ;;  %v347_v36 = vsel %vm265_vm2, %v5947_v20, %v284_v45  ;;  %v3044_v62 = vunpack.i.l.bf16 %v3822_v43  ;;  %v641_v61 = vsel %vm627_vm3, %v286_v21, %v3040_v38 }
  0xe1   : > { %v694_v56 = vpack.c.bf16 %v670_v8, %v669_v31  ;;  %v672_v63 = vsel %vm658_vm4, %v641_v61, %v3045_v58 }
  0xe4   : > { %2773 = vmatmul.msk.bf16.gmra.mxu2 %vm747_vm5, %v3738_v29  ;;  %2789 = vmatmul.msk.bf16.gmra.mxu3 %vm747_vm5, %v3648_v10 }
  0xed   : > { %2761 = vmatmul.msk.bf16.gmra.mxu0 %vm747_vm5, %v3727_v24  ;;  %2782 = vmatmul.msk.bf16.gmra.mxu1 %vm747_vm5, %v3727_v24 }
  0xf4   : > { %2774 = vmatmul.msk.bf16.gmra.mxu2 %vm747_vm5, %v3788_v5  ;;  %2790 = vmatmul.msk.bf16.gmra.mxu3 %vm747_vm5, %v3671_v1 }
  0xfd   : > { %2762 = vmatmul.msk.bf16.gmra.mxu0 %vm747_vm5, %v3876_v47  ;;  %2783 = vmatmul.msk.bf16.gmra.mxu1 %vm747_vm5, %v3876_v47 }
 0x104   : > { %2775 = vmatmul.msk.bf16.gmra.mxu2 %vm747_vm5, %v3843_v39  ;;  %2791 = vmatmul.msk.bf16.gmra.mxu3 %vm747_vm5, %v3729_v37 }
 0x10d   : > { %2763 = vmatmul.msk.bf16.gmra.mxu0 %vm747_vm5, %v692_v13  ;;  %2784 = vmatmul.msk.bf16.gmra.mxu1 %vm747_vm5, %v692_v13 }
 0x114   : > { %2802 = vmatmul.msk.bf16.vlgmr.msrb.gmra.mxu2 %vm747_vm5, %v3727_v24  ;;  %2792 = vmatmul.msk.bf16.gmra.mxu3 %vm747_vm5, %v3775_v48  ;;  %v3039_v24 = vunpack.i.l.bf16 %v3777_v7 }
 0x116   : > { %v640_v53 = vsel %vm627_vm3, %v347_v36, %v3039_v24 }
 0x117   : > { %v849_v18 = vpop.f32.mrf.mxu2  ;;  %v671_v7 = vsel %vm658_vm4, %v640_v53, %v3044_v62 }
 0x118   : > { %v695_v0 = vpack.c.bf16 %v672_v63, %v671_v7 }
 0x11d   : > { %2764 = vmatmul.msk.bf16.gmra.mxu0 %vm747_vm5, %v693_v14  ;;  %2785 = vmatmul.msk.bf16.gmra.mxu1 %vm747_vm5, %v693_v14 }
 0x11f   : > { %v3948_v27 = vpop.f32.mrf.mxu2 }
 0x124   : > { %2803 = vmatmul.msk.bf16.gmra.mxu2 %vm747_vm5, %v3876_v47  ;;  %2793 = vmatmul.msk.bf16.gmra.mxu3 %vm747_vm5, %v3828_v52 }
 0x127   : > { %v854_v3 = vpop.f32.mrf.mxu2 }
 0x12d   : > { %2765 = vmatmul.msk.bf16.gmra.mxu0 %vm747_vm5, %v694_v56  ;;  %2786 = vmatmul.msk.bf16.gmra.mxu1 %vm747_vm5, %v694_v56 }
 0x12f   : > { %v3970_v43 = vpop.f32.mrf.mxu2 }
 0x131   : > { %v906_v49 = vpop.f32.mrf.mxu1 }
 0x134   : > { %2804 = vmatmul.msk.bf16.gmra.mxu2 %vm747_vm5, %v692_v13  ;;  %2794 = vmatmul.msk.bf16.gmra.mxu3 %vm747_vm5, %v3738_v29 }
 0x137   : > { %v859_v47 = vpop.f32.mrf.mxu2 }
 0x139   : > { %v3993_v41 = vpop.f32.mrf.mxu1 }
 0x13d   : > { %2766 = vmatmul.msk.bf16.gmra.mxu0 %vm747_vm5, %v695_v0  ;;  %2787 = vmatmul.msk.bf16.gmra.mxu1 %vm747_vm5, %v695_v0 }
 0x13f   : > { %v3977_v54 = vpop.f32.mrf.mxu2 }
 0x144   : > { %2805 = vmatmul.msk.bf16.gmra.mxu2 %vm747_vm5, %v693_v14  ;;  %2795 = vmatmul.msk.bf16.gmra.mxu3 %vm747_vm5, %v3788_v5 }
 0x147   : > { %v3982_v40 = vpop.f32.mrf.mxu2 }
 0x14d   : > { %2767 = vmatmul.msk.bf16.gmra.mxu0 %vm747_vm5, %v3835_v2 }
 0x14f   : > { %v3986_v42 = vpop.f32.mrf.mxu2 }
 0x154   : > { %2806 = vmatmul.msk.bf16.gmra.mxu2 %vm747_vm5, %v694_v56 }
 0x157   : > { %v3989_v55 = vpop.f32.mrf.mxu2  ;;  %v946_v51 = vpop.f32.mrf.mxu3 }
 0x158   : > { %v3991_v50 = vadd.f32 %v946_v51, %v849_v18 }
 0x15a   : > { %v809_v13 = vpop.f32.mrf.mxu0  ;;  %v911_v34 = vpop.f32.mrf.mxu1 }
 0x15b   : > { %v907_v11 = vadd.f32 %v906_v49, %v809_v13 }
 0x15f   : > { %v3995_v15 = vpop.f32.mrf.mxu2  ;;  %v3997_v35 = vpop.f32.mrf.mxu3 }
 0x160   : > { %v949_v13 = vadd.f32 %v3997_v35, %v3948_v27 }
 0x162   : > { %v3999_v17 = vpop.f32.mrf.mxu0  ;;  %v4010_v14 = vpop.f32.mrf.mxu1 }
 0x164   : > { %2807 = vmatmul.msk.bf16.gmra.mxu2 %vm747_vm5, %v695_v0 }
 0x167   : > { %v4002_v16 = vpop.f32.mrf.mxu2  ;;  %v951_v22 = vpop.f32.mrf.mxu3 }
 0x168   : > { %v4004_v23 = vadd.f32 %v951_v22, %v854_v3 }
 0x16a   : > { %v814_v4 = vpop.f32.mrf.mxu0  ;;  %v916_v32 = vpop.f32.mrf.mxu1 }
 0x16b   : > { %v912_v9 = vadd.f32 %v911_v34, %v814_v4 }
 0x16f   : > { %v4006_v60 = vpop.f32.mrf.mxu2  ;;  %v4008_v59 = vpop.f32.mrf.mxu3 }
 0x172   : > { %v4012_v25 = vpop.f32.mrf.mxu0  ;;  %v918_v20 = vpop.f32.mrf.mxu1 }
 0x174   : > { %2808 = vmatmul.msk.bf16.gmra.mxu2 %vm747_vm5, %v3835_v2 }
 0x177   : > { %v4016_v12 = vpop.f32.mrf.mxu2  ;;  %v956_v28 = vpop.f32.mrf.mxu3 }
 0x178   : > { %v4018_v19 = vadd.f32 %v956_v28, %v859_v47 }
 0x17a   : > { %v819_v33 = vpop.f32.mrf.mxu0 }
 0x17b   : > { %v917_v57 = vadd.f32 %v916_v32, %v819_v33 }
 0x17f   : > { %v4020_v30 = vpop.f32.mrf.mxu2 }
 0x180   : > { %5948 = vst [vmem:[#allocation2_spill] sm:$0xff] %v4020_v30 }
 0x182   : > { %v821_v21 = vpop.f32.mrf.mxu0 }
 0x184   : > { %2809 = vmatmul.msk.bf16.gmra.mxu2 %vm747_vm5, %v3648_v10 }
 0x187   : > { %v4024_v6 = vpop.f32.mrf.mxu2 }
 0x188   : > { %5949 = vst [vmem:[#allocation3_spill] sm:$0xff] %v4024_v6 }
 0x18a   : > { %v824_v58 = vpop.f32.mrf.mxu0 }
 0x18f   : > { %v4026_v44 = vpop.f32.mrf.mxu2 }
 0x190   : > { %5950 = vst [vmem:[#allocation4_spill] sm:$0xff] %v4026_v44 }
 0x192   : > { %v826_v61 = vpop.f32.mrf.mxu0 }
 0x194   : > { %2810 = vmatmul.msk.bf16.gmra.mxu2 %vm747_vm5, %v3671_v1 }
 0x197   : > { %v1006_v2 = vpop.f32.mrf.mxu2 }
 0x198   : > { %v4030_v46 = vadd.f32 %v1006_v2, %v907_v11 }
 0x19a   : > { %5951 = vst [vmem:[#allocation5_spill] sm:$0xff] %v4030_v46  ;;  %v829_v7 = vpop.f32.mrf.mxu0 }
 0x19f   : > { %v1008_v18 = vpop.f32.mrf.mxu2 }
 0x1a2   : > { %v831_v47 = vpop.f32.mrf.mxu0 }
 0x1a4   : > { %2811 = vmatmul.msk.bf16.gmra.mxu2 %vm747_vm5, %v3729_v37 }
 0x1a7   : > { %v1011_v31 = vpop.f32.mrf.mxu2 }
 0x1a8   : > { %v4034_v8 = vadd.f32 %v1011_v31, %v912_v9 }
 0x1aa   : > { %5952 = vst [vmem:[#allocation6_spill] sm:$0xff] %v4034_v8  ;;  %v834_v34 = vpop.f32.mrf.mxu0 }
 0x1af   : > { %v1013_v56 = vpop.f32.mrf.mxu2 }
 0x1b2   : > { %v4084_v33 = vpop.f32.mrf.mxu0 }
 0x1b4   : > { %2812 = vmatmul.msk.bf16.gmra.mxu2 %vm747_vm5, %v3775_v48 }
 0x1b7   : > { %v1016_v10 = vpop.f32.mrf.mxu2 }
 0x1b8   : > { %v4038_v45 = vadd.f32 %v1016_v10, %v917_v57 }
 0x1ba   : > { %v4092_v35 = vpop.f32.mrf.mxu0 }
 0x1bf   : > { %v4040_v38 = vpop.f32.mrf.mxu2 }
 0x1c4   : > { %2813 = vmatmul.msk.bf16.gmra.mxu2 %vm747_vm5, %v3828_v52 }
 0x1c7   : > { %v4044_v1 = vpop.f32.mrf.mxu2 }
 0x1cf   : > { %v4046_v24 = vpop.f32.mrf.mxu2 }
 0x1d4   : > { %2814 = vmatmul.msk.bf16.gmra.mxu2 %vm747_vm5, %v3738_v29  ;;  %v921_v29 = vpop.f32.mrf.mxu1 }
 0x1d7   : > { %v4050_v37 = vpop.f32.mrf.mxu2 }
 0x1dc   : > { %v923_v53 = vpop.f32.mrf.mxu1 }
 0x1dd   : > { %v924_v6 = vadd.f32 %v923_v53, %v826_v61  ;;  %v1125_v61 = vsel %vm627_vm3, %v4038_v45, 0.0 }
 0x1df   : > { %v4052_v26 = vpop.f32.mrf.mxu2 }
 0x1e4   : > { %2815 = vmatmul.msk.bf16.gmra.mxu2 %vm747_vm5, %v3788_v5  ;;  %v926_v63 = vpop.f32.mrf.mxu1 }
 0x1e7   : > { %v4056_v48 = vpop.f32.mrf.mxu2 }
 0x1ec   : > { %v928_v49 = vpop.f32.mrf.mxu1 }
 0x1ef   : > { %v4058_v36 = vpop.f32.mrf.mxu2 }
 0x1f4   : > { %2816 = vmatmul.msk.bf16.gmra.mxu2 %vm747_vm5, %v3843_v39  ;;  %v931_v22 = vpop.f32.mrf.mxu1 }
 0x1f7   : > { %v4062_v52 = vpop.f32.mrf.mxu2 }
 0x1fc   : > { %v933_v32 = vpop.f32.mrf.mxu1 }
 0x1ff   : > { %v4064_v62 = vpop.f32.mrf.mxu2 }
 0x204   : > { %2817 = vmatmul.msk.bf16.gmra.mxu2 %vm747_vm5, %v3788_v5  ;;  %v4079_v5 = vpop.f32.mrf.mxu3  ;;  %v4094_v31 = vpop.f32.mrf.mxu1 }
 0x207   : > { %v4068_v3 = vpop.f32.mrf.mxu2 }
 0x20c   : > { %v4090_v27 = vpop.f32.mrf.mxu3 }
 0x20f   : > { %v4070_v0 = vpop.f32.mrf.mxu2 }
 0x217   : > { %v1046_v39 = vpop.f32.mrf.mxu2 }
 0x218   : > { %v4073_v51 = vadd.f32 %v1046_v39, %v3991_v50  ;;  %v954_v50 = vadd.f32 %v4008_v59, %v3970_v43  ;;  %v914_v43 = vadd.f32 %v4010_v14, %v4012_v25  ;;  %v4107_v59 = vpop.f32.mrf.mxu0  ;;  %v1189_v14 = vmul.f32 %v4034_v8, %v4034_v8 }
 0x219   : > { %v1118_v25 = vsel %vm627_vm3, %v4030_v46, 0.0 }
 0x21f   : > { %v1048_v11 = vpop.f32.mrf.mxu2 }
 0x220   : > { %v4077_v4 = vadd.f32 %v1048_v11, %v949_v13  ;;  %v4101_v13 = vpop.f32.mrf.mxu3 }
 0x227   : > { %v1051_v9 = vpop.f32.mrf.mxu2 }
 0x228   : > { %v4082_v28 = vadd.f32 %v1051_v9, %v4004_v23  ;;  %v909_v23 = vadd.f32 %v3993_v41, %v3999_v17  ;;  %v4109_v9 = vpop.f32.mrf.mxu1  ;;  %v1187_v41 = vmul.f32 %v4030_v46, %v4030_v46  ;;  %v919_v17 = vadd.f32 %v918_v20, %v821_v21 }
 0x229   : > { %v1222_v46 = vsel %vm627_vm3, %v1189_v14, 0.0  ;;  %v844_v14 = vpop.f32.mrf.mxu0 }
 0x22a   : > { %v4103_v11 = vadd.f32 %v1008_v18, %v909_v23  ;;  %v4131_v21 = vadd.f32 %v4040_v38, %v919_v17  ;;  %v1219_v20 = vsel %vm627_vm3, %v1187_v41, 0.0  ;;  %v927_v17 = vadd.f32 %v926_v63, %v829_v7 }
 0x22c   : > { %5953 = vst [vmem:[#allocation7_spill] sm:$0xff] %v4103_v11  ;;  %v1119_v18 = vsel %vm627_vm3, %v4103_v11, 0.0  ;;  %v1192_v53 = vmul.f32 %v4131_v21, %v4131_v21  ;;  %v1127_v7 = vsel %vm627_vm3, %v4131_v21, 0.0 }
 0x22d   : > { %v1120_v44 = vadd.f32 %v1119_v18, %v1118_v25  ;;  %v4152_v18 = vadd.f32 %v4046_v24, %v924_v6  ;;  %v932_v6 = vadd.f32 %v931_v22, %v834_v34 }
 0x22e   : > { %v1228_v24 = vsel %vm627_vm3, %v1192_v53, 0.0 }
 0x22f   : > { %v1053_v57 = vpop.f32.mrf.mxu2  ;;  %v1131_v34 = vsel %vm627_vm3, %v4152_v18, 0.0 }
 0x230   : > { %v4088_v2 = vadd.f32 %v1053_v57, %v954_v50  ;;  %v4115_v57 = vadd.f32 %v1013_v56, %v914_v43  ;;  %v1121_v56 = vsel %vm627_vm3, %v4034_v8, 0.0  ;;  %v941_v25 = vpop.f32.mrf.mxu1 }
 0x231   : > { %v1122_v38 = vadd.f32 %v1121_v56, %v1120_v44  ;;  %v4160_v56 = vadd.f32 %v4050_v37, %v927_v17 }
 0x232   : > { %v1190_v43 = vmul.f32 %v4115_v57, %v4115_v57 }
 0x233   : > { %v1195_v22 = vmul.f32 %v4160_v56, %v4160_v56 }
 0x234   : > { %v1224_v41 = vsel %vm627_vm3, %v1190_v43, 0.0 }
 0x237   : > { %v1056_v10 = vpop.f32.mrf.mxu2 }
 0x238   : > { %v4097_v39 = vadd.f32 %v1056_v10, %v4018_v19  ;;  %v1188_v19 = vmul.f32 %v4103_v11, %v4103_v11  ;;  %v922_v10 = vadd.f32 %v921_v29, %v824_v58  ;;  %v4134_v11 = vpop.f32.mrf.mxu3  ;;  %v1123_v58 = vsel %vm627_vm3, %v4115_v57, 0.0 }
 0x239   : > { %v1191_v29 = vmul.f32 %v4038_v45, %v4038_v45 }
 0x23a   : > { %v1220_v23 = vsel %vm627_vm3, %v1188_v19, 0.0  ;;  %v4142_v19 = vadd.f32 %v4044_v1, %v922_v10  ;;  %v1124_v10 = vadd.f32 %v1123_v58, %v1122_v38  ;;  %v4177_v38 = vadd.f32 %v4056_v48, %v932_v6 }
 0x23b   : > { %v1221_v8 = vadd.f32 %v1220_v23, %v1219_v20  ;;  %v929_v23 = vadd.f32 %v928_v49, %v831_v47  ;;  %v1226_v44 = vsel %vm627_vm3, %v1191_v29, 0.0  ;;  %v934_v29 = vadd.f32 %v933_v32, %v4084_v33 }
 0x23c   : > { %v1193_v63 = vmul.f32 %v4142_v19, %v4142_v19  ;;  %v1126_v20 = vadd.f32 %v1125_v61, %v1124_v10  ;;  %v937_v61 = vadd.f32 %v4094_v31, %v4092_v35  ;;  %v1133_v32 = vsel %vm627_vm3, %v4160_v56, 0.0 }
 0x23d   : > { %v1223_v1 = vadd.f32 %v1222_v46, %v1221_v8  ;;  %v1129_v46 = vsel %vm627_vm3, %v4142_v19, 0.0  ;;  %v1194_v8 = vmul.f32 %v4152_v18, %v4152_v18  ;;  %v4168_v47 = vadd.f32 %v4052_v26, %v929_v23 }
 0x23e   : > { %v1128_v58 = vadd.f32 %v1127_v7, %v1126_v20  ;;  %v1230_v37 = vsel %vm627_vm3, %v1193_v63, 0.0  ;;  %v4191_v48 = vadd.f32 %v4058_v36, %v934_v29  ;;  %v1234_v35 = vsel %vm627_vm3, %v1195_v22, 0.0  ;;  %v846_v7 = vpop.f32.mrf.mxu0  ;;  %v943_v63 = vpop.f32.mrf.mxu1 }
 0x23f   : > { %v4111_v50 = vpop.f32.mrf.mxu2  ;;  %v1225_v43 = vadd.f32 %v1224_v41, %v1223_v1  ;;  %v1232_v33 = vsel %vm627_vm3, %v1194_v8, 0.0  ;;  %v1196_v1 = vmul.f32 %v4168_v47, %v4168_v47  ;;  %v1135_v31 = vsel %vm627_vm3, %v4168_v47, 0.0 }
 0x240   : > { %v4179_v17 = vpop.f32.mrf.mxu3  ;;  %v1130_v26 = vadd.f32 %v1129_v46, %v1128_v58  ;;  %v4201_v20 = vadd.f32 %v4062_v52, %v937_v61  ;;  %v944_v29 = vadd.f32 %v943_v63, %v846_v7 }
 0x241   : > { %v1227_v49 = vadd.f32 %v1226_v44, %v1225_v43  ;;  %v939_v44 = vadd.f32 %v4109_v9, %v4107_v59  ;;  %v1197_v43 = vmul.f32 %v4177_v38, %v4177_v38  ;;  %v1236_v46 = vsel %vm627_vm3, %v1196_v1, 0.0 }
 0x242   : > { %v1132_v23 = vadd.f32 %v1131_v34, %v1130_v26  ;;  %v1137_v59 = vsel %vm627_vm3, %v4177_v38, 0.0  ;;  %v1198_v9 = vmul.f32 %v4191_v48, %v4191_v48  ;;  %v1141_v26 = vsel %vm627_vm3, %v4201_v20, 0.0 }
 0x243   : > { %v1229_v41 = vadd.f32 %v1228_v24, %v1227_v49  ;;  %v942_v24 = vadd.f32 %v941_v25, %v844_v14  ;;  %v4209_v8 = vadd.f32 %v4064_v62, %v939_v44  ;;  %v1238_v52 = vsel %vm627_vm3, %v1197_v43, 0.0 }
 0x244   : > { %v1134_v6 = vadd.f32 %v1133_v32, %v1132_v23  ;;  %v1199_v14 = vmul.f32 %v4201_v20, %v4201_v20  ;;  %v1240_v62 = vsel %vm627_vm3, %v1198_v9, 0.0 }
 0x245   : > { %v1231_v10 = vadd.f32 %v1230_v37, %v1229_v41  ;;  %v1139_v37 = vsel %vm627_vm3, %v4191_v48, 0.0  ;;  %v4217_v25 = vadd.f32 %v4068_v3, %v942_v24  ;;  %v1200_v61 = vmul.f32 %v4209_v8, %v4209_v8 }
 0x246   : > { %v1136_v58 = vadd.f32 %v1135_v31, %v1134_v6  ;;  %v1242_v3 = vsel %vm627_vm3, %v1199_v14, 0.0  ;;  %v1143_v23 = vsel %vm627_vm3, %v4209_v8, 0.0 }
 0x247   : > { %v4144_v30 = vpop.f32.mrf.mxu2  ;;  %v1233_v36 = vadd.f32 %v1232_v33, %v1231_v10  ;;  %v4225_v33 = vadd.f32 %v4070_v0, %v944_v29  ;;  %v1201_v44 = vmul.f32 %v4217_v25, %v4217_v25  ;;  %v1244_v7 = vsel %vm627_vm3, %v1200_v61, 0.0 }
 0x248   : > { %v1138_v22 = vadd.f32 %v1137_v59, %v1136_v58  ;;  %v971_v32 = vpop.f32.mrf.mxu3  ;;  %v1145_v63 = vsel %vm627_vm3, %v4217_v25, 0.0  ;;  %v1149_v29 = vsel %vm627_vm3, %v4073_v51, 0.0  ;;  %v962_v61 = vadd.f32 %v4090_v27, %v3982_v40 }
 0x249   : > { %v1235_v49 = vadd.f32 %v1234_v35, %v1233_v36  ;;  %v1202_v0 = vmul.f32 %v4225_v33, %v4225_v33  ;;  %v1246_v6 = vsel %vm627_vm3, %v1201_v44, 0.0  ;;  %v1147_v24 = vsel %vm627_vm3, %v4225_v33, 0.0 }
 0x24a   : > { %v1140_v10 = vadd.f32 %v1139_v37, %v1138_v22  ;;  %v1153_v44 = vsel %vm627_vm3, %v4082_v28, 0.0  ;;  %v1155_v27 = vsel %vm627_vm3, %v4088_v2, 0.0 }
 0x24b   : > { %v1237_v34 = vadd.f32 %v1236_v46, %v1235_v49  ;;  %v1203_v46 = vmul.f32 %v4073_v51, %v4073_v51  ;;  %v1248_v58 = vsel %vm627_vm3, %v1202_v0, 0.0  ;;  %v4272_v0 = vadd.f32 %v4144_v30, %v962_v61 }
 0x24c   : > { %v1142_v31 = vadd.f32 %v1141_v26, %v1140_v10  ;;  %v1205_v26 = vmul.f32 %v4082_v28, %v4082_v28  ;;  %v969_v30 = vadd.f32 %v4179_v17, %v3995_v15 }
 0x24d   : > { %v1239_v1 = vadd.f32 %v1238_v52, %v1237_v34  ;;  %v1204_v52 = vmul.f32 %v4077_v4, %v4077_v4  ;;  %v959_v34 = vadd.f32 %v4079_v5, %v3977_v54  ;;  %v1250_v22 = vsel %vm627_vm3, %v1203_v46, 0.0 }
 0x24e   : > { %v1144_v36 = vadd.f32 %v1143_v23, %v1142_v31  ;;  %v1206_v54 = vmul.f32 %v4088_v2, %v4088_v2  ;;  %v1254_v40 = vsel %vm627_vm3, %v1205_v26, 0.0  ;;  %v1161_v15 = vsel %vm627_vm3, %v4272_v0, 0.0 }
 0x24f   : > { %v4183_v53 = vpop.f32.mrf.mxu2  ;;  %v1241_v35 = vadd.f32 %v1240_v62, %v1239_v1  ;;  %v1151_v62 = vsel %vm627_vm3, %v4077_v4, 0.0  ;;  %v1252_v23 = vsel %vm627_vm3, %v1204_v52, 0.0  ;;  %v4262_v5 = vadd.f32 %v4111_v50, %v959_v34 }
 0x250   : > { %v1146_v9 = vadd.f32 %v1145_v63, %v1144_v36  ;;  %v973_v1 = vpop.f32.mrf.mxu3  ;;  %v1207_v63 = vmul.f32 %v4097_v39, %v4097_v39  ;;  %v967_v50 = vadd.f32 %v4134_v11, %v3989_v55  ;;  %v972_v52 = vadd.f32 %v971_v32, %v4002_v16 }
 0x251   : > { %v1243_v43 = vadd.f32 %v1242_v3, %v1241_v35  ;;  %v964_v35 = vadd.f32 %v4101_v13, %v3986_v42  ;;  %v1256_v42 = vsel %vm627_vm3, %v1206_v54, 0.0  ;;  %v1157_v13 = vsel %vm627_vm3, %v4097_v39, 0.0 }
 0x252   : > { %v1148_v14 = vadd.f32 %v1147_v24, %v1146_v9  ;;  %v1208_v24 = vmul.f32 %v4262_v5, %v4262_v5  ;;  %v1258_v55 = vsel %vm627_vm3, %v1207_v63, 0.0  ;;  %v1159_v11 = vsel %vm627_vm3, %v4262_v5, 0.0 }
 0x253   : > { %v1245_v59 = vadd.f32 %v1244_v7, %v1243_v43  ;;  %v4282_v46 = vadd.f32 %v4183_v53, %v964_v35 }
 0x254   : > { %v1150_v3 = vadd.f32 %v1149_v29, %v1148_v14  ;;  %v1260_v14 = vsel %vm627_vm3, %v1208_v24, 0.0 }
 0x255   : > { %v1247_v37 = vadd.f32 %v1246_v6, %v1245_v59  ;;  %v1210_v17 = vmul.f32 %v4282_v46, %v4282_v46  ;;  %v1163_v16 = vsel %vm627_vm3, %v4282_v46, 0.0 }
 0x256   : > { %v1152_v7 = vadd.f32 %v1151_v62, %v1150_v3 }
 0x257   : > { %v1066_v41 = vpop.f32.mrf.mxu2  ;;  %v1249_v10 = vadd.f32 %v1248_v58, %v1247_v37  ;;  %v1209_v58 = vmul.f32 %v4272_v0, %v4272_v0 }
 0x258   : > { %v1154_v36 = vadd.f32 %v1153_v44, %v1152_v7  ;;  %v4291_v29 = vadd.f32 %v1066_v41, %v967_v50  ;;  %v976_v62 = vpop.f32.mrf.mxu3 }
 0x259   : > { %v1251_v31 = vadd.f32 %v1250_v22, %v1249_v10  ;;  %v974_v22 = vadd.f32 %v973_v1, %v4006_v60  ;;  %v1262_v61 = vsel %vm627_vm3, %v1209_v58, 0.0  ;;  %v977_v24 = vadd.f32 %v976_v62, %v4016_v12 }
 0x25a   : > { %v1156_v9 = vadd.f32 %v1155_v27, %v1154_v36  ;;  %v1211_v32 = vmul.f32 %v4291_v29, %v4291_v29  ;;  %v1165_v60 = vsel %vm627_vm3, %v4291_v29, 0.0 }
 0x25b   : > { %v1253_v43 = vadd.f32 %v1252_v23, %v1251_v31 }
 0x25c   : > { %v1158_v53 = vadd.f32 %v1157_v13, %v1156_v9  ;;  %v1266_v7 = vsel %vm627_vm3, %v1211_v32, 0.0 }
 0x25d   : > { %v1255_v59 = vadd.f32 %v1254_v40, %v1253_v43 }
 0x25e   : > { %v1160_v41 = vadd.f32 %v1159_v11, %v1158_v53 }
 0x25f   : > { %v1068_v49 = vpop.f32.mrf.mxu2  ;;  %v1257_v37 = vadd.f32 %v1256_v42, %v1255_v59 }
 0x260   : > { %v4299_v34 = vadd.f32 %v1068_v49, %v969_v30  ;;  %v1162_v23 = vadd.f32 %v1161_v15, %v1160_v41  ;;  %v1264_v49 = vsel %vm627_vm3, %v1210_v17, 0.0  ;;  %v978_v9 = vpop.f32.mrf.mxu3  ;;  %v5954_v41 = vld [vmem:[#allocation2_spill] sm:$0xff] }
 0x261   : > { %v1259_v26 = vadd.f32 %v1258_v55, %v1257_v37 }
 0x262   : > { %v1212_v1 = vmul.f32 %v4299_v34, %v4299_v34  ;;  %v1164_v31 = vadd.f32 %v1163_v16, %v1162_v23  ;;  %v1167_v40 = vsel %vm627_vm3, %v4299_v34, 0.0 }
 0x263   : > { %v1261_v3 = vadd.f32 %v1260_v14, %v1259_v26 }
 0x264   : > { %v1166_v50 = vadd.f32 %v1165_v60, %v1164_v31  ;;  %v1268_v43 = vsel %vm627_vm3, %v1212_v1, 0.0 }
 0x265   : > { %v1263_v35 = vadd.f32 %v1262_v61, %v1261_v3  ;;  %v979_v61 = vadd.f32 %v978_v9, %v5954_v41 }
 0x266   : > { %v1168_v13 = vadd.f32 %v1167_v40, %v1166_v50 }
 0x267   : > { %v1071_v6 = vpop.f32.mrf.mxu2  ;;  %v1265_v63 = vadd.f32 %v1264_v49, %v1263_v35  ;;  %v5955_v35 = vld [vmem:[#allocation3_spill] sm:$0xff] }
 0x268   : > { %v4307_v10 = vadd.f32 %v1071_v6, %v972_v52  ;;  %v981_v3 = vpop.f32.mrf.mxu3 }
 0x269   : > { %v1267_v42 = vadd.f32 %v1266_v7, %v1265_v63  ;;  %v982_v31 = vadd.f32 %v981_v3, %v5955_v35 }
 0x26a   : > { %v1213_v27 = vmul.f32 %v4307_v10, %v4307_v10  ;;  %v1169_v36 = vsel %vm627_vm3, %v4307_v10, 0.0 }
 0x26b   : > { %v1269_v55 = vadd.f32 %v1268_v43, %v1267_v42  ;;  %v1170_v11 = vadd.f32 %v1169_v36, %v1168_v13  ;;  %v5956_v42 = vld [vmem:[#allocation4_spill] sm:$0xff] }
 0x26c   : > { %v1270_v30 = vsel %vm627_vm3, %v1213_v27, 0.0 }
 0x26d   : > { %v1271_v53 = vadd.f32 %v1270_v30, %v1269_v55 }
 0x26f   : > { %v1073_v44 = vpop.f32.mrf.mxu2 }
 0x270   : > { %v4314_v54 = vadd.f32 %v1073_v44, %v974_v22  ;;  %v983_v50 = vpop.f32.mrf.mxu3 }
 0x271   : > { %v984_v13 = vadd.f32 %v983_v50, %v5956_v42 }
 0x272   : > { %v1214_v6 = vmul.f32 %v4314_v54, %v4314_v54  ;;  %v1171_v59 = vsel %vm627_vm3, %v4314_v54, 0.0 }
 0x273   : > { %v1172_v14 = vadd.f32 %v1171_v59, %v1170_v11 }
 0x274   : > { %v1272_v52 = vsel %vm627_vm3, %v1214_v6, 0.0 }
 0x275   : > { %v1273_v17 = vadd.f32 %v1272_v52, %v1271_v53 }
 0x277   : > { %v1076_v58 = vpop.f32.mrf.mxu2 }
 0x278   : > { %v4331_v37 = vadd.f32 %v1076_v58, %v977_v24 }
 0x27a   : > { %v1173_v15 = vsel %vm627_vm3, %v4331_v37, 0.0  ;;  %v1215_v12 = vmul.f32 %v4331_v37, %v4331_v37 }
 0x27b   : > { %v1174_v22 = vadd.f32 %v1173_v15, %v1172_v14 }
 0x27c   : > { %v1274_v62 = vsel %vm627_vm3, %v1215_v12, 0.0 }
 0x27d   : > { %v1275_v26 = vadd.f32 %v1274_v62, %v1273_v17 }
 0x27f   : > { %v1078_v16 = vpop.f32.mrf.mxu2 }
 0x280   : > { %v4339_v32 = vadd.f32 %v1078_v16, %v979_v61 }
 0x282   : > { %v1175_v23 = vsel %vm627_vm3, %v4339_v32, 0.0  ;;  %v1216_v44 = vmul.f32 %v4339_v32, %v4339_v32 }
 0x283   : > { %v1176_v49 = vadd.f32 %v1175_v23, %v1174_v22 }
 0x284   : > { %v1276_v60 = vsel %vm627_vm3, %v1216_v44, 0.0 }
 0x285   : > { %v1277_v1 = vadd.f32 %v1276_v60, %v1275_v26 }
 0x287   : > { %v1081_v7 = vpop.f32.mrf.mxu2 }
 0x288   : > { %v4347_v40 = vadd.f32 %v1081_v7, %v982_v31  ;;  %v2824_v7 = vld [vmem:[%s5875_s1 + $0x20] sm:$0xf] }
 0x28a   : > { %v1177_v27 = vsel %vm627_vm3, %v4347_v40, 0.0  ;;  %v1217_v63 = vmul.f32 %v4347_v40, %v4347_v40 }
 0x28b   : > { %v1178_v43 = vadd.f32 %v1177_v27, %v1176_v49  ;;  %v2892_v27 = vld [vmem:[%s5875_s1 + $0x20] sm:$0x30] }
 0x28c   : > { %v1278_v36 = vsel %vm627_vm3, %v1217_v63, 0.0 }
 0x28d   : > { %v1279_v6 = vadd.f32 %v1278_v36, %v1277_v1 }
 0x28f   : > { %v1083_v24 = vpop.f32.mrf.mxu2 }
 0x290   : > { %v4355_v30 = vadd.f32 %v1083_v24, %v984_v13  ;;  %v2844_v24 = vld [vmem:[%s5875_s1 + $0x18] sm:$0xf] }
 0x292   : > { %v1179_v59 = vsel %vm627_vm3, %v4355_v30, 0.0  ;;  %v1218_v9 = vmul.f32 %v4355_v30, %v4355_v30 }
 0x293   : > { %v1180_v55 = vadd.f32 %v1179_v59, %v1178_v43  ;;  %v2825_v43 = vor.u32 %v2892_v27, %v2824_v7  ;;  %v2891_v59 = vld [vmem:[%s5875_s1 + $0x18] sm:$0x30] }
 0x294   : > { %v1280_v11 = vsel %vm627_vm3, %v1218_v9, 0.0  ;;  %v2866_v9 = vld [vmem:[%s5875_s1 + $0x28] sm:$0xf] }
 0x295   : > { %v1181_v58 = vrot.slane %v1180_v55, 4  ;;  %v1281_v52 = vadd.f32 %v1280_v11, %v1279_v6  ;;  %v2022_v36 = vsel %vm796_vm1, %v2825_v43, 0  ;;  %v2893_v11 = vld [vmem:[%s5875_s1 + $0x28] sm:$0x30] }
 0x296   : > { %2031 = vmatpush.bf16.msrb.mxu3 %v2022_v36 }
 0x297   : > { %v1182_v53 = vadd.f32 %v1181_v58, %v1180_v55  ;;  %v1282_v14 = vrot.slane %v1281_v52, 4  ;;  %v2845_v55 = vor.u32 %v2891_v59, %v2844_v24 }
 0x299   : > { %v1183_v15 = vrot.slane %v1182_v53, 2  ;;  %v1283_v12 = vadd.f32 %v1282_v14, %v1281_v52  ;;  %v2867_v52 = vor.u32 %v2893_v11, %v2866_v9  ;;  %v2119_v14 = vsel %vm796_vm1, %v2845_v55, 0 }
 0x29a   : > { %2128 = vmatpush.bf16.msrb.mxu0 %v2119_v14 }
 0x29b   : > { %v1184_v17 = vadd.f32 %v1183_v15, %v1182_v53  ;;  %v1284_v22 = vrot.slane %v1283_v12, 2  ;;  %v204_v53 = vld [vmem:[%s5876_s2] sm:$0xf] }
 0x29d   : > { %v1185_v62 = vrot.slane %v1184_v17, 1  ;;  %v1285_v26 = vadd.f32 %v1284_v22, %v1283_v12  ;;  %v4399_v12 = vperm.slane %v204_v53, 1  ;;  %v5957_v22 = vld [vmem:[#allocation5_spill] sm:$0xff] }
 0x29f   : > { %v1186_v41 = vadd.f32 %v1185_v62, %v1184_v17  ;;  %v1286_v61 = vrot.slane %v1285_v26, 1  ;;  %v2219_v17 = vsel %vm796_vm1, %v2867_v52, 0 }
 0x2a0   : > { %2228 = vmatpush.bf16.msrb.mxu1 %v2219_v17 }
 0x2a1   : > { %v1287_v16 = vadd.f32 %v1286_v61, %v1285_v26  ;;  %v4362_v3 = vmul.f32 0.00390625, %v1186_v41  ;;  %v5958_v26 = vld [vmem:[#allocation7_spill] sm:$0xff]  ;;  %v5959_v61 = vld [vmem:[#allocation6_spill] sm:$0xff] }
 0x2a3   : > { %v1289_v23 = vmul.f32 0.00390625, %v1287_v16  ;;  %v1290_v44 = vmul.f32 %v4362_v3, %v4362_v3  ;;  %v1335_v49 = vsub.f32 %v4355_v30, %v4362_v3  ;;  %v1331_v35 = vsub.f32 %v4314_v54, %v4362_v3 }
 0x2a4   : > { %v1332_v31 = vsub.f32 %v4331_v37, %v4362_v3  ;;  %v1333_v63 = vsub.f32 %v4339_v32, %v4362_v3  ;;  %v1334_v50 = vsub.f32 %v4347_v40, %v4362_v3  ;;  %v1304_v62 = vsub.f32 %v5957_v22, %v4362_v3 }
 0x2a5   : > { %v1291_v60 = vsub.f32 %v1289_v23, %v1290_v44  ;;  %v1305_v41 = vsub.f32 %v5958_v26, %v4362_v3  ;;  %v1306_v16 = vsub.f32 %v5959_v61, %v4362_v3  ;;  %v1307_v23 = vsub.f32 %v4115_v57, %v4362_v3 }
 0x2a6   : > { %v1309_v7 = vsub.f32 %v4131_v21, %v4362_v3  ;;  %v1310_v27 = vsub.f32 %v4142_v19, %v4362_v3  ;;  %v1311_v43 = vsub.f32 %v4152_v18, %v4362_v3  ;;  %v1312_v36 = vsub.f32 %v4160_v56, %v4362_v3 }
 0x2a7   : > { %v1292_v1 = vadd.f32 1e-05, %v1291_v60  ;;  %v1308_v60 = vsub.f32 %v4038_v45, %v4362_v3  ;;  %v1313_v57 = vsub.f32 %v4168_v47, %v4362_v3  ;;  %v1314_v45 = vsub.f32 %v4177_v38, %v4362_v3 }
 0x2a8   : > { %v1315_v21 = vsub.f32 %v4191_v48, %v4362_v3  ;;  %v1317_v18 = vsub.f32 %v4209_v8, %v4362_v3  ;;  %v1318_v56 = vsub.f32 %v4217_v25, %v4362_v3  ;;  %v1319_v47 = vsub.f32 %v4225_v33, %v4362_v3 }
 0x2a9   : > { %3226 = vrsqrt.f32 %v1292_v1  ;;  %vm1299_vm7 = vweird.f32 %v1292_v1  ;;  %v1321_v38 = vsub.f32 %v4077_v4, %v4362_v3  ;;  %v1322_v48 = vsub.f32 %v4082_v28, %v4362_v3 }
 0x2aa   : > { %v1324_v8 = vsub.f32 %v4097_v39, %v4362_v3  ;;  %v1325_v25 = vsub.f32 %v4262_v5, %v4362_v3  ;;  %v1326_v33 = vsub.f32 %v4272_v0, %v4362_v3  ;;  %v1328_v4 = vsub.f32 %v4291_v29, %v4362_v3 }
 0x2ab   : > { %v1329_v28 = vsub.f32 %v4299_v34, %v4362_v3 }
 0x2af   : > { %v3227_v6 = vpop.eup %3226 }
 0x2b0   : > { %v1294_v42 = vmul.f32 %v3227_v6, %v1292_v1  ;;  %vm1300_vm6 = vweird.f32 %v3227_v6 }
 0x2b1   : > { %vm1301_vm8 = vmor %vm1299_vm7, %vm1300_vm6 }
 0x2b2   : > { %v1295_v13 = vmul.f32 %v3227_v6, %v1294_v42  ;;  %v1316_v42 = vsub.f32 %v4201_v20, %v4362_v3  ;;  %v1323_v20 = vsub.f32 %v4088_v2, %v4362_v3  ;;  %v1330_v2 = vsub.f32 %v4307_v10, %v4362_v3 }
 0x2b4   : > { %v1296_v58 = vmul.f32 0.5, %v1295_v13 }
 0x2b6   : > { %v1297_v15 = vsub.f32 1.5, %v1296_v58 }
 0x2b8   : > { %v1298_v44 = vmul.f32 %v3227_v6, %v1297_v15 }
 0x2ba   : > { %v1302_v1 = vsel %vm1301_vm8, %v3227_v6, %v1298_v44  ;;  %v1320_v6 = vsub.f32 %v4073_v51, %v4362_v3  ;;  %v1327_v51 = vsub.f32 %v4282_v46, %v4362_v3 }
 0x2bb   : > { %v1303_v19 = vmul.f32 %v1302_v1, %v204_v53 }
 0x2bd   : > { %v1336_v13 = vperm.slane %v1303_v19, 0 }
 0x2bf   : > { %v4459_v39 = vmul.f32 %v1336_v13, %v1335_v49  ;;  %v1337_v5 = vmul.f32 %v1336_v13, %v1304_v62  ;;  %v1338_v24 = vmul.f32 %v1336_v13, %v1305_v41  ;;  %v1339_v0 = vmul.f32 %v1336_v13, %v1306_v16 }
 0x2c0   : > { %v1340_v59 = vmul.f32 %v1336_v13, %v1307_v23  ;;  %v1341_v9 = vmul.f32 %v1336_v13, %v1308_v60  ;;  %v1342_v46 = vmul.f32 %v1336_v13, %v1309_v7  ;;  %v4461_v55 = vmul.f32 %v1336_v13, %v1310_v27 }
 0x2c1   : > { %v4463_v29 = vmul.f32 %v1336_v13, %v1311_v43  ;;  %v1345_v11 = vmul.f32 %v1336_v13, %v1312_v36  ;;  %v1346_v34 = vmul.f32 %v1336_v13, %v1313_v57  ;;  %v1347_v58 = vmul.f32 %v1336_v13, %v1314_v45 }
 0x2c2   : > { %v1348_v52 = vmul.f32 %v1336_v13, %v1315_v21  ;;  %v4465_v10 = vmul.f32 %v1336_v13, %v1316_v42  ;;  %v4467_v53 = vmul.f32 %v1336_v13, %v1317_v18  ;;  %v4469_v30 = vmul.f32 %v1336_v13, %v1318_v56 }
 0x2c3   : > { %v4471_v49 = vmul.f32 %v1336_v13, %v1319_v47  ;;  %v1353_v14 = vmul.f32 %v1336_v13, %v1320_v6  ;;  %v1354_v15 = vmul.f32 %v1336_v13, %v1321_v38  ;;  %v4473_v17 = vmul.f32 %v1336_v13, %v1322_v48 }
 0x2c4   : > { %v4475_v22 = vmul.f32 %v1336_v13, %v1323_v20  ;;  %v4477_v62 = vmul.f32 %v1336_v13, %v1324_v8  ;;  %v4479_v26 = vmul.f32 %v1336_v13, %v1325_v25  ;;  %v1359_v41 = vmul.f32 %v1336_v13, %v1326_v33 }
 0x2c5   : > { %v1360_v61 = vmul.f32 %v1336_v13, %v1327_v51  ;;  %v4481_v16 = vmul.f32 %v1336_v13, %v1328_v4  ;;  %v4483_v23 = vmul.f32 %v1336_v13, %v1329_v28  ;;  %v4485_v44 = vmul.f32 %v1336_v13, %v1330_v2 }
 0x2c6   : > { %v4490_v60 = vmul.f32 %v1336_v13, %v1331_v35  ;;  %v1365_v7 = vmul.f32 %v1336_v13, %v1332_v31  ;;  %v1366_v27 = vmul.f32 %v1336_v13, %v1333_v63  ;;  %v4501_v43 = vmul.f32 %v1336_v13, %v1334_v50 }
 0x2c7   : > { %v1374_v36 = vadd.f32 %v4399_v12, %v1341_v9  ;;  %v1375_v57 = vadd.f32 %v4399_v12, %v1342_v46  ;;  %v1380_v54 = vadd.f32 %v4399_v12, %v1347_v58  ;;  %v1381_v35 = vadd.f32 %v4399_v12, %v1348_v52 }
 0x2c8   : > { %v1386_v37 = vadd.f32 %v4399_v12, %v1353_v14  ;;  %v1387_v31 = vadd.f32 %v4399_v12, %v1354_v15  ;;  %v1392_v32 = vadd.f32 %v4399_v12, %v1359_v41  ;;  %v1393_v63 = vadd.f32 %v4399_v12, %v1360_v61 }
 0x2c9   : > { %v1398_v40 = vadd.f32 %v4399_v12, %v1365_v7  ;;  %v1399_v3 = vadd.f32 %v4399_v12, %v1366_v27  ;;  %v4513_v50 = vmax.f32 %v1374_v36, 0.0  ;;  %v4515_v1 = vmax.f32 %v1375_v57, 0.0 }
 0x2ca   : > { %v4517_v45 = vmax.f32 %v1380_v54, 0.0  ;;  %v4519_v21 = vmax.f32 %v1381_v35, 0.0  ;;  %v4521_v42 = vmax.f32 %v1386_v37, 0.0  ;;  %v4523_v19 = vmax.f32 %v1387_v31, 0.0 }
 0x2cb   : > { %v4525_v18 = vmax.f32 %v1392_v32, 0.0  ;;  %v4527_v56 = vmax.f32 %v1393_v63, 0.0  ;;  %v4529_v47 = vmax.f32 %v1398_v40, 0.0  ;;  %v4531_v6 = vmax.f32 %v1399_v3, 0.0 }
 0x2cc   : > { %v1372_v38 = vadd.f32 %v4399_v12, %v1339_v0  ;;  %v1373_v48 = vadd.f32 %v4399_v12, %v1340_v59  ;;  %v1370_v20 = vadd.f32 %v4399_v12, %v1337_v5  ;;  %v1371_v13 = vadd.f32 %v4399_v12, %v1338_v24 }
 0x2cd   : > { %v5907_v8 = vrot.slane %v4513_v50, 1  ;;  %v5908_v25 = vrot.slane %v4515_v1, 7  ;;  %v1588_v33 = vrot.slane %v4515_v1, 1  ;;  %v3086_v51 = vpack.i.bf16 %v4515_v1, %v4513_v50 }
 0x2ce   : > { %v4542_v4 = vmax.f32 %v1372_v38, 0.0  ;;  %v4544_v28 = vmax.f32 %v1373_v48, 0.0  ;;  %v4546_v2 = vmax.f32 %v1370_v20, 0.0  ;;  %v4548_v0 = vmax.f32 %v1371_v13, 0.0 }
 0x2cf   : > { %v1589_v5 = vsel %vm356_vm0, %v5907_v8, %v1588_v33  ;;  %v1646_v24 = vsel %vm356_vm0, %v1588_v33, %v5908_v25  ;;  %v1378_v59 = vadd.f32 %v4399_v12, %v1345_v11  ;;  %v1379_v9 = vadd.f32 %v4399_v12, %v1346_v34 }
 0x2d0   : > { %v3076_v46 = vpack.i.bf16 %v4544_v28, %v4542_v4  ;;  %v3066_v58 = vpack.i.bf16 %v4548_v0, %v4546_v2  ;;  %v1450_v52 = vrot.slane %v4546_v2, 1  ;;  %v1498_v14 = vrot.slane %v4548_v0, 7 }
 0x2d1   : > { %v1586_v15 = vrot.slane %v4548_v0, 1  ;;  %v3091_v41 = vpack.i.bf16 %v1646_v24, %v1589_v5  ;;  %v5912_v61 = vrot.slane %v4542_v4, 1  ;;  %v5913_v7 = vrot.slane %v4544_v28, 7 }
 0x2d2   : > { %3077 = vrot.lane.b32.xlu1 %v3076_v46, %s3271_s18  ;;  %3067 = vrot.lane.b32.xlu2 %v3066_v58, %s3271_s18  ;;  %v1584_v11 = vrot.slane %v4544_v28, 1  ;;  %v4570_v34 = vmax.f32 %v1378_v59, 0.0  ;;  %v4572_v27 = vmax.f32 %v1379_v9, 0.0  ;;  %v1376_v36 = vadd.f32 %v4399_v12, %v4461_v55 }
 0x2d3   : > { %v1587_v57 = vsel %vm356_vm0, %v1450_v52, %v1586_v15  ;;  %v1645_v54 = vsel %vm356_vm0, %v1586_v15, %v1498_v14  ;;  %v1377_v35 = vadd.f32 %v4399_v12, %v4463_v29  ;;  %v5901_v37 = vrot.slane %v4517_v45, 1 }
 0x2d4   : > { %v3071_v31 = vpack.i.bf16 %v1645_v54, %v1587_v57  ;;  %v1585_v32 = vsel %vm356_vm0, %v5912_v61, %v1584_v11  ;;  %v1644_v55 = vsel %vm356_vm0, %v1584_v11, %v5913_v7  ;;  %v3106_v63 = vpack.i.bf16 %v4572_v27, %v4570_v34 }
 0x2d5   : > { %v3081_v40 = vpack.i.bf16 %v1644_v55, %v1585_v32  ;;  %v4593_v3 = vmax.f32 %v1376_v36, 0.0  ;;  %v4595_v38 = vmax.f32 %v1377_v35, 0.0  ;;  %v5902_v29 = vrot.slane %v4519_v21, 7 }
 0x2d6   : > { %3072 = vrot.lane.b32.xlu0 %v3071_v31, %s3272_s19  ;;  %v1594_v48 = vrot.slane %v4519_v21, 1  ;;  %v5905_v20 = vrot.slane %v4570_v34, 1  ;;  %v5906_v13 = vrot.slane %v4572_v27, 7  ;;  %v1592_v33 = vrot.slane %v4572_v27, 1 }
 0x2d7   : > { %v3096_v5 = vpack.i.bf16 %v4595_v38, %v4593_v3  ;;  %v5914_v24 = vrot.slane %v4593_v3, 1  ;;  %v5916_v59 = vrot.slane %v4595_v38, 7  ;;  %v1590_v9 = vrot.slane %v4595_v38, 1 }
 0x2d8   : > { %v4611_v46 = vsel %vm356_vm0, %v5901_v37, %v1594_v48  ;;  %v4616_v58 = vsel %vm356_vm0, %v1594_v48, %v5902_v29  ;;  %v4621_v15 = vsel %vm356_vm0, %v5905_v20, %v1592_v33  ;;  %v4626_v11 = vsel %vm356_vm0, %v1592_v33, %v5906_v13 }
 0x2d9   : > { %v1591_v36 = vsel %vm356_vm0, %v5914_v24, %v1590_v9  ;;  %v1647_v57 = vsel %vm356_vm0, %v1590_v9, %v5916_v59  ;;  %v3121_v54 = vpack.i.bf16 %v4616_v58, %v4611_v46  ;;  %v3111_v35 = vpack.i.bf16 %v4626_v11, %v4621_v15 }
 0x2da   : > { %3092 = vrot.lane.b32.xlu1 %v3091_v41, %s3272_s19  ;;  %3082 = vrot.lane.b32.xlu2 %v3081_v40, %s3272_s19  ;;  %v3101_v31 = vpack.i.bf16 %v1647_v57, %v1591_v36  ;;  %v3116_v32 = vpack.i.bf16 %v4519_v21, %v4517_v45  ;;  %v1384_v55 = vadd.f32 %v4399_v12, %v4469_v30  ;;  %v5903_v48 = vrot.slane %v4521_v42, 1 }
 0x2db   : > { %v1385_v33 = vadd.f32 %v4399_v12, %v4471_v49  ;;  %v1382_v9 = vadd.f32 %v4399_v12, %v4465_v10  ;;  %v1383_v41 = vadd.f32 %v4399_v12, %v4467_v53  ;;  %v5904_v40 = vrot.slane %v4523_v19, 7 }
 0x2dc   : > { %v4652_v36 = vmax.f32 %v1384_v55, 0.0  ;;  %v1600_v57 = vrot.slane %v4523_v19, 1  ;;  %v1390_v37 = vadd.f32 %v4399_v12, %v4477_v62  ;;  %v1391_v53 = vadd.f32 %v4399_v12, %v4479_v26 }
 0x2dd   : > { %v4659_v29 = vmax.f32 %v1385_v33, 0.0  ;;  %v4661_v49 = vmax.f32 %v1382_v9, 0.0  ;;  %v4663_v10 = vmax.f32 %v1383_v41, 0.0  ;;  %v1388_v13 = vadd.f32 %v4399_v12, %v4473_v17 }
 0x2de   : > { %3087 = vrot.lane.b32.xlu0 %v3086_v51, %s3271_s18  ;;  %v4674_v55 = vsel %vm356_vm0, %v5903_v48, %v1600_v57  ;;  %v4679_v62 = vsel %vm356_vm0, %v1600_v57, %v5904_v40  ;;  %v5911_v33 = vrot.slane %v4652_v36, 1  ;;  %v4682_v9 = vmax.f32 %v1390_v37, 0.0 }
 0x2df   : > { %v3136_v26 = vpack.i.bf16 %v4659_v29, %v4652_v36  ;;  %v3126_v51 = vpack.i.bf16 %v4663_v10, %v4661_v49  ;;  %v5909_v41 = vrot.slane %v4661_v49, 1  ;;  %v5910_v30 = vrot.slane %v4663_v10, 7 }
 0x2e0   : > { %v1596_v48 = vrot.slane %v4663_v10, 1  ;;  %v5915_v40 = vrot.slane %v4659_v29, 7  ;;  %v1598_v37 = vrot.slane %v4659_v29, 1  ;;  %v4695_v20 = vmax.f32 %v1391_v53, 0.0 }
 0x2e1   : > { %v1389_v8 = vadd.f32 %v4399_v12, %v4475_v22  ;;  %v5917_v25 = vrot.slane %v4525_v18, 1  ;;  %v5918_v22 = vrot.slane %v4527_v56, 7  ;;  %v1606_v61 = vrot.slane %v4527_v56, 1 }
 0x2e2   : > { %3107 = vrot.lane.b32.xlu1 %v3106_v63, %s3271_s18  ;;  %3097 = vrot.lane.b32.xlu2 %v3096_v5, %s3271_s18  ;;  %v4707_v57 = vsel %vm356_vm0, %v5909_v41, %v1596_v48  ;;  %v4712_v53 = vsel %vm356_vm0, %v1596_v48, %v5910_v30  ;;  %v4717_v17 = vsel %vm356_vm0, %v5911_v33, %v1598_v37  ;;  %v4729_v48 = vmax.f32 %v1388_v13, 0.0 }
 0x2e3   : > { %v4725_v5 = vsel %vm356_vm0, %v1598_v37, %v5915_v40  ;;  %v4733_v33 = vmax.f32 %v1389_v8, 0.0  ;;  %v5919_v7 = vrot.slane %v4682_v9, 1  ;;  %v5920_v24 = vrot.slane %v4695_v20, 7 }
 0x2e4   : > { %v5921_v63 = vrot.slane %v4729_v48, 1  ;;  %v1604_v37 = vrot.slane %v4695_v20, 1  ;;  %v4750_v30 = vsel %vm356_vm0, %v5917_v25, %v1606_v61  ;;  %v4755_v59 = vsel %vm356_vm0, %v1606_v61, %v5918_v22 }
 0x2e5   : > { %v5924_v8 = vrot.slane %v4733_v33, 7  ;;  %v1602_v40 = vrot.slane %v4733_v33, 1  ;;  %v1396_v13 = vadd.f32 %v4399_v12, %v4485_v44  ;;  %v1397_v44 = vadd.f32 %v4399_v12, %v4490_v60 }
 0x2e6   : > { %3102 = vrot.lane.b32.xlu0 %v3101_v31, %s3272_s19  ;;  %v4760_v31 = vsel %vm356_vm0, %v5919_v7, %v1604_v37  ;;  %v4765_v41 = vsel %vm356_vm0, %v1604_v37, %v5920_v24  ;;  %v5922_v60 = vrot.slane %v4529_v47, 1  ;;  %v1612_v37 = vrot.slane %v4531_v6, 1 }
 0x2e7   : > { %v4772_v25 = vsel %vm356_vm0, %v5921_v63, %v1602_v40  ;;  %v4777_v61 = vsel %vm356_vm0, %v1602_v40, %v5924_v8  ;;  %v4787_v24 = vmax.f32 %v1396_v13, 0.0  ;;  %v1394_v63 = vadd.f32 %v4399_v12, %v4481_v16 }
 0x2e8   : > { %v1395_v40 = vadd.f32 %v4399_v12, %v4483_v23  ;;  %v5923_v13 = vrot.slane %v4531_v6, 7  ;;  %v4804_v16 = vmax.f32 %v1397_v44, 0.0  ;;  %v4816_v23 = vsel %vm356_vm0, %v5922_v60, %v1612_v37 }
 0x2e9   : > { %v4806_v22 = vmax.f32 %v1394_v63, 0.0  ;;  %v5926_v46 = vrot.slane %v4787_v24, 1  ;;  %v1401_v7 = vadd.f32 %v4399_v12, %v4459_v39  ;;  %v1497_v60 = vrot.slane %v4546_v2, 7 }
 0x2ea   : > { %3122 = vrot.lane.b32.xlu1 %v3121_v54, %s3272_s19  ;;  %3112 = vrot.lane.b32.xlu2 %v3111_v35, %s3272_s19  ;;  %v4811_v15 = vmax.f32 %v1395_v40, 0.0  ;;  %v4821_v11 = vsel %vm356_vm0, %v1612_v37, %v5923_v13  ;;  %v1400_v54 = vadd.f32 %v4399_v12, %v4501_v43  ;;  %v5927_v40 = vrot.slane %v4804_v16, 7 }
 0x2eb   : > { %v5925_v63 = vrot.slane %v4806_v22, 1  ;;  %v1610_v35 = vrot.slane %v4804_v16, 1  ;;  %v1503_v13 = vrot.slane %v4593_v3, 7 }
 0x2ec   : > { %v1531_v43 = vrot.slane %v4811_v15, 7  ;;  %v1608_v58 = vrot.slane %v4811_v15, 1  ;;  %v4842_v44 = vmax.f32 %v1400_v54, 0.0  ;;  %v5962_v54 = vrot.slane %v4595_v38, 7 }
 0x2ed   : > { %v4857_v8 = vsel %vm356_vm0, %v5926_v46, %v1610_v35  ;;  %v4862_v12 = vsel %vm356_vm0, %v1610_v35, %v5927_v40  ;;  %v4882_v35 = vsel %vm265_vm2, %v1497_v60, %v1498_v14  ;;  %v5964_v46 = vrot.slane %v4593_v3, 1 }
 0x2ee   : > { %3117 = vrot.lane.b32.xlu0 %v3116_v32, %s3271_s18  ;;  %v4849_v32 = vsel %vm356_vm0, %v5925_v63, %v1608_v58  ;;  %v4852_v37 = vsel %vm356_vm0, %v1608_v58, %v1531_v43  ;;  %v4868_v63 = vmax.f32 %v1401_v7, 0.0  ;;  %v1933_v58 = vrot.slane %v4842_v44, 1  ;;  %5960 = vst [vmem:[#allocation2_spill] sm:$0xff] %v4882_v35 }
 0x2ef   : > { %v4887_v7 = vsel %vm265_vm2, %v1450_v52, %v1497_v60  ;;  %v4892_v39 = vsel %vm265_vm2, %v1503_v13, %v5962_v54  ;;  %v4902_v2 = vsel %vm265_vm2, %v5964_v46, %v1503_v13  ;;  %v5966_v52 = vrot.slane %v4544_v28, 7 }
 0x2f0   : > { %5961 = vst [vmem:[#allocation3_spill] sm:$0xff] %v4887_v7  ;;  %v1937_v0 = vrot.slane %v4868_v63, 7  ;;  %v1942_v14 = vrot.slane %v4868_v63, 1  ;;  %v5967_v60 = vrot.slane %v4542_v4, 1  ;;  %v1500_v40 = vrot.slane %v4513_v50, 7 }
 0x2f1   : > { %5963 = vst [vmem:[#allocation4_spill] sm:$0xff] %v4892_v39  ;;  %v1506_v13 = vrot.slane %v4570_v34, 7  ;;  %v1521_v28 = vrot.slane %v4729_v48, 7  ;;  %v5968_v46 = vpack.i.bf16 %v4712_v53, %v4707_v57  ;;  %v5972_v7 = vrot.slane %v4513_v50, 1 }
 0x2f2   : > { %3137 = vrot.lane.b32.xlu1 %v3136_v26, %s3271_s18  ;;  %3127 = vrot.lane.b32.xlu2 %v3126_v51, %s3271_s18  ;;  %v1494_v26 = vrot.slane %v4542_v4, 7  ;;  %5965 = vst [vmem:[#allocation5_spill] sm:$0xff] %v4902_v2  ;;  %v1512_v51 = vrot.slane %v4661_v49, 7  ;;  %v1943_v39 = vsel %vm356_vm0, %v1933_v58, %v1942_v14  ;;  %v1946_v3 = vsel %vm356_vm0, %v1942_v14, %v1937_v0 }
 0x2f3   : > { %v3221_v4 = vpack.i.bf16 %v1946_v3, %v1943_v39  ;;  %v5971_v14 = vrot.slane %v4515_v1, 7  ;;  %v4942_v57 = vsel %vm265_vm2, %v5972_v7, %v1500_v40  ;;  %v5975_v1 = vrot.slane %v4733_v33, 7 }
 0x2f4   : > { %v4907_v38 = vsel %vm265_vm2, %v1494_v26, %v5966_v52  ;;  %v4912_v54 = vsel %vm265_vm2, %v5967_v60, %v1494_v26  ;;  %v5969_v26 = vrot.slane %v4663_v10, 7  ;;  %v5970_v60 = vrot.slane %v4661_v49, 1 }
 0x2f5   : > { %v4937_v35 = vsel %vm265_vm2, %v1500_v40, %v5971_v14  ;;  %v5973_v10 = vrot.slane %v4572_v27, 7  ;;  %v5974_v49 = vrot.slane %v4570_v34, 1  ;;  %v5976_v50 = vrot.slane %v4729_v48, 1 }
 0x2f6   : > { %3132 = vrot.lane.b32.xlu0 %v5968_v46, %s3272_s19  ;;  %v4927_v52 = vsel %vm265_vm2, %v1512_v51, %v5969_v26  ;;  %v4932_v2 = vsel %vm265_vm2, %v5970_v60, %v1512_v51  ;;  %v4957_v51 = vsel %vm265_vm2, %v1521_v28, %v5975_v1  ;;  %v1509_v27 = vrot.slane %v4517_v45, 7 }
 0x2f7   : > { %v4947_v53 = vsel %vm265_vm2, %v1506_v13, %v5973_v10  ;;  %v4952_v39 = vsel %vm265_vm2, %v5974_v49, %v1506_v13  ;;  %v4962_v40 = vsel %vm265_vm2, %v5976_v50, %v1521_v28  ;;  %v1515_v7 = vrot.slane %v4652_v36, 7 }
 0x2f8   : > { %v1530_v3 = vrot.slane %v4806_v22, 7  ;;  %v1518_v34 = vrot.slane %v4521_v42, 7  ;;  %v1524_v13 = vrot.slane %v4682_v9, 7  ;;  %v1936_v46 = vrot.slane %v4842_v44, 7 }
 0x2f9   : > { %v1527_v26 = vrot.slane %v4525_v18, 7  ;;  %v5977_v60 = vpack.i.bf16 %v4679_v62, %v4674_v55  ;;  %v5978_v28 = vpack.i.bf16 %v4725_v5, %v4717_v17  ;;  %v5979_v14 = vrot.slane %v4519_v21, 7 }
 0x2fa   : > { %v5980_v49 = vrot.slane %v4517_v45, 1  ;;  %v5981_v50 = vrot.slane %v4659_v29, 7  ;;  %v1533_v62 = vrot.slane %v4787_v24, 7  ;;  %v5982_v17 = vrot.slane %v4652_v36, 1 }
 0x2fb   : > { %3152 = vrot.lane.b32.xlu1 %v5977_v60, %s3272_s19  ;;  %3142 = vrot.lane.b32.xlu2 %v5978_v28, %s3272_s19  ;;  %v4982_v10 = vsel %vm265_vm2, %v1509_v27, %v5979_v14  ;;  %v5001_v21 = vsel %vm265_vm2, %v1530_v3, %v1531_v43  ;;  %v5983_v45 = vrot.slane %v4806_v22, 1  ;;  %v5984_v29 = vrot.slane %v4523_v19, 7 }
 0x2fc   : > { %v4987_v1 = vsel %vm265_vm2, %v5980_v49, %v1509_v27  ;;  %v4992_v55 = vsel %vm265_vm2, %v1515_v7, %v5981_v50  ;;  %v4998_v5 = vsel %vm265_vm2, %v5982_v17, %v1515_v7  ;;  %v5985_v28 = vrot.slane %v4521_v42, 1 }
 0x2fd   : > { %v5006_v27 = vsel %vm265_vm2, %v5983_v45, %v1530_v3  ;;  %v5011_v60 = vsel %vm265_vm2, %v1518_v34, %v5984_v29  ;;  %v5986_v7 = vrot.slane %v4695_v20, 7  ;;  %v5987_v14 = vrot.slane %v4682_v9, 1 }
 0x2fe   : > { %v5016_v36 = vsel %vm265_vm2, %v5985_v28, %v1518_v34  ;;  %v5029_v49 = vsel %vm265_vm2, %v1936_v46, %v1937_v0  ;;  %v5032_v50 = vsel %vm265_vm2, %v1933_v58, %v1936_v46  ;;  %v5988_v17 = vrot.slane %v4527_v56, 7 }
 0x2ff   : > { %v5021_v43 = vsel %vm265_vm2, %v1524_v13, %v5986_v7  ;;  %v5026_v3 = vsel %vm265_vm2, %v5987_v14, %v1524_v13  ;;  %v5989_v45 = vrot.slane %v4525_v18, 1  ;;  %v5990_v28 = vrot.slane %v4804_v16, 7 }
 0x300   : > { %v5037_v34 = vsel %vm265_vm2, %v1527_v26, %v5988_v17  ;;  %v5991_v58 = vpack.i.bf16 %v4523_v19, %v4521_v42  ;;  %v5992_v0 = vrot.slane %v4787_v24, 1  ;;  %v1536_v7 = vrot.slane %v4529_v47, 7 }
 0x301   : > { %v5042_v29 = vsel %vm265_vm2, %v5989_v45, %v1527_v26  ;;  %v5047_v13 = vsel %vm265_vm2, %v1533_v62, %v5990_v28  ;;  %v5993_v26 = vrot.slane %v4531_v6, 7  ;;  %v5994_v17 = vrot.slane %v4529_v47, 1 }
 0x302   : > { %3147 = vrot.lane.b32.xlu0 %v5991_v58, %s3271_s18  ;;  %v5056_v46 = vsel %vm265_vm2, %v5992_v0, %v1533_v62  ;;  %v5995_v42 = vpack.i.bf16 %v4695_v20, %v4682_v9  ;;  %v5996_v19 = vpack.i.bf16 %v4733_v33, %v4729_v48  ;;  %v5997_v62 = vpack.i.bf16 %v4777_v61, %v4772_v25  ;;  %v6008_v58 = vld [vmem:[#allocation3_spill] sm:$0xff] }
 0x303   : > { %v5062_v14 = vsel %vm265_vm2, %v1536_v7, %v5993_v26  ;;  %v5067_v45 = vsel %vm265_vm2, %v5994_v17, %v1536_v7  ;;  %v5998_v28 = vpack.i.bf16 %v4755_v59, %v4750_v30  ;;  %v5999_v20 = vpack.i.bf16 %v4765_v41, %v4760_v31  ;;  %v6009_v7 = vld [vmem:[#allocation2_spill] sm:$0xff] }
 0x304   : > { %3167 = vrot.lane.b32.xlu1 %v5995_v42, %s3271_s18  ;;  %3157 = vrot.lane.b32.xlu2 %v5996_v19, %s3271_s18  ;;  %v6000_v33 = vpack.i.bf16 %v4527_v56, %v4525_v18  ;;  %v6001_v25 = vpack.i.bf16 %v4804_v16, %v4787_v24  ;;  %v6002_v59 = vpack.i.bf16 %v4811_v15, %v4806_v22 }
 0x305   : > { %v6003_v30 = vpack.i.bf16 %v4852_v37, %v4849_v32  ;;  %v6004_v18 = vpack.i.bf16 %v4821_v11, %v4816_v23  ;;  %v6005_v56 = vpack.i.bf16 %v4862_v12, %v4857_v8  ;;  %v6006_v24 = vpack.i.bf16 %v4531_v6, %v4529_v47 }
 0x306   : > { %v6007_v9 = vpack.i.bf16 %v4868_v63, %v4842_v44 }
 0x30a   : > { %3162 = vrot.lane.b32.xlu0 %v5997_v62, %s3272_s19 }
 0x30c   : > { %3182 = vrot.lane.b32.xlu1 %v5998_v28, %s3272_s19  ;;  %3172 = vrot.lane.b32.xlu2 %v5999_v20, %s3272_s19 }
 0x312   : > { %3177 = vrot.lane.b32.xlu0 %v6000_v33, %s3271_s18 }
 0x314   : > { %3197 = vrot.lane.b32.xlu1 %v6001_v25, %s3271_s18  ;;  %3187 = vrot.lane.b32.xlu2 %v6002_v59, %s3271_s18 }
 0x31a   : > { %3192 = vrot.lane.b32.xlu0 %v6003_v30, %s3272_s19 }
 0x31c   : > { %3212 = vrot.lane.b32.xlu1 %v6004_v18, %s3272_s19  ;;  %3202 = vrot.lane.b32.xlu2 %v6005_v56, %s3272_s19 }
 0x322   : > { %3207 = vrot.lane.b32.xlu0 %v6006_v24, %s3271_s18 }
 0x324   : > { %3217 = vrot.lane.b32.xlu2 %v6007_v9, %s3271_s18 }
 0x32a   : > { %3222 = vrot.lane.b32.xlu0 %v3221_v4, %s3272_s19 }
 0x32c   : > { %v3068_v41 = vpop.permute.xlu2 %3067 }
 0x32d   : > { %v3070_v8 = vunpack.i.h.bf16 %v3068_v41  ;;  %v3069_v15 = vunpack.i.l.bf16 %v3068_v41 }
 0x32f   : > { %v1856_v0 = vsel %vm627_vm3, %v6008_v58, %v3069_v15  ;;  %v1857_v26 = vsel %vm627_vm3, %v6009_v7, %v3070_v8 }
 0x334   : > { %v3083_v22 = vpop.permute.xlu2 %3082 }
 0x335   : > { %v3085_v23 = vunpack.i.h.bf16 %v3083_v22  ;;  %v3084_v11 = vunpack.i.l.bf16 %v3083_v22 }
 0x33c   : > { %v3098_v48 = vpop.permute.xlu2 %3097 }
 0x33d   : > { %v3100_v22 = vunpack.i.h.bf16 %v3098_v48 }
 0x344   : > { %v3078_v31 = vpop.permute.xlu1 %3077  ;;  %v3113_v19 = vpop.permute.xlu2 %3112 }
 0x345   : > { %v3080_v61 = vunpack.i.h.bf16 %v3078_v31  ;;  %v3079_v16 = vunpack.i.l.bf16 %v3078_v31  ;;  %v3099_v31 = vunpack.i.l.bf16 %v3098_v48  ;;  %v3114_v48 = vunpack.i.l.bf16 %v3113_v19 }
 0x347   : > { %v1854_v47 = vsel %vm627_vm3, %v4912_v54, %v3079_v16  ;;  %v1855_v6 = vsel %vm627_vm3, %v4907_v38, %v3080_v61 }
 0x348   : > { %v3073_v63 = vpop.permute.xlu0 %3072  ;;  %v1884_v44 = vsel %vm658_vm4, %v1854_v47, %v3084_v11  ;;  %v1885_v37 = vsel %vm658_vm4, %v1855_v6, %v3085_v23  ;;  %v6010_v11 = vld [vmem:[#allocation4_spill] sm:$0xff]  ;;  %v6011_v6 = vld [vmem:[#allocation5_spill] sm:$0xff] }
 0x349   : > { %v3075_v32 = vunpack.i.h.bf16 %v3073_v63  ;;  %v3074_v12 = vunpack.i.l.bf16 %v3073_v63  ;;  %v5128_v4 = vpack.c.bf16 %v1885_v37, %v1884_v44  ;;  %v1861_v47 = vsel %vm627_vm3, %v6010_v11, %v3100_v22 }
 0x34a   : > { %v1860_v63 = vsel %vm627_vm3, %v6011_v6, %v3099_v31  ;;  %v3115_v44 = vunpack.i.h.bf16 %v3113_v19 }
 0x34b   : > { %v1887_v54 = vsel %vm658_vm4, %v1857_v26, %v3075_v32  ;;  %v1886_v17 = vsel %vm658_vm4, %v1856_v0, %v3074_v12  ;;  %2846 = vmatmul.msk.bf16.vlgmr.msrb.gmra.mxu0 %vm747_vm5, %v5128_v4  ;;  %2868 = vmatmul.msk.bf16.vlgmr.msrb.gmra.mxu1 %vm747_vm5, %v5128_v4 }
 0x34c   : > { %v1915_v38 = vpack.c.bf16 %v1887_v54, %v1886_v17  ;;  %v3093_v42 = vpop.permute.xlu1 %3092  ;;  %v3128_v16 = vpop.permute.xlu2 %3127 }
 0x34d   : > { %v3095_v33 = vunpack.i.h.bf16 %v3093_v42  ;;  %v3094_v25 = vunpack.i.l.bf16 %v3093_v42  ;;  %v3130_v42 = vunpack.i.h.bf16 %v3128_v16  ;;  %v3129_v19 = vunpack.i.l.bf16 %v3128_v16 }
 0x34e   : > { %2826 = vmatmul.msk.bf16.vlgmr.msrb.gmra.mxu3 %vm747_vm5, %v1915_v38 }
 0x350   : > { %v3088_v62 = vpop.permute.xlu0 %3087 }
 0x351   : > { %v3090_v28 = vunpack.i.h.bf16 %v3088_v62  ;;  %v3089_v20 = vunpack.i.l.bf16 %v3088_v62 }
 0x353   : > { %v1859_v59 = vsel %vm627_vm3, %v4937_v35, %v3090_v28  ;;  %v1858_v30 = vsel %vm627_vm3, %v4942_v57, %v3089_v20 }
 0x354   : > { %v3108_v18 = vpop.permute.xlu1 %3107  ;;  %v1888_v56 = vsel %vm658_vm4, %v1858_v30, %v3094_v25  ;;  %v1889_v24 = vsel %vm658_vm4, %v1859_v59, %v3095_v33  ;;  %v1867_v59 = vsel %vm627_vm3, %v4927_v52, %v3130_v42  ;;  %v1866_v30 = vsel %vm627_vm3, %v4932_v2, %v3129_v19 }
 0x355   : > { %v3110_v9 = vunpack.i.h.bf16 %v3108_v18  ;;  %v3109_v41 = vunpack.i.l.bf16 %v3108_v18  ;;  %v5147_v61 = vpack.c.bf16 %v1889_v24, %v1888_v56  ;;  %v3143_v26 = vpop.permute.xlu2 %3142 }
 0x357   : > { %v1863_v15 = vsel %vm627_vm3, %v4947_v53, %v3110_v9  ;;  %v1862_v35 = vsel %vm627_vm3, %v4952_v39, %v3109_v41 }
 0x358   : > { %v3103_v8 = vpop.permute.xlu0 %3102  ;;  %v1892_v12 = vsel %vm658_vm4, %v1862_v35, %v3114_v48  ;;  %v1893_v58 = vsel %vm658_vm4, %v1863_v15, %v3115_v44  ;;  %v3145_v35 = vunpack.i.h.bf16 %v3143_v26 }
 0x359   : > { %v3105_v57 = vunpack.i.h.bf16 %v3103_v8  ;;  %v3104_v23 = vunpack.i.l.bf16 %v3103_v8  ;;  %v5168_v0 = vpack.c.bf16 %v1893_v58, %v1892_v12 }
 0x35b   : > { %2847 = vmatmul.msk.bf16.gmra.mxu0 %vm747_vm5, %v1915_v38  ;;  %2869 = vmatmul.msk.bf16.gmra.mxu1 %vm747_vm5, %v5147_v61  ;;  %v1890_v53 = vsel %vm658_vm4, %v1860_v63, %v3104_v23  ;;  %v1891_v37 = vsel %vm658_vm4, %v1861_v47, %v3105_v57  ;;  %v3144_v57 = vunpack.i.l.bf16 %v3143_v26 }
 0x35c   : > { %v3123_v39 = vpop.permute.xlu1 %3122  ;;  %v5162_v32 = vpack.c.bf16 %v1891_v37, %v1890_v53 }
 0x35d   : > { %v3125_v18 = vunpack.i.h.bf16 %v3123_v39  ;;  %v3124_v56 = vunpack.i.l.bf16 %v3123_v39 }
 0x35e   : > { %2827 = vmatmul.msk.bf16.gmra.mxu3 %vm747_vm5, %v5128_v4  ;;  %v3158_v24 = vpop.permute.xlu2 %3157 }
 0x35f   : > { %v3160_v11 = vunpack.i.h.bf16 %v3158_v24  ;;  %v3159_v47 = vunpack.i.l.bf16 %v3158_v24 }
 0x360   : > { %v3118_v7 = vpop.permute.xlu0 %3117 }
 0x361   : > { %v3120_v17 = vunpack.i.h.bf16 %v3118_v7  ;;  %v3119_v38 = vunpack.i.l.bf16 %v3118_v7 }
 0x363   : > { %v1865_v28 = vsel %vm627_vm3, %v4982_v10, %v3120_v17  ;;  %v1864_v20 = vsel %vm627_vm3, %v4987_v1, %v3119_v38 }
 0x364   : > { %v3138_v54 = vpop.permute.xlu1 %3137  ;;  %v1894_v52 = vsel %vm658_vm4, %v1864_v20, %v3124_v56  ;;  %v1895_v1 = vsel %vm658_vm4, %v1865_v28, %v3125_v18 }
 0x365   : > { %v5190_v22 = vpack.c.bf16 %v1895_v1, %v1894_v52  ;;  %v3140_v31 = vunpack.i.h.bf16 %v3138_v54  ;;  %v3139_v16 = vunpack.i.l.bf16 %v3138_v54 }
 0x366   : > { %v3173_v23 = vpop.permute.xlu2 %3172 }
 0x367   : > { %v1868_v15 = vsel %vm627_vm3, %v4998_v5, %v3139_v16  ;;  %v1872_v5 = vsel %vm627_vm3, %v4962_v40, %v3159_v47 }
 0x368   : > { %v3133_v62 = vpop.permute.xlu0 %3132  ;;  %v1898_v6 = vsel %vm658_vm4, %v1868_v15, %v3144_v57 }
 0x369   : > { %v3135_v33 = vunpack.i.h.bf16 %v3133_v62  ;;  %v3134_v25 = vunpack.i.l.bf16 %v3133_v62 }
 0x36b   : > { %v1897_v9 = vsel %vm658_vm4, %v1867_v59, %v3135_v33  ;;  %v1896_v41 = vsel %vm658_vm4, %v1866_v30, %v3134_v25  ;;  %2848 = vmatmul.msk.bf16.gmra.mxu0 %vm747_vm5, %v5128_v4  ;;  %2870 = vmatmul.msk.bf16.gmra.mxu1 %vm747_vm5, %v5162_v32  ;;  %v1869_v4 = vsel %vm627_vm3, %v4992_v55, %v3140_v31  ;;  %v3175_v59 = vunpack.i.h.bf16 %v3173_v23 }
 0x36c   : > { %v5184_v10 = vpack.c.bf16 %v1897_v9, %v1896_v41  ;;  %v1899_v63 = vsel %vm658_vm4, %v1869_v4, %v3145_v35  ;;  %v1873_v55 = vsel %vm627_vm3, %v4957_v51, %v3160_v11  ;;  %v3174_v30 = vunpack.i.l.bf16 %v3173_v23 }
 0x36d   : > { %v3153_v2 = vpop.permute.xlu1 %3152  ;;  %v5198_v44 = vpack.c.bf16 %v1899_v63, %v1898_v6 }
 0x36e   : > { %2828 = vmatmul.msk.bf16.gmra.mxu3 %vm747_vm5, %v5147_v61  ;;  %v3155_v17 = vunpack.i.h.bf16 %v3153_v2  ;;  %v3154_v38 = vunpack.i.l.bf16 %v3153_v2  ;;  %v3188_v42 = vpop.permute.xlu2 %3187 }
 0x36f   : > { %v3190_v18 = vunpack.i.h.bf16 %v3188_v42  ;;  %v3189_v56 = vunpack.i.l.bf16 %v3188_v42 }
 0x374   : > { %v3148_v8 = vpop.permute.xlu0 %3147 }
 0x375   : > { %v3150_v12 = vunpack.i.h.bf16 %v3148_v8  ;;  %v3149_v58 = vunpack.i.l.bf16 %v3148_v8 }
 0x376   : > { %v3168_v48 = vpop.permute.xlu1 %3167  ;;  %v3203_v1 = vpop.permute.xlu2 %3202 }
 0x377   : > { %v1871_v51 = vsel %vm627_vm3, %v5011_v60, %v3150_v12  ;;  %v1870_v40 = vsel %vm627_vm3, %v5016_v36, %v3149_v58  ;;  %v3170_v19 = vunpack.i.h.bf16 %v3168_v48  ;;  %v3169_v62 = vunpack.i.l.bf16 %v3168_v48 }
 0x378   : > { %v1900_v28 = vsel %vm658_vm4, %v1870_v40, %v3154_v38  ;;  %v1901_v20 = vsel %vm658_vm4, %v1871_v51, %v3155_v17 }
 0x379   : > { %v5220_v25 = vpack.c.bf16 %v1901_v20, %v1900_v28  ;;  %v1875_v60 = vsel %vm627_vm3, %v5021_v43, %v3170_v19  ;;  %v1874_v36 = vsel %vm627_vm3, %v5026_v3, %v3169_v62  ;;  %v1879_v43 = vsel %vm627_vm3, %v5001_v21, %v3190_v18 }
 0x37a   : > { %v1904_v24 = vsel %vm658_vm4, %v1874_v36, %v3174_v30  ;;  %v1905_v9 = vsel %vm658_vm4, %v1875_v60, %v3175_v59  ;;  %v1878_v3 = vsel %vm627_vm3, %v5006_v27, %v3189_v56 }
 0x37b   : > { %2849 = vmatmul.msk.bf16.gmra.mxu0 %vm747_vm5, %v5147_v61  ;;  %2871 = vmatmul.msk.bf16.gmra.mxu1 %vm747_vm5, %v5168_v0  ;;  %v5228_v41 = vpack.c.bf16 %v1905_v9, %v1904_v24 }
 0x37c   : > { %v3163_v53 = vpop.permute.xlu0 %3162 }
 0x37d   : > { %v3165_v37 = vunpack.i.h.bf16 %v3163_v53  ;;  %v3164_v39 = vunpack.i.l.bf16 %v3163_v53 }
 0x37e   : > { %2829 = vmatmul.msk.bf16.gmra.mxu3 %vm747_vm5, %v5162_v32  ;;  %v3183_v33 = vpop.permute.xlu1 %3182 }
 0x37f   : > { %v1903_v7 = vsel %vm658_vm4, %v1873_v55, %v3165_v37  ;;  %v1902_v26 = vsel %vm658_vm4, %v1872_v5, %v3164_v39  ;;  %v3185_v23 = vunpack.i.h.bf16 %v3183_v33  ;;  %v3184_v11 = vunpack.i.l.bf16 %v3183_v33  ;;  %v3218_v37 = vpop.permute.xlu2 %3217 }
 0x380   : > { %v5210_v54 = vpack.c.bf16 %v1903_v7, %v1902_v26  ;;  %v3205_v39 = vunpack.i.h.bf16 %v3203_v1  ;;  %v3204_v55 = vunpack.i.l.bf16 %v3203_v1  ;;  %v3220_v5 = vunpack.i.h.bf16 %v3218_v37 }
 0x381   : > { %v3219_v12 = vunpack.i.l.bf16 %v3218_v37 }
 0x382   : > { %v1961_v38 = vsel %vm627_vm3, %v5029_v49, %v3220_v5 }
 0x384   : > { %v3178_v61 = vpop.permute.xlu0 %3177 }
 0x385   : > { %v3180_v16 = vunpack.i.h.bf16 %v3178_v61  ;;  %v3179_v8 = vunpack.i.l.bf16 %v3178_v61 }
 0x386   : > { %v3198_v35 = vpop.permute.xlu1 %3197 }
 0x387   : > { %v1877_v21 = vsel %vm627_vm3, %v5037_v34, %v3180_v16  ;;  %v1876_v27 = vsel %vm627_vm3, %v5042_v29, %v3179_v8  ;;  %v3200_v47 = vunpack.i.h.bf16 %v3198_v35  ;;  %v3199_v6 = vunpack.i.l.bf16 %v3198_v35 }
 0x388   : > { %v1906_v63 = vsel %vm658_vm4, %v1876_v27, %v3184_v11  ;;  %v1907_v48 = vsel %vm658_vm4, %v1877_v21, %v3185_v23 }
 0x389   : > { %v5250_v53 = vpack.c.bf16 %v1907_v48, %v1906_v63  ;;  %v1881_v34 = vsel %vm627_vm3, %v5047_v13, %v3200_v47  ;;  %v1880_v29 = vsel %vm627_vm3, %v5056_v46, %v3199_v6  ;;  %v1960_v13 = vsel %vm627_vm3, %v5032_v50, %v3219_v12 }
 0x38a   : > { %v1910_v58 = vsel %vm658_vm4, %v1880_v29, %v3204_v55  ;;  %v1911_v7 = vsel %vm658_vm4, %v1881_v34, %v3205_v39 }
 0x38b   : > { %2850 = vmatmul.msk.bf16.gmra.mxu0 %vm747_vm5, %v5162_v32  ;;  %2872 = vmatmul.msk.bf16.gmra.mxu1 %vm747_vm5, %v5190_v22  ;;  %v5258_v26 = vpack.c.bf16 %v1911_v7, %v1910_v58 }
 0x38c   : > { %v3193_v52 = vpop.permute.xlu0 %3192 }
 0x38d   : > { %v3195_v2 = vunpack.i.h.bf16 %v3193_v52  ;;  %v3194_v31 = vunpack.i.l.bf16 %v3193_v52 }
 0x38e   : > { %2830 = vmatmul.msk.bf16.gmra.mxu3 %vm747_vm5, %v5168_v0  ;;  %v3213_v61 = vpop.permute.xlu1 %3212 }
 0x38f   : > { %v1909_v4 = vsel %vm658_vm4, %v1879_v43, %v3195_v2  ;;  %v1908_v15 = vsel %vm658_vm4, %v1878_v3, %v3194_v31  ;;  %v3215_v20 = vunpack.i.h.bf16 %v3213_v61  ;;  %v3214_v33 = vunpack.i.l.bf16 %v3213_v61 }
 0x390   : > { %v5240_v57 = vpack.c.bf16 %v1909_v4, %v1908_v15 }
 0x394   : > { %v3208_v32 = vpop.permute.xlu0 %3207 }
 0x395   : > { %v3210_v46 = vunpack.i.h.bf16 %v3208_v32  ;;  %v3209_v42 = vunpack.i.l.bf16 %v3208_v32 }
 0x397   : > { %v1883_v49 = vsel %vm627_vm3, %v5062_v14, %v3210_v46  ;;  %v1882_v50 = vsel %vm627_vm3, %v5067_v45, %v3209_v42 }
 0x398   : > { %v1912_v60 = vsel %vm658_vm4, %v1882_v50, %v3214_v33 }
 0x39b   : > { %2851 = vmatmul.msk.bf16.gmra.mxu0 %vm747_vm5, %v5168_v0  ;;  %2873 = vmatmul.msk.bf16.gmra.mxu1 %vm747_vm5, %v5184_v10  ;;  %v1913_v0 = vsel %vm658_vm4, %v1883_v49, %v3215_v20 }
 0x39c   : > { %v3223_v51 = vpop.permute.xlu0 %3222  ;;  %v5280_v36 = vpack.c.bf16 %v1913_v0, %v1912_v60 }
 0x39d   : > { %v3225_v40 = vunpack.i.h.bf16 %v3223_v51  ;;  %v3224_v17 = vunpack.i.l.bf16 %v3223_v51 }
 0x39e   : > { %2831 = vmatmul.msk.bf16.gmra.mxu3 %vm747_vm5, %v5190_v22 }
 0x39f   : > { %v1963_v19 = vsel %vm658_vm4, %v1961_v38, %v3225_v40  ;;  %v1962_v62 = vsel %vm658_vm4, %v1960_v13, %v3224_v17 }
 0x3a0   : > { %v5270_v28 = vpack.c.bf16 %v1963_v19, %v1962_v62 }
 0x3ab   : > { %2852 = vmatmul.msk.bf16.gmra.mxu0 %vm747_vm5, %v5190_v22  ;;  %2874 = vmatmul.msk.bf16.gmra.mxu1 %vm747_vm5, %v5198_v44 }
 0x3ae   : > { %2832 = vmatmul.msk.bf16.gmra.mxu3 %vm747_vm5, %v5184_v10 }
 0x3bb   : > { %2853 = vmatmul.msk.bf16.gmra.mxu0 %vm747_vm5, %v5184_v10  ;;  %2875 = vmatmul.msk.bf16.gmra.mxu1 %vm747_vm5, %v5220_v25 }
 0x3be   : > { %2833 = vmatmul.msk.bf16.gmra.mxu3 %vm747_vm5, %v5198_v44 }
 0x3c8   : > { %v2130_v14 = vpop.f32.mrf.mxu0  ;;  %v2230_v45 = vpop.f32.mrf.mxu1 }
 0x3cb   : > { %2854 = vmatmul.msk.bf16.gmra.mxu0 %vm747_vm5, %v5198_v44  ;;  %2876 = vmatmul.msk.bf16.gmra.mxu1 %vm747_vm5, %v5210_v54 }
 0x3ce   : > { %2834 = vmatmul.msk.bf16.gmra.mxu3 %vm747_vm5, %v5220_v25 }
 0x3d0   : > { %v2132_v22 = vpop.f32.mrf.mxu0  ;;  %v2232_v59 = vpop.f32.mrf.mxu1 }
 0x3d1   : > { %v2033_v10 = vpop.f32.mrf.mxu3 }
 0x3d2   : > { %v2131_v30 = vadd.f32 %v2130_v14, %v2033_v10 }
 0x3d4   : > { %v5300_v18 = vadd.f32 %v2230_v45, %v2131_v30 }
 0x3d8   : > { %v2135_v56 = vpop.f32.mrf.mxu0  ;;  %v2235_v24 = vpop.f32.mrf.mxu1 }
 0x3d9   : > { %v2035_v9 = vpop.f32.mrf.mxu3 }
 0x3da   : > { %v2133_v52 = vadd.f32 %v2132_v22, %v2035_v9 }
 0x3db   : > { %2855 = vmatmul.msk.bf16.gmra.mxu0 %vm747_vm5, %v5220_v25  ;;  %2877 = vmatmul.msk.bf16.gmra.mxu1 %vm747_vm5, %v5228_v41 }
 0x3dc   : > { %v5306_v44 = vadd.f32 %v2232_v59, %v2133_v52 }
 0x3de   : > { %2835 = vmatmul.msk.bf16.gmra.mxu3 %vm747_vm5, %v5210_v54 }
 0x3e0   : > { %v2137_v1 = vpop.f32.mrf.mxu0  ;;  %v2237_v2 = vpop.f32.mrf.mxu1 }
 0x3e1   : > { %v2038_v31 = vpop.f32.mrf.mxu3 }
 0x3e2   : > { %v2136_v43 = vadd.f32 %v2135_v56, %v2038_v31 }
 0x3e4   : > { %v5310_v3 = vadd.f32 %v2235_v24, %v2136_v43 }
 0x3e8   : > { %v2140_v16 = vpop.f32.mrf.mxu0  ;;  %v2240_v8 = vpop.f32.mrf.mxu1 }
 0x3e9   : > { %v2040_v4 = vpop.f32.mrf.mxu3 }
 0x3ea   : > { %v2138_v15 = vadd.f32 %v2137_v1, %v2040_v4 }
 0x3eb   : > { %2856 = vmatmul.msk.bf16.gmra.mxu0 %vm747_vm5, %v5210_v54  ;;  %2878 = vmatmul.msk.bf16.gmra.mxu1 %vm747_vm5, %v5250_v53 }
 0x3ec   : > { %v5316_v25 = vadd.f32 %v2237_v2, %v2138_v15 }
 0x3ee   : > { %2836 = vmatmul.msk.bf16.gmra.mxu3 %vm747_vm5, %v5228_v41 }
 0x3f0   : > { %v2142_v35 = vpop.f32.mrf.mxu0  ;;  %v2242_v21 = vpop.f32.mrf.mxu1 }
 0x3f1   : > { %v2043_v27 = vpop.f32.mrf.mxu3 }
 0x3f2   : > { %v2141_v23 = vadd.f32 %v2140_v16, %v2043_v27 }
 0x3f4   : > { %v5320_v11 = vadd.f32 %v2240_v8, %v2141_v23 }
 0x3f8   : > { %v2145_v47 = vpop.f32.mrf.mxu0  ;;  %v2245_v6 = vpop.f32.mrf.mxu1 }
 0x3f9   : > { %v2045_v32 = vpop.f32.mrf.mxu3 }
 0x3fa   : > { %v2143_v63 = vadd.f32 %v2142_v35, %v2045_v32 }
 0x3fb   : > { %2857 = vmatmul.msk.bf16.gmra.mxu0 %vm747_vm5, %v5228_v41  ;;  %2879 = vmatmul.msk.bf16.gmra.mxu1 %vm747_vm5, %v5240_v57 }
 0x3fc   : > { %v5326_v54 = vadd.f32 %v2242_v21, %v2143_v63 }
 0x3fe   : > { %2837 = vmatmul.msk.bf16.gmra.mxu3 %vm747_vm5, %v5250_v53 }
 0x400   : > { %v2147_v48 = vpop.f32.mrf.mxu0  ;;  %v2247_v37 = vpop.f32.mrf.mxu1 }
 0x401   : > { %v2048_v34 = vpop.f32.mrf.mxu3 }
 0x402   : > { %v2146_v29 = vadd.f32 %v2145_v47, %v2048_v34 }
 0x404   : > { %v5330_v39 = vadd.f32 %v2245_v6, %v2146_v29 }
 0x408   : > { %v2150_v55 = vpop.f32.mrf.mxu0  ;;  %v2250_v5 = vpop.f32.mrf.mxu1 }
 0x409   : > { %v2050_v12 = vpop.f32.mrf.mxu3 }
 0x40a   : > { %v2148_v58 = vadd.f32 %v2147_v48, %v2050_v12 }
 0x40b   : > { %2858 = vmatmul.msk.bf16.gmra.mxu0 %vm747_vm5, %v5250_v53  ;;  %2880 = vmatmul.msk.bf16.gmra.mxu1 %vm747_vm5, %v5258_v26 }
 0x40c   : > { %v5336_v41 = vadd.f32 %v2247_v37, %v2148_v58 }
 0x40e   : > { %2838 = vmatmul.msk.bf16.gmra.mxu3 %vm747_vm5, %v5240_v57 }
 0x410   : > { %v2152_v7 = vpop.f32.mrf.mxu0  ;;  %v2252_v51 = vpop.f32.mrf.mxu1 }
 0x411   : > { %v2053_v40 = vpop.f32.mrf.mxu3 }
 0x412   : > { %v2151_v17 = vadd.f32 %v2150_v55, %v2053_v40 }
 0x414   : > { %v5340_v38 = vadd.f32 %v2250_v5, %v2151_v17 }
 0x418   : > { %v2155_v13 = vpop.f32.mrf.mxu0  ;;  %v2255_v46 = vpop.f32.mrf.mxu1 }
 0x419   : > { %v2055_v42 = vpop.f32.mrf.mxu3 }
 0x41a   : > { %v2153_v19 = vadd.f32 %v2152_v7, %v2055_v42 }
 0x41b   : > { %2859 = vmatmul.msk.bf16.gmra.mxu0 %vm747_vm5, %v5240_v57  ;;  %2881 = vmatmul.msk.bf16.gmra.mxu1 %vm747_vm5, %v5280_v36 }
 0x41c   : > { %v5346_v53 = vadd.f32 %v2252_v51, %v2153_v19 }
 0x41e   : > { %2839 = vmatmul.msk.bf16.gmra.mxu3 %vm747_vm5, %v5258_v26 }
 0x420   : > { %v2157_v62 = vpop.f32.mrf.mxu0  ;;  %v2257_v61 = vpop.f32.mrf.mxu1 }
 0x421   : > { %v2058_v49 = vpop.f32.mrf.mxu3 }
 0x422   : > { %v2156_v50 = vadd.f32 %v2155_v13, %v2058_v49 }
 0x424   : > { %v5350_v20 = vadd.f32 %v2255_v46, %v2156_v50 }
 0x428   : > { %v2160_v33 = vpop.f32.mrf.mxu0  ;;  %v2260_v60 = vpop.f32.mrf.mxu1 }
 0x429   : > { %v2060_v0 = vpop.f32.mrf.mxu3 }
 0x42a   : > { %v2158_v14 = vadd.f32 %v2157_v62, %v2060_v0 }
 0x42b   : > { %2860 = vmatmul.msk.bf16.gmra.mxu0 %vm747_vm5, %v5258_v26  ;;  %2882 = vmatmul.msk.bf16.gmra.mxu1 %vm747_vm5, %v5270_v28 }
 0x42c   : > { %v5356_v57 = vadd.f32 %v2257_v61, %v2158_v14 }
 0x42e   : > { %2840 = vmatmul.msk.bf16.gmra.mxu3 %vm747_vm5, %v5280_v36 }
 0x430   : > { %v2162_v45 = vpop.f32.mrf.mxu0  ;;  %v2262_v22 = vpop.f32.mrf.mxu1 }
 0x431   : > { %v2063_v59 = vpop.f32.mrf.mxu3 }
 0x432   : > { %v2161_v10 = vadd.f32 %v2160_v33, %v2063_v59  ;;  %v2412_v59 = vmul.f32 %v5306_v44, %v5306_v44 }
 0x434   : > { %v5360_v30 = vadd.f32 %v2260_v60, %v2161_v10  ;;  %v2411_v10 = vmul.f32 %v5300_v18, %v5300_v18 }
 0x438   : > { %v2165_v56 = vpop.f32.mrf.mxu0  ;;  %v2265_v24 = vpop.f32.mrf.mxu1 }
 0x439   : > { %v2065_v9 = vpop.f32.mrf.mxu3 }
 0x43a   : > { %v2163_v52 = vadd.f32 %v2162_v45, %v2065_v9 }
 0x43b   : > { %2861 = vmatmul.msk.bf16.gmra.mxu0 %vm747_vm5, %v5280_v36  ;;  %2883 = vmatmul.msk.bf16.gmra.mxu1 %vm747_vm5, %v5280_v36 }
 0x43c   : > { %v5366_v26 = vadd.f32 %v2262_v22, %v2163_v52 }
 0x43e   : > { %2841 = vmatmul.msk.bf16.gmra.mxu3 %vm747_vm5, %v5270_v28 }
 0x440   : > { %v2167_v1 = vpop.f32.mrf.mxu0  ;;  %v2267_v2 = vpop.f32.mrf.mxu1 }
 0x441   : > { %v2068_v31 = vpop.f32.mrf.mxu3 }
 0x442   : > { %v2166_v43 = vadd.f32 %v2165_v56, %v2068_v31  ;;  %v2343_v56 = vsel %vm627_vm3, %v5306_v44, 0.0  ;;  %v2444_v31 = vsel %vm627_vm3, %v2412_v59, 0.0  ;;  %v2353_v59 = vsel %vm627_vm3, %v5330_v39, 0.0 }
 0x444   : > { %v5370_v16 = vadd.f32 %v2265_v24, %v2166_v43  ;;  %v2413_v24 = vmul.f32 %v5310_v3, %v5310_v3  ;;  %v2345_v43 = vsel %vm627_vm3, %v5310_v3, 0.0 }
 0x448   : > { %v2170_v8 = vpop.f32.mrf.mxu0  ;;  %v2270_v4 = vpop.f32.mrf.mxu1 }
 0x449   : > { %v2070_v15 = vpop.f32.mrf.mxu3 }
 0x44a   : > { %v2168_v35 = vadd.f32 %v2167_v1, %v2070_v15  ;;  %v2443_v15 = vsel %vm627_vm3, %v2411_v10, 0.0  ;;  %v2418_v10 = vmul.f32 %v5336_v41, %v5336_v41 }
 0x44c   : > { %v5372_v21 = vadd.f32 %v2267_v2, %v2168_v35  ;;  %v2342_v2 = vsel %vm627_vm3, %v5300_v18, 0.0  ;;  %v2446_v35 = vsel %vm627_vm3, %v2413_v24, 0.0 }
 0x450   : > { %v2172_v27 = vpop.f32.mrf.mxu0  ;;  %v2272_v23 = vpop.f32.mrf.mxu1 }
 0x451   : > { %v2073_v36 = vpop.f32.mrf.mxu3 }
 0x452   : > { %v2171_v47 = vadd.f32 %v2170_v8, %v2073_v36  ;;  %v2414_v8 = vmul.f32 %v5316_v25, %v5316_v25  ;;  %v2445_v36 = vadd.f32 %v2444_v31, %v2443_v15  ;;  %v2355_v31 = vsel %vm627_vm3, %v5336_v41, 0.0 }
 0x453   : > { %v2456_v15 = vsel %vm627_vm3, %v2418_v10, 0.0 }
 0x454   : > { %v5374_v6 = vadd.f32 %v2270_v4, %v2171_v47  ;;  %v2344_v4 = vadd.f32 %v2343_v56, %v2342_v2 }
 0x456   : > { %v2346_v47 = vadd.f32 %v2345_v43, %v2344_v4  ;;  %v2419_v43 = vmul.f32 %v5340_v38, %v5340_v38 }
 0x458   : > { %v2175_v32 = vpop.f32.mrf.mxu0  ;;  %v2275_v28 = vpop.f32.mrf.mxu1 }
 0x459   : > { %v2075_v63 = vpop.f32.mrf.mxu3 }
 0x45a   : > { %v2173_v48 = vadd.f32 %v2172_v27, %v2075_v63  ;;  %v2347_v27 = vsel %vm627_vm3, %v5316_v25, 0.0  ;;  %v2416_v63 = vmul.f32 %v5326_v54, %v5326_v54 }
 0x45c   : > { %v5376_v37 = vadd.f32 %v2272_v23, %v2173_v48  ;;  %v2415_v23 = vmul.f32 %v5320_v11, %v5320_v11  ;;  %v2447_v48 = vadd.f32 %v2446_v35, %v2445_v36  ;;  %v2357_v35 = vsel %vm627_vm3, %v5340_v38, 0.0 }
 0x460   : > { %v2177_v34 = vpop.f32.mrf.mxu0  ;;  %v2277_v29 = vpop.f32.mrf.mxu1 }
 0x461   : > { %v2078_v55 = vpop.f32.mrf.mxu3 }
 0x462   : > { %v2176_v5 = vadd.f32 %v2175_v32, %v2078_v55  ;;  %v2448_v32 = vsel %vm627_vm3, %v2414_v8, 0.0  ;;  %v2351_v55 = vsel %vm627_vm3, %v5326_v54, 0.0 }
 0x464   : > { %v5378_v12 = vadd.f32 %v2275_v28, %v2176_v5  ;;  %v2349_v28 = vsel %vm627_vm3, %v5320_v11, 0.0  ;;  %v2417_v5 = vmul.f32 %v5330_v39, %v5330_v39 }
 0x466   : > { %v2454_v2 = vsel %vm627_vm3, %v2417_v5, 0.0  ;;  %v2361_v5 = vsel %vm627_vm3, %v5350_v20, 0.0 }
 0x468   : > { %v2180_v58 = vpop.f32.mrf.mxu0  ;;  %v2280_v7 = vpop.f32.mrf.mxu1 }
 0x469   : > { %v2080_v51 = vpop.f32.mrf.mxu3 }
 0x46a   : > { %v2178_v40 = vadd.f32 %v2177_v34, %v2080_v51  ;;  %v2348_v34 = vadd.f32 %v2347_v27, %v2346_v47  ;;  %v2420_v27 = vmul.f32 %v5346_v53, %v5346_v53  ;;  %v2458_v47 = vsel %vm627_vm3, %v2419_v43, 0.0 }
 0x46c   : > { %v5380_v17 = vadd.f32 %v2277_v29, %v2178_v40  ;;  %v2450_v29 = vsel %vm627_vm3, %v2415_v23, 0.0  ;;  %v2350_v51 = vadd.f32 %v2349_v28, %v2348_v34  ;;  %v2421_v28 = vmul.f32 %v5350_v20, %v5350_v20 }
 0x46e   : > { %v2352_v24 = vadd.f32 %v2351_v55, %v2350_v51  ;;  %v2460_v55 = vsel %vm627_vm3, %v2420_v27, 0.0  ;;  %v2462_v10 = vsel %vm627_vm3, %v2421_v28, 0.0 }
 0x470   : > { %v5382_v13 = vpop.f32.mrf.mxu0  ;;  %v5384_v46 = vpop.f32.mrf.mxu1  ;;  %v2354_v4 = vadd.f32 %v2353_v59, %v2352_v24  ;;  %v2423_v24 = vmul.f32 %v5360_v30, %v5360_v30 }
 0x471   : > { %v2083_v42 = vpop.f32.mrf.mxu3 }
 0x472   : > { %v2181_v19 = vadd.f32 %v2180_v58, %v2083_v42  ;;  %v2356_v36 = vadd.f32 %v2355_v31, %v2354_v4  ;;  %v2424_v4 = vmul.f32 %v5366_v26, %v5366_v26  ;;  %v2466_v27 = vsel %vm627_vm3, %v2423_v24, 0.0 }
 0x474   : > { %v5386_v62 = vadd.f32 %v2280_v7, %v2181_v19  ;;  %v2449_v7 = vadd.f32 %v2448_v32, %v2447_v48  ;;  %v2452_v19 = vsel %vm627_vm3, %v2416_v63, 0.0  ;;  %v2359_v32 = vsel %vm627_vm3, %v5346_v53, 0.0 }
 0x475   : > { %v2358_v48 = vadd.f32 %v2357_v35, %v2356_v36  ;;  %v2425_v36 = vmul.f32 %v5370_v16, %v5370_v16 }
 0x476   : > { %v2451_v56 = vadd.f32 %v2450_v29, %v2449_v7  ;;  %v2422_v7 = vmul.f32 %v5356_v57, %v5356_v57 }
 0x478   : > { %v5388_v61 = vpop.f32.mrf.mxu0  ;;  %v5390_v49 = vpop.f32.mrf.mxu1  ;;  %v2453_v8 = vadd.f32 %v2452_v19, %v2451_v56  ;;  %v2360_v19 = vadd.f32 %v2359_v32, %v2358_v48  ;;  %v2363_v56 = vsel %vm627_vm3, %v5356_v57, 0.0  ;;  %v2464_v43 = vsel %vm627_vm3, %v2422_v7, 0.0 }
 0x479   : > { %v5392_v50 = vpop.f32.mrf.mxu3  ;;  %v2369_v48 = vsel %vm627_vm3, %v5370_v16, 0.0 }
 0x47a   : > { %v2455_v23 = vadd.f32 %v2454_v2, %v2453_v8  ;;  %v2362_v31 = vadd.f32 %v2361_v5, %v2360_v19  ;;  %v2365_v8 = vsel %vm627_vm3, %v5360_v30, 0.0  ;;  %v2470_v19 = vsel %vm627_vm3, %v2425_v36, 0.0 }
 0x47c   : > { %v2457_v63 = vadd.f32 %v2456_v15, %v2455_v23  ;;  %v2364_v35 = vadd.f32 %v2363_v56, %v2362_v31  ;;  %v2367_v23 = vsel %vm627_vm3, %v5366_v26, 0.0  ;;  %v2427_v56 = vmul.f32 %v5374_v6, %v5374_v6 }
 0x47d   : > { %v2428_v31 = vmul.f32 %v5376_v37, %v5376_v37 }
 0x47e   : > { %v2459_v51 = vadd.f32 %v2458_v47, %v2457_v63  ;;  %v2366_v32 = vadd.f32 %v2365_v8, %v2364_v35  ;;  %v2468_v63 = vsel %vm627_vm3, %v2424_v4, 0.0  ;;  %v2373_v4 = vsel %vm627_vm3, %v5374_v6, 0.0 }
 0x47f   : > { %v2474_v36 = vsel %vm627_vm3, %v2427_v56, 0.0 }
 0x480   : > { %v5394_v33 = vpop.f32.mrf.mxu0  ;;  %v5396_v60 = vpop.f32.mrf.mxu1  ;;  %v2461_v2 = vadd.f32 %v2460_v55, %v2459_v51  ;;  %v2426_v55 = vmul.f32 %v5372_v21, %v5372_v21  ;;  %v2368_v7 = vadd.f32 %v2367_v23, %v2366_v32  ;;  %v2429_v32 = vmul.f32 %v5378_v12, %v5378_v12 }
 0x481   : > { %v5398_v0 = vpop.f32.mrf.mxu3 }
 0x482   : > { %v2463_v15 = vadd.f32 %v2462_v10, %v2461_v2  ;;  %v2371_v10 = vsel %vm627_vm3, %v5372_v21, 0.0  ;;  %v2370_v2 = vadd.f32 %v2369_v48, %v2368_v7  ;;  %v2472_v8 = vsel %vm627_vm3, %v2426_v55, 0.0 }
 0x483   : > { %v2186_v23 = vadd.f32 %v5388_v61, %v5398_v0  ;;  %v2476_v55 = vsel %vm627_vm3, %v2428_v31, 0.0  ;;  %v2478_v56 = vsel %vm627_vm3, %v2429_v32, 0.0 }
 0x484   : > { %v2465_v47 = vadd.f32 %v2464_v43, %v2463_v15  ;;  %v2183_v15 = vadd.f32 %v5382_v13, %v5392_v50  ;;  %v2377_v13 = vsel %vm627_vm3, %v5378_v12, 0.0  ;;  %v2430_v50 = vmul.f32 %v5380_v17, %v5380_v17 }
 0x486   : > { %v2467_v5 = vadd.f32 %v2466_v27, %v2465_v47  ;;  %v2372_v27 = vadd.f32 %v2371_v10, %v2370_v2  ;;  %v2375_v47 = vsel %vm627_vm3, %v5376_v37, 0.0  ;;  %v5527_v61 = vadd.f32 %v5384_v46, %v2183_v15 }
 0x487   : > { %v5532_v10 = vadd.f32 %v5390_v49, %v2186_v23  ;;  %v2431_v2 = vmul.f32 %v5386_v62, %v5386_v62  ;;  %v2480_v49 = vsel %vm627_vm3, %v2430_v50, 0.0 }
 0x488   : > { %v5400_v14 = vpop.f32.mrf.mxu0  ;;  %v5402_v45 = vpop.f32.mrf.mxu1  ;;  %v2469_v24 = vadd.f32 %v2468_v63, %v2467_v5  ;;  %v2374_v48 = vadd.f32 %v2373_v4, %v2372_v27  ;;  %v2381_v4 = vsel %vm627_vm3, %v5386_v62, 0.0  ;;  %v2432_v15 = vmul.f32 %v5527_v61, %v5527_v61 }
 0x489   : > { %v5404_v22 = vpop.f32.mrf.mxu3 }
 0x48a   : > { %v2471_v35 = vadd.f32 %v2470_v19, %v2469_v24  ;;  %v2188_v0 = vadd.f32 %v5394_v33, %v5404_v22  ;;  %v2376_v19 = vadd.f32 %v2375_v47, %v2374_v48  ;;  %v2379_v24 = vsel %vm627_vm3, %v5380_v17, 0.0 }
 0x48c   : > { %v2473_v63 = vadd.f32 %v2472_v8, %v2471_v35  ;;  %v2378_v8 = vadd.f32 %v2377_v13, %v2376_v19  ;;  %v5549_v35 = vadd.f32 %v5396_v60, %v2188_v0  ;;  %v2385_v13 = vsel %vm627_vm3, %v5532_v10, 0.0 }
 0x48e   : > { %v2475_v7 = vadd.f32 %v2474_v36, %v2473_v63  ;;  %v2380_v23 = vadd.f32 %v2379_v24, %v2378_v8  ;;  %v2434_v50 = vmul.f32 %v5549_v35, %v5549_v35 }
 0x490   : > { %v5414_v9 = vpop.f32.mrf.mxu0  ;;  %v5416_v52 = vpop.f32.mrf.mxu1  ;;  %v2477_v31 = vadd.f32 %v2476_v55, %v2475_v7  ;;  %v2382_v60 = vadd.f32 %v2381_v4, %v2380_v23  ;;  %v2484_v55 = vsel %vm627_vm3, %v2432_v15, 0.0 }
 0x491   : > { %v5418_v1 = vpop.f32.mrf.mxu3 }
 0x492   : > { %v2191_v46 = vadd.f32 %v5400_v14, %v5418_v1  ;;  %v2479_v27 = vadd.f32 %v2478_v56, %v2477_v31  ;;  %v2433_v14 = vmul.f32 %v5532_v10, %v5532_v10 }
 0x494   : > { %v5557_v36 = vadd.f32 %v5402_v45, %v2191_v46  ;;  %v2481_v32 = vadd.f32 %v2480_v49, %v2479_v27 }
 0x498   : > { %v5443_v58 = vpop.f32.mrf.mxu0  ;;  %v5447_v42 = vpop.f32.mrf.mxu1 }
 0x499   : > { %v5445_v40 = vpop.f32.mrf.mxu3 }
 0x49a   : > { %v2193_v33 = vadd.f32 %v5414_v9, %v5445_v40  ;;  %v2482_v9 = vsel %vm627_vm3, %v2431_v2, 0.0  ;;  %v2383_v40 = vsel %vm627_vm3, %v5527_v61, 0.0 }
 0x49b   : > { %v2483_v0 = vadd.f32 %v2482_v9, %v2481_v32  ;;  %v2384_v7 = vadd.f32 %v2383_v40, %v2382_v60 }
 0x49c   : > { %v5562_v63 = vadd.f32 %v5416_v52, %v2193_v33  ;;  %v2435_v52 = vmul.f32 %v5557_v36, %v5557_v36 }
 0x49d   : > { %v2485_v24 = vadd.f32 %v2484_v55, %v2483_v0  ;;  %v2386_v2 = vadd.f32 %v2385_v13, %v2384_v7 }
 0x49e   : > { %v2436_v46 = vmul.f32 %v5562_v63, %v5562_v63 }
 0x4a0   : > { %v5471_v29 = vpop.f32.mrf.mxu0  ;;  %v5478_v59 = vpop.f32.mrf.mxu1 }
 0x4a1   : > { %v5469_v34 = vpop.f32.mrf.mxu3 }
 0x4a2   : > { %v2196_v47 = vadd.f32 %v5443_v58, %v5469_v34  ;;  %v2486_v58 = vsel %vm627_vm3, %v2433_v14, 0.0  ;;  %v2387_v34 = vsel %vm627_vm3, %v5549_v35, 0.0 }
 0x4a3   : > { %v2487_v33 = vadd.f32 %v2486_v58, %v2485_v24  ;;  %v2388_v49 = vadd.f32 %v2387_v34, %v2386_v2 }
 0x4a4   : > { %v5576_v19 = vadd.f32 %v5447_v42, %v2196_v47  ;;  %v2490_v42 = vsel %vm627_vm3, %v2435_v52, 0.0 }
 0x4a6   : > { %v2393_v9 = vsel %vm627_vm3, %v5576_v19, 0.0 }
 0x4a8   : > { %v2200_v51 = vpop.f32.mrf.mxu0  ;;  %v5507_v43 = vpop.f32.mrf.mxu1 }
 0x4a9   : > { %v2100_v28 = vpop.f32.mrf.mxu3 }
 0x4aa   : > { %v2198_v45 = vadd.f32 %v5471_v29, %v2100_v28  ;;  %v2488_v29 = vsel %vm627_vm3, %v2434_v50, 0.0  ;;  %v2389_v28 = vsel %vm627_vm3, %v5557_v36, 0.0 }
 0x4ab   : > { %v2489_v27 = vadd.f32 %v2488_v29, %v2487_v33  ;;  %v2390_v23 = vadd.f32 %v2389_v28, %v2388_v49 }
 0x4ac   : > { %v5584_v31 = vadd.f32 %v5478_v59, %v2198_v45  ;;  %v2492_v59 = vsel %vm627_vm3, %v2436_v46, 0.0 }
 0x4ad   : > { %v2491_v60 = vadd.f32 %v2490_v42, %v2489_v27 }
 0x4ae   : > { %v2438_v40 = vmul.f32 %v5584_v31, %v5584_v31  ;;  %v2395_v55 = vsel %vm627_vm3, %v5584_v31, 0.0 }
 0x4af   : > { %v2493_v45 = vadd.f32 %v2492_v59, %v2491_v60 }
 0x4b0   : > { %v2202_v22 = vpop.f32.mrf.mxu0  ;;  %v2302_v1 = vpop.f32.mrf.mxu1  ;;  %v2496_v7 = vsel %vm627_vm3, %v2438_v40, 0.0 }
 0x4b1   : > { %v2103_v5 = vpop.f32.mrf.mxu3 }
 0x4b2   : > { %v2201_v56 = vadd.f32 %v2200_v51, %v2103_v5  ;;  %v2391_v51 = vsel %vm627_vm3, %v5562_v63, 0.0  ;;  %v2437_v5 = vmul.f32 %v5576_v19, %v5576_v19 }
 0x4b4   : > { %v5592_v15 = vadd.f32 %v5507_v43, %v2201_v56  ;;  %v2494_v43 = vsel %vm627_vm3, %v2437_v5, 0.0 }
 0x4b5   : > { %v2495_v34 = vadd.f32 %v2494_v43, %v2493_v45 }
 0x4b6   : > { %v2439_v13 = vmul.f32 %v5592_v15, %v5592_v15 }
 0x4b7   : > { %v2497_v46 = vadd.f32 %v2496_v7, %v2495_v34 }
 0x4b8   : > { %v2205_v4 = vpop.f32.mrf.mxu0  ;;  %v2305_v14 = vpop.f32.mrf.mxu1  ;;  %v2498_v56 = vsel %vm627_vm3, %v2439_v13, 0.0 }
 0x4b9   : > { %v2105_v48 = vpop.f32.mrf.mxu3  ;;  %v2499_v42 = vadd.f32 %v2498_v56, %v2497_v46 }
 0x4ba   : > { %v2203_v8 = vadd.f32 %v2202_v22, %v2105_v48  ;;  %v2392_v48 = vadd.f32 %v2391_v51, %v2390_v23 }
 0x4bc   : > { %v5599_v47 = vadd.f32 %v2302_v1, %v2203_v8  ;;  %v2394_v0 = vadd.f32 %v2393_v9, %v2392_v48  ;;  %v2397_v1 = vsel %vm627_vm3, %v5592_v15, 0.0 }
 0x4be   : > { %v2440_v58 = vmul.f32 %v5599_v47, %v5599_v47  ;;  %v2396_v52 = vadd.f32 %v2395_v55, %v2394_v0  ;;  %v2399_v24 = vsel %vm627_vm3, %v5599_v47, 0.0 }
 0x4c0   : > { %v2398_v29 = vadd.f32 %v2397_v1, %v2396_v52  ;;  %v2207_v28 = vpop.f32.mrf.mxu0  ;;  %v2500_v33 = vsel %vm627_vm3, %v2440_v58, 0.0  ;;  %v2307_v5 = vpop.f32.mrf.mxu1 }
 0x4c1   : > { %v2108_v22 = vpop.f32.mrf.mxu3  ;;  %v2501_v59 = vadd.f32 %v2500_v33, %v2499_v42 }
 0x4c2   : > { %v2206_v32 = vadd.f32 %v2205_v4, %v2108_v22  ;;  %v2400_v51 = vadd.f32 %v2399_v24, %v2398_v29 }
 0x4c4   : > { %v5606_v50 = vadd.f32 %v2305_v14, %v2206_v32 }
 0x4c6   : > { %v2441_v2 = vmul.f32 %v5606_v50, %v5606_v50  ;;  %v2401_v49 = vsel %vm627_vm3, %v5606_v50, 0.0 }
 0x4c7   : > { %v2402_v14 = vadd.f32 %v2401_v49, %v2400_v51 }
 0x4c8   : > { %v2502_v27 = vsel %vm627_vm3, %v2441_v2, 0.0 }
 0x4c9   : > { %v2110_v8 = vpop.f32.mrf.mxu3  ;;  %v2503_v40 = vadd.f32 %v2502_v27, %v2501_v59  ;;  %v3230_v59 = vld [vmem:[%s5876_s2] sm:$0xf] }
 0x4ca   : > { %v2208_v4 = vadd.f32 %v2207_v28, %v2110_v8 }
 0x4cc   : > { %v5622_v23 = vadd.f32 %v2307_v5, %v2208_v4 }
 0x4ce   : > { %v2403_v22 = vsel %vm627_vm3, %v5622_v23, 0.0  ;;  %v2442_v9 = vmul.f32 %v5622_v23, %v5622_v23 }
 0x4cf   : > { %v2404_v32 = vadd.f32 %v2403_v22, %v2402_v14 }
 0x4d0   : > { %v2504_v60 = vsel %vm627_vm3, %v2442_v9, 0.0 }
 0x4d1   : > { %v2405_v48 = vrot.slane %v2404_v32, 4  ;;  %v2505_v43 = vadd.f32 %v2504_v60, %v2503_v40  ;;  %v5644_v60 = vperm.slane %v3230_v59, 3 }
 0x4d3   : > { %v2406_v55 = vadd.f32 %v2405_v48, %v2404_v32  ;;  %v2506_v13 = vrot.slane %v2505_v43, 4 }
 0x4d5   : > { %v2407_v45 = vrot.slane %v2406_v55, 2  ;;  %v2507_v0 = vadd.f32 %v2506_v13, %v2505_v43 }
 0x4d7   : > { %v2408_v7 = vadd.f32 %v2407_v45, %v2406_v55  ;;  %v2508_v1 = vrot.slane %v2507_v0, 2 }
 0x4d9   : > { %v2409_v58 = vrot.slane %v2408_v7, 1  ;;  %v2509_v34 = vadd.f32 %v2508_v1, %v2507_v0 }
 0x4db   : > { %v2410_v52 = vadd.f32 %v2409_v58, %v2408_v7  ;;  %v2510_v56 = vrot.slane %v2509_v34, 1 }
 0x4dd   : > { %v2511_v24 = vadd.f32 %v2510_v56, %v2509_v34  ;;  %v5629_v2 = vmul.f32 0.00390625, %v2410_v52 }
 0x4df   : > { %v2513_v46 = vmul.f32 0.00390625, %v2511_v24  ;;  %v2514_v29 = vmul.f32 %v5629_v2, %v5629_v2  ;;  %v2528_v9 = vsub.f32 %v5300_v18, %v5629_v2  ;;  %v2529_v40 = vsub.f32 %v5306_v44, %v5629_v2 }
 0x4e0   : > { %v2530_v32 = vsub.f32 %v5310_v3, %v5629_v2  ;;  %v2531_v48 = vsub.f32 %v5316_v25, %v5629_v2  ;;  %v2532_v43 = vsub.f32 %v5320_v11, %v5629_v2  ;;  %v2533_v44 = vsub.f32 %v5326_v54, %v5629_v2 }
 0x4e1   : > { %v2515_v28 = vsub.f32 %v2513_v46, %v2514_v29  ;;  %v2534_v3 = vsub.f32 %v5330_v39, %v5629_v2  ;;  %v2535_v11 = vsub.f32 %v5336_v41, %v5629_v2  ;;  %v2536_v0 = vsub.f32 %v5340_v38, %v5629_v2 }
 0x4e2   : > { %v2537_v34 = vsub.f32 %v5346_v53, %v5629_v2  ;;  %v2538_v41 = vsub.f32 %v5350_v20, %v5629_v2  ;;  %v2539_v56 = vsub.f32 %v5356_v57, %v5629_v2  ;;  %v2540_v53 = vsub.f32 %v5360_v30, %v5629_v2 }
 0x4e3   : > { %v2516_v8 = vadd.f32 1e-05, %v2515_v28  ;;  %v2541_v30 = vsub.f32 %v5366_v26, %v5629_v2  ;;  %v2543_v26 = vsub.f32 %v5372_v21, %v5629_v2 }
 0x4e5   : > { %3228 = vrsqrt.f32 %v2516_v8  ;;  %vm2523_vm10 = vweird.f32 %v2516_v8 }
 0x4eb   : > { %v3229_v33 = vpop.eup %3228 }
 0x4ec   : > { %v2518_v49 = vmul.f32 %v3229_v33, %v2516_v8  ;;  %vm2524_vm9 = vweird.f32 %v3229_v33  ;;  %v3231_v8 = vld [vmem:[%s3309_s17] sm:$0xff] }
 0x4ed   : > { %vm2525_vm11 = vmor %vm2523_vm10, %vm2524_vm9 }
 0x4ee   : > { %v2519_v4 = vmul.f32 %v3229_v33, %v2518_v49  ;;  %v3232_v49 = vld [vmem:[%s3309_s17 + $0x8] sm:$0xff] }
 0x4f0   : > { %v2520_v42 = vmul.f32 0.5, %v2519_v4 }
 0x4f2   : > { %v2521_v51 = vsub.f32 1.5, %v2520_v42  ;;  %v3233_v42 = vld [vmem:[%s3309_s17 + $0x10] sm:$0xff] }
 0x4f4   : > { %v2522_v5 = vmul.f32 %v3229_v33, %v2521_v51 }
 0x4f6   : > { %v2526_v27 = vsel %vm2525_vm11, %v3229_v33, %v2522_v5 }
 0x4f7   : > { %v2527_v14 = vmul.f32 %v3230_v59, %v2526_v27  ;;  %v3234_v59 = vld [vmem:[%s3309_s17 + $0x18] sm:$0xff] }
 0x4f9   : > { %v5636_v22 = vperm.slane %v2527_v14, 2 }
 0x4fb   : > { %v2561_v55 = vmul.f32 %v5636_v22, %v2528_v9  ;;  %v2562_v13 = vmul.f32 %v5636_v22, %v2529_v40  ;;  %v2563_v18 = vmul.f32 %v5636_v22, %v2530_v32  ;;  %v2564_v45 = vmul.f32 %v5636_v22, %v2531_v48  ;;  %v3235_v48 = vld [vmem:[%s3309_s17 + $0x20] sm:$0xff] }
 0x4fc   : > { %v2565_v25 = vmul.f32 %v5636_v22, %v2532_v43  ;;  %v2566_v7 = vmul.f32 %v5636_v22, %v2533_v44  ;;  %v2567_v1 = vmul.f32 %v5636_v22, %v2534_v3  ;;  %v2568_v38 = vmul.f32 %v5636_v22, %v2535_v11 }
 0x4fd   : > { %v2594_v54 = vadd.f32 %v5644_v60, %v2561_v55  ;;  %v2595_v58 = vadd.f32 %v5644_v60, %v2562_v13  ;;  %v2596_v39 = vadd.f32 %v5644_v60, %v2563_v18  ;;  %v2597_v52 = vadd.f32 %v5644_v60, %v2564_v45  ;;  %v3236_v18 = vld [vmem:[%s3309_s17 + $0x28] sm:$0xff] }
 0x4fe   : > { %v2569_v24 = vmul.f32 %v5636_v22, %v2536_v0  ;;  %v2598_v46 = vadd.f32 %v5644_v60, %v2565_v25  ;;  %v2570_v20 = vmul.f32 %v5636_v22, %v2537_v34  ;;  %v2571_v29 = vmul.f32 %v5636_v22, %v2538_v41  ;;  %v3237_v25 = vld [vmem:[%s3309_s17 + $0x30] sm:$0xff]  ;;  %v3239_v34 = vld [vmem:[%s3309_s17 + $0x40] sm:$0xff] }
 0x4ff   : > { %v2599_v57 = vadd.f32 %v5644_v60, %v2566_v7  ;;  %v2600_v28 = vadd.f32 %v5644_v60, %v2567_v1  ;;  %v2626_v33 = vadd.f32 %v3231_v8, %v2594_v54  ;;  %v2627_v4 = vadd.f32 %v3232_v49, %v2595_v58  ;;  %v3238_v1 = vld [vmem:[%s3309_s17 + $0x38] sm:$0xff] }
 0x500   : > { %v2628_v51 = vadd.f32 %v3233_v42, %v2596_v39  ;;  %v2572_v5 = vmul.f32 %v5636_v22, %v2539_v56  ;;  %v2601_v27 = vadd.f32 %v5644_v60, %v2568_v38  ;;  %v2629_v14 = vadd.f32 %v3234_v59, %v2597_v52  ;;  %v3240_v56 = vld [vmem:[%s3309_s17 + $0x48] sm:$0xff]  ;;  %v3242_v8 = vld [vmem:[%s3309_s17 + $0x58] sm:$0xff]  ;;  %v3243_v42 = vld [vmem:[%s3309_s17 + $0x60] sm:$0xff] }
 0x501   : > { %v2542_v9 = vsub.f32 %v5370_v16, %v5629_v2  ;;  %v2573_v40 = vmul.f32 %v5636_v22, %v2540_v53  ;;  %v2602_v32 = vadd.f32 %v5644_v60, %v2569_v24  ;;  %v2630_v43 = vadd.f32 %v3235_v48, %v2598_v46  ;;  %2658 = vst.msk [vmem:[%s5683_s27] sm:$0xff] %vm627_vm3, %v2626_v33 }
 0x502   : > { %v2574_v55 = vmul.f32 %v5636_v22, %v2541_v30  ;;  %v2603_v13 = vadd.f32 %v5644_v60, %v2570_v20  ;;  %v2631_v16 = vadd.f32 %v3236_v18, %v2599_v57  ;;  %2659 = vst.msk [vmem:[%s5683_s27 + $0x8] sm:$0xff] %vm627_vm3, %v2627_v4  ;;  %v2544_v44 = vsub.f32 %v5374_v6, %v5629_v2  ;;  %v3241_v20 = vld [vmem:[%s3309_s17 + $0x50] sm:$0xff] }
 0x503   : > { %v2575_v45 = vmul.f32 %v5636_v22, %v2542_v9  ;;  %v2604_v3 = vadd.f32 %v5644_v60, %v2571_v29  ;;  %v2632_v21 = vadd.f32 %v3237_v25, %v2600_v28  ;;  %2660 = vst.msk [vmem:[%s5683_s27 + $0x10] sm:$0xff] %vm627_vm3, %v2628_v51  ;;  %v2545_v11 = vsub.f32 %v5376_v37, %v5629_v2  ;;  %v3248_v25 = vld [vmem:[%s3309_s17 + $0x88] sm:$0xff] }
 0x504   : > { %v2576_v0 = vmul.f32 %v5636_v22, %v2543_v26  ;;  %v2605_v7 = vadd.f32 %v5644_v60, %v2572_v5  ;;  %v2633_v6 = vadd.f32 %v3238_v1, %v2601_v27  ;;  %2661 = vst.msk [vmem:[%s5683_s27 + $0x18] sm:$0xff] %vm627_vm3, %v2629_v14  ;;  %v2546_v54 = vsub.f32 %v5378_v12, %v5629_v2  ;;  %v3244_v27 = vld [vmem:[%s3309_s17 + $0x68] sm:$0xff]  ;;  %v3246_v26 = vld [vmem:[%s3309_s17 + $0x78] sm:$0xff] }
 0x505   : > { %v2577_v58 = vmul.f32 %v5636_v22, %v2544_v44  ;;  %v2606_v39 = vadd.f32 %v5644_v60, %v2573_v40  ;;  %v2634_v37 = vadd.f32 %v3239_v34, %v2602_v32  ;;  %2662 = vst.msk [vmem:[%s5683_s27 + $0x20] sm:$0xff] %vm627_vm3, %v2630_v43  ;;  %v2547_v41 = vsub.f32 %v5380_v17, %v5629_v2  ;;  %v3245_v40 = vld [vmem:[%s3309_s17 + $0x70] sm:$0xff] }
 0x506   : > { %v2578_v38 = vmul.f32 %v5636_v22, %v2545_v11  ;;  %v2607_v52 = vadd.f32 %v5644_v60, %v2574_v55  ;;  %v2635_v12 = vadd.f32 %v3240_v56, %v2603_v13  ;;  %2663 = vst.msk [vmem:[%s5683_s27 + $0x28] sm:$0xff] %vm627_vm3, %v2631_v16  ;;  %v2548_v24 = vsub.f32 %v5386_v62, %v5629_v2  ;;  %v3247_v16 = vld [vmem:[%s3309_s17 + $0x80] sm:$0xff] }
 0x507   : > { %v2579_v46 = vmul.f32 %v5636_v22, %v2546_v54  ;;  %v2608_v53 = vadd.f32 %v5644_v60, %v2575_v45  ;;  %v2636_v17 = vadd.f32 %v3241_v20, %v2604_v3  ;;  %2664 = vst.msk [vmem:[%s5683_s27 + $0x30] sm:$0xff] %vm627_vm3, %v2632_v21  ;;  %v2549_v29 = vsub.f32 %v5527_v61, %v5629_v2 }
 0x508   : > { %v2580_v57 = vmul.f32 %v5636_v22, %v2547_v41  ;;  %v2609_v28 = vadd.f32 %v5644_v60, %v2576_v0  ;;  %v2637_v62 = vadd.f32 %v3242_v8, %v2605_v7  ;;  %2665 = vst.msk [vmem:[%s5683_s27 + $0x38] sm:$0xff] %vm627_vm3, %v2633_v6  ;;  %v2550_v33 = vsub.f32 %v5532_v10, %v5629_v2  ;;  %v3249_v7 = vld [vmem:[%s3309_s17 + $0x90] sm:$0xff]  ;;  %v3251_v41 = vld [vmem:[%s3309_s17 + $0xa0] sm:$0xff] }
 0x509   : > { %v2581_v49 = vmul.f32 %v5636_v22, %v2548_v24  ;;  %v2610_v4 = vadd.f32 %v5644_v60, %v2577_v58  ;;  %v2638_v61 = vadd.f32 %v3243_v42, %v2606_v39  ;;  %2666 = vst.msk [vmem:[%s5683_s27 + $0x40] sm:$0xff] %vm627_vm3, %v2634_v37  ;;  %v2551_v51 = vsub.f32 %v5549_v35, %v5629_v2  ;;  %v3250_v58 = vld [vmem:[%s3309_s17 + $0x98] sm:$0xff] }
 0x50a   : > { %v2582_v30 = vmul.f32 %v5636_v22, %v2549_v29  ;;  %v2611_v5 = vadd.f32 %v5644_v60, %v2578_v38  ;;  %v2639_v10 = vadd.f32 %v3244_v27, %v2607_v52  ;;  %2667 = vst.msk [vmem:[%s5683_s27 + $0x48] sm:$0xff] %vm627_vm3, %v2635_v12  ;;  %v2552_v59 = vsub.f32 %v5557_v36, %v5629_v2 }
 0x50b   : > { %v2583_v14 = vmul.f32 %v5636_v22, %v2550_v33  ;;  %v2612_v9 = vadd.f32 %v5644_v60, %v2579_v46  ;;  %v2640_v35 = vadd.f32 %v3245_v40, %v2608_v53  ;;  %2668 = vst.msk [vmem:[%s5683_s27 + $0x50] sm:$0xff] %vm627_vm3, %v2636_v17  ;;  %v2553_v32 = vsub.f32 %v5562_v63, %v5629_v2  ;;  %v3253_v53 = vld [vmem:[%s3309_s17 + $0xb0] sm:$0xff]  ;;  %v3254_v17 = vld [vmem:[%s3309_s17 + $0xb8] sm:$0xff] }
 0x50c   : > { %v2584_v48 = vmul.f32 %v5636_v22, %v2551_v51  ;;  %v2613_v43 = vadd.f32 %v5644_v60, %v2580_v57  ;;  %v2641_v36 = vadd.f32 %v3246_v26, %v2609_v28  ;;  %2669 = vst.msk [vmem:[%s5683_s27 + $0x58] sm:$0xff] %vm627_vm3, %v2637_v62  ;;  %v2554_v55 = vsub.f32 %v5576_v19, %v5629_v2  ;;  %v3255_v28 = vld [vmem:[%s3309_s17 + $0xc0] sm:$0xff]  ;;  %v3256_v62 = vld [vmem:[%s3309_s17 + $0xc8] sm:$0xff]  ;;  %v3258_v51 = vld [vmem:[%s3309_s17 + $0xd8] sm:$0xff] }
 0x50d   : > { %v2585_v13 = vmul.f32 %v5636_v22, %v2552_v59  ;;  %v2614_v18 = vadd.f32 %v5644_v60, %v2581_v49  ;;  %v2642_v63 = vadd.f32 %v3247_v16, %v2610_v4  ;;  %2670 = vst.msk [vmem:[%s5683_s27 + $0x60] sm:$0xff] %vm627_vm3, %v2638_v61  ;;  %v2555_v44 = vsub.f32 %v5584_v31, %v5629_v2  ;;  %v3257_v4 = vld [vmem:[%s3309_s17 + $0xd0] sm:$0xff] }
 0x50e   : > { %v2586_v45 = vmul.f32 %v5636_v22, %v2553_v32  ;;  %v2615_v3 = vadd.f32 %v5644_v60, %v2582_v30  ;;  %v2643_v19 = vadd.f32 %v3248_v25, %v2611_v5  ;;  %2671 = vst.msk [vmem:[%s5683_s27 + $0x68] sm:$0xff] %vm627_vm3, %v2639_v10  ;;  %v2556_v21 = vsub.f32 %v5592_v15, %v5629_v2  ;;  %v3259_v5 = vld [vmem:[%s3309_s17 + $0xe0] sm:$0xff]  ;;  %v3260_v10 = vld [vmem:[%s3309_s17 + $0xe8] sm:$0xff] }
 0x50f   : > { %v2587_v11 = vmul.f32 %v5636_v22, %v2554_v55  ;;  %v2616_v0 = vadd.f32 %v5644_v60, %v2583_v14  ;;  %v2644_v31 = vadd.f32 %v3249_v7, %v2612_v9  ;;  %2672 = vst.msk [vmem:[%s5683_s27 + $0x70] sm:$0xff] %vm627_vm3, %v2640_v35  ;;  %v2557_v1 = vsub.f32 %v5599_v47, %v5629_v2  ;;  %v3261_v14 = vld [vmem:[%s3309_s17 + $0xf0] sm:$0xff] }
 0x510   : > { %v2588_v6 = vmul.f32 %v5636_v22, %v2555_v44  ;;  %v2617_v54 = vadd.f32 %v5644_v60, %v2584_v48  ;;  %v2645_v15 = vadd.f32 %v3250_v58, %v2613_v43  ;;  %2673 = vst.msk [vmem:[%s5683_s27 + $0x78] sm:$0xff] %vm627_vm3, %v2641_v36  ;;  %v2558_v39 = vsub.f32 %v5606_v50, %v5629_v2  ;;  %v3252_v50 = vld [vmem:[%s3309_s17 + $0xa8] sm:$0xff] }
 0x511   : > { %v2589_v34 = vmul.f32 %v5636_v22, %v2556_v21  ;;  %v2618_v37 = vadd.f32 %v5644_v60, %v2585_v13  ;;  %v2646_v47 = vadd.f32 %v3251_v41, %v2614_v18  ;;  %2674 = vst.msk [vmem:[%s5683_s27 + $0x80] sm:$0xff] %vm627_vm3, %v2642_v63  ;;  %v2559_v38 = vsub.f32 %v5622_v23, %v5629_v2 }
 0x512   : > { %v2590_v52 = vmul.f32 %v5636_v22, %v2557_v1  ;;  %v2619_v56 = vadd.f32 %v5644_v60, %v2586_v45  ;;  %v2647_v12 = vadd.f32 %v3252_v50, %v2615_v3  ;;  %2675 = vst.msk [vmem:[%s5683_s27 + $0x88] sm:$0xff] %vm627_vm3, %v2643_v19  ;;  %v2591_v24 = vmul.f32 %v5636_v22, %v2558_v39 }
 0x513   : > { %v2620_v46 = vadd.f32 %v5644_v60, %v2587_v11  ;;  %v2648_v20 = vadd.f32 %v3253_v53, %v2616_v0  ;;  %2676 = vst.msk [vmem:[%s5683_s27 + $0x90] sm:$0xff] %vm627_vm3, %v2644_v31  ;;  %v2592_v23 = vmul.f32 %v5636_v22, %v2559_v38  ;;  %v2621_v2 = vadd.f32 %v5644_v60, %v2588_v6 }
 0x514   : > { %v2649_v29 = vadd.f32 %v3254_v17, %v2617_v54  ;;  %2677 = vst.msk [vmem:[%s5683_s27 + $0x98] sm:$0xff] %vm627_vm3, %v2645_v15  ;;  %v2622_v57 = vadd.f32 %v5644_v60, %v2589_v34  ;;  %v2650_v8 = vadd.f32 %v3255_v28, %v2618_v37  ;;  %v2623_v22 = vadd.f32 %v5644_v60, %v2590_v52 }
 0x515   : > { %2678 = vst.msk [vmem:[%s5683_s27 + $0xa0] sm:$0xff] %vm627_vm3, %v2646_v47  ;;  %v2651_v33 = vadd.f32 %v3256_v62, %v2619_v56  ;;  %v2624_v49 = vadd.f32 %v5644_v60, %v2591_v24  ;;  %v2652_v42 = vadd.f32 %v3257_v4, %v2620_v46  ;;  %v2625_v61 = vadd.f32 %v5644_v60, %v2592_v23  ;;  %v3262_v60 = vld [vmem:[%s3309_s17 + $0xf8] sm:$0xff] }
 0x516   : > { %2679 = vst.msk [vmem:[%s5683_s27 + $0xa8] sm:$0xff] %vm627_vm3, %v2647_v12  ;;  %v2653_v30 = vadd.f32 %v3258_v51, %v2621_v2  ;;  %v2654_v27 = vadd.f32 %v3259_v5, %v2622_v57  ;;  %v2655_v59 = vadd.f32 %v3260_v10, %v2623_v22 }
 0x517   : > { %2680 = vst.msk [vmem:[%s5683_s27 + $0xb0] sm:$0xff] %vm627_vm3, %v2648_v20  ;;  %v2656_v9 = vadd.f32 %v3261_v14, %v2624_v49  ;;  %v2657_v40 = vadd.f32 %v3262_v60, %v2625_v61 }
 0x518   : > { %2681 = vst.msk [vmem:[%s5683_s27 + $0xb8] sm:$0xff] %vm627_vm3, %v2649_v29 }
 0x519   : > { %2682 = vst.msk [vmem:[%s5683_s27 + $0xc0] sm:$0xff] %vm627_vm3, %v2650_v8 }
 0x51a   : > { %2683 = vst.msk [vmem:[%s5683_s27 + $0xc8] sm:$0xff] %vm627_vm3, %v2651_v33 }
 0x51b   : > { %2684 = vst.msk [vmem:[%s5683_s27 + $0xd0] sm:$0xff] %vm627_vm3, %v2652_v42 }
 0x51c   : > { %2685 = vst.msk [vmem:[%s5683_s27 + $0xd8] sm:$0xff] %vm627_vm3, %v2653_v30 }
 0x51d   : > { %2686 = vst.msk [vmem:[%s5683_s27 + $0xe0] sm:$0xff] %vm627_vm3, %v2654_v27 }
 0x51e   : > { %2687 = vst.msk [vmem:[%s5683_s27 + $0xe8] sm:$0xff] %vm627_vm3, %v2655_v59 }
 0x51f   : > { %2688 = vst.msk [vmem:[%s5683_s27 + $0xf0] sm:$0xff] %vm627_vm3, %v2656_v9 }
 0x520   : > { %2689 = vst.msk [vmem:[%s5683_s27 + $0xf8] sm:$0xff] %vm627_vm3, %v2657_v40 }
 0x521 PF: > { %s13_s12 = sadd.s32 1, %s3269_s12  }
 0x522   : > { %p10_p4 = scmp.ge.s32.totalorder %s13_s12, 4  }
 0x524   :  { %12 = sbr.rel (!%p10_p4) target bundleno = 1 (0x1), region = 67 }

</bundles_post_ra>
